<compile_context>
chip_gen: v7x
topology: tpu7x:2x2x1
jax: 0.10.0
libtpu: 0.0.40
codegen_flags: <defaults>
</compile_context>

<pallas_src>
import functools

import jax
import jax.numpy as jnp
from jax.experimental import pallas as pl
from jax.experimental.pallas import tpu as pltpu

SEQ_LEN = 16          # stands in for sequence_length=100 (small demo shape)
C_IN = 7
C1, C2, C3 = 32, 64, 128
KSIZE = 5
NHEAD = 8
HEAD_DIM = C3 // NHEAD
DFF = 2048            # TransformerEncoderLayer default dim_feedforward
DFF_CHUNK = 512       # FFN hidden-dim chunk (bounds the live (S, DFF_CHUNK) intermediate)
N_OUT = 64
BATCH = 2
EPS = 1e-5


# ----------------------------------------------------------------------------
# Single fused kernel: one grid step == one batch element
# ----------------------------------------------------------------------------
def _fused_forward_kernel(
        x_ref, bn_s_ref, bn_b_ref,
        c1w_ref, c1b_ref, c2w_ref, c2b_ref, c3w_ref, c3b_ref,
        wqkv_ref, bqkv_ref, wo_ref, bo_ref,
        ln1g_ref, ln1b_ref, ff1w_ref, ff1b_ref, ff2w_ref, ff2b_ref,
        ln2g_ref, ln2b_ref, wlog_ref, blog_ref,
        o_ref,
        ctx_ref,
        *, seq, nhead, d_model, dff, dchunk):
    hd = d_model // nhead
    scale = 1.0 / float(hd) ** 0.5

    # ---- BatchNorm1d apply (per-seq-position scale/shift precomputed outside) ----
    x = x_ref[0] * bn_s_ref[...] + bn_b_ref[...]                 # (S, C_IN) f32

    # ---- Conv1d(+bias, ReLU) x3 as tap-sum matmuls on the MXU (bf16) ----
    def conv_relu(inp, w_ref, b_ref):
        ksize, cin, cout = w_ref.shape
        pad = (ksize - 1) // 2
        z = jnp.zeros((pad, cin), jnp.bfloat16)
        xp = jnp.concatenate([z, inp.astype(jnp.bfloat16), z], axis=0)  # (S+2p, cin)
        acc = jnp.zeros((seq, cout), jnp.float32)
        for k in range(ksize):                                   # static unrolled taps
            acc = acc + jnp.dot(xp[k:k + seq, :], w_ref[k],
                                preferred_element_type=jnp.float32)
        return jnp.maximum(acc + b_ref[...], 0.0)

    h = conv_relu(x, c1w_ref, c1b_ref)                           # (S, 32)
    h = conv_relu(h, c2w_ref, c2b_ref)                           # (S, 64)
    h = conv_relu(h, c3w_ref, c3b_ref)                           # (S, 128)

    # ---- TransformerEncoderLayer (post-norm, ReLU FFN) ----
    hb = h.astype(jnp.bfloat16)
    qkv = jnp.dot(hb, wqkv_ref[...],
                  preferred_element_type=jnp.float32) + bqkv_ref[...]   # (S, 3E)
    q = qkv[:, :d_model]
    k = qkv[:, d_model:2 * d_model]
    v = qkv[:, 2 * d_model:]

    # multi-head self attention: per-head (S,S) softmax, ctx written into its
    # 16-lane column slice of an (S, E) VMEM scratch, then ONE K=128 matmul.
    for hh in range(nhead):
        c0 = hh * hd
        qs = q[:, c0:c0 + hd]
        ks = k[:, c0:c0 + hd]
        vs = v[:, c0:c0 + hd]
        s = jax.lax.dot_general(qs, ks, (((1,), (1,)), ((), ())),
                                preferred_element_type=jnp.float32) * scale
        s = s - jnp.max(s, axis=-1, keepdims=True)
        p = jnp.exp(s)
        p = p * pl.reciprocal(jnp.sum(p, axis=-1, keepdims=True), approx=True)
        ctx_ref[:, c0:c0 + hd] = jnp.dot(p, vs, preferred_element_type=jnp.float32)

    attn = jnp.dot(ctx_ref[...].astype(jnp.bfloat16), wo_ref[...],
                   preferred_element_type=jnp.float32) + bo_ref[...]

    def layernorm(y, g_ref, b_ref):
        mu = jnp.mean(y, axis=-1, keepdims=True)
        var = jnp.mean(jnp.square(y - mu), axis=-1, keepdims=True)
        return (y - mu) * jax.lax.rsqrt(var + EPS) * g_ref[...] + b_ref[...]

    # residual + LayerNorm1 (all S rows at once)
    h1 = layernorm(h + attn, ln1g_ref, ln1b_ref)

    # feed-forward, chunked over the 2048-wide hidden dim to bound vreg pressure
    h1b = h1.astype(jnp.bfloat16)
    ff = jnp.zeros((seq, d_model), jnp.float32)
    for c in range(dff // dchunk):
        lo = c * dchunk
        z1 = jnp.dot(h1b, ff1w_ref[:, lo:lo + dchunk],
                     preferred_element_type=jnp.float32) + ff1b_ref[:, lo:lo + dchunk]
        z1 = jnp.maximum(z1, 0.0)
        ff = ff + jnp.dot(z1.astype(jnp.bfloat16), ff2w_ref[lo:lo + dchunk, :],
                          preferred_element_type=jnp.float32)
    ff = ff + ff2b_ref[...]

    # residual + LayerNorm2, then the F.relu that follows transformer_encoder
    h2 = jnp.maximum(layernorm(h1 + ff, ln2g_ref, ln2b_ref), 0.0)

    # ---- AdaptiveMaxPool1d(1) over seq + Linear(128->64) + softmax ----
    pooled = jnp.max(h2, axis=0, keepdims=True)                  # (1, E)
    logits = jnp.dot(pooled.astype(jnp.bfloat16), wlog_ref[...],
                     preferred_element_type=jnp.float32) + blog_ref[...]   # (1, 64)
    logits = logits - jnp.max(logits, axis=-1, keepdims=True)
    e = jnp.exp(logits)
    probs = e / jnp.sum(e, axis=-1, keepdims=True)               # exact normalization
    o_ref[0] = probs.astype(o_ref.dtype)


def forward(params, x):
    B, S, C = x.shape
    E = C3

    # BatchNorm1d(num_features=S) training-mode batch statistics: per seq position
    # over (N, L), biased variance.  Tiny cross-batch reduction kept in plain JAX;
    # the affine apply is fused into the kernel.
    mean = jnp.mean(x, axis=(0, 2))                              # (S,)
    var = jnp.mean(jnp.square(x - mean[None, :, None]), axis=(0, 2))
    inv = jax.lax.rsqrt(var + EPS)
    bn_scale = (params["bn_gamma"] * inv).reshape(S, 1)
    bn_shift = (params["bn_beta"] - params["bn_gamma"] * mean * inv).reshape(S, 1)

    weight_args = [
        params["conv1_w"], params["conv1_b"],
        params["conv2_w"], params["conv2_b"],
        params["conv3_w"], params["conv3_b"],
        params["wqkv"], params["bqkv"],
        params["wo"], params["bo"],
        params["ln1_g"], params["ln1_b"],
        params["ff1_w"], params["ff1_b"],
        params["ff2_w"], params["ff2_b"],
        params["ln2_g"], params["ln2_b"],
        params["logits_w"], params["logits_b"],
    ]

    def replicated_spec(shape):
        n = len(shape)

        def idx(b):
            return (0,) * n

        return pl.BlockSpec(shape, idx)

    in_specs = ([pl.BlockSpec((1, S, C), lambda b: (b, 0, 0)),
                 replicated_spec((S, 1)),
                 replicated_spec((S, 1))]
                + [replicated_spec(tuple(w.shape)) for w in weight_args])

    kernel = functools.partial(_fused_forward_kernel, seq=S, nhead=NHEAD,
                               d_model=E, dff=DFF, dchunk=DFF_CHUNK)

    out = pl.pallas_call(
        kernel,
        grid=(B,),
        out_shape=jax.ShapeDtypeStruct((B, 1, N_OUT), jnp.float32),
        in_specs=in_specs,
        out_specs=pl.BlockSpec((1, 1, N_OUT), lambda b: (b, 0, 0)),
        scratch_shapes=[pltpu.VMEM((S, E), jnp.float32)],
        compiler_params=pltpu.CompilerParams(
            dimension_semantics=("parallel",)),
    )(x, bn_scale, bn_shift, *weight_args)
    return out.reshape(B, N_OUT)


def init_params(key):
    ks = jax.random.split(key, 16)

    def w_init(k, shape, fan_in):
        return (jax.random.normal(k, shape, jnp.float32) * (fan_in ** -0.5)
                ).astype(jnp.bfloat16)

    def b_init(k, shape):
        return jax.random.normal(k, shape, jnp.float32) * 0.01

    E = C3
    return dict(
        bn_gamma=jnp.ones((SEQ_LEN,), jnp.float32),
        bn_beta=jnp.zeros((SEQ_LEN,), jnp.float32),
        conv1_w=w_init(ks[0], (KSIZE, C_IN, C1), KSIZE * C_IN),
        conv1_b=b_init(ks[1], (1, C1)),
        conv2_w=w_init(ks[2], (KSIZE, C1, C2), KSIZE * C1),
        conv2_b=b_init(ks[3], (1, C2)),
        conv3_w=w_init(ks[4], (KSIZE, C2, C3), KSIZE * C2),
        conv3_b=b_init(ks[5], (1, C3)),
        wqkv=w_init(ks[6], (E, 3 * E), E),
        bqkv=b_init(ks[7], (1, 3 * E)),
        wo=w_init(ks[8], (E, E), E),
        bo=b_init(ks[9], (1, E)),
        ln1_g=jnp.ones((1, E), jnp.float32),
        ln1_b=jnp.zeros((1, E), jnp.float32),
        ff1_w=w_init(ks[10], (E, DFF), E),
        ff1_b=b_init(ks[11], (1, DFF)),
        ff2_w=w_init(ks[12], (DFF, E), DFF),
        ff2_b=b_init(ks[13], (1, E)),
        ln2_g=jnp.ones((1, E), jnp.float32),
        ln2_b=jnp.zeros((1, E), jnp.float32),
        logits_w=w_init(ks[14], (E, N_OUT), E),
        logits_b=b_init(ks[15], (1, N_OUT)),
    )


if __name__ == "__main__":
    key = jax.random.PRNGKey(0)
    pkey, xkey = jax.random.split(key)
    params = init_params(pkey)
    x = jax.random.normal(xkey, (BATCH, SEQ_LEN, C_IN), jnp.float32)

    out = jax.jit(forward)(params, x)
    out = jax.block_until_ready(out)

    assert out.shape == (BATCH, N_OUT)
    assert bool(jnp.all(jnp.isfinite(out)))
    assert bool(jnp.allclose(jnp.sum(out, axis=1), 1.0, atol=1e-4))
    print("KERNEL_OK")
</pallas_src>

<mosaic_0001>
module attributes {stable_mosaic.version = 11 : i64} {
  func.func @_fused_forward_kernel(%arg0: i32, %arg1: memref<1x16x7xf32, #tpu.memory_space<vmem>>, %arg2: memref<16x1xf32, #tpu.memory_space<vmem>>, %arg3: memref<16x1xf32, #tpu.memory_space<vmem>>, %arg4: memref<5x7x32xbf16, #tpu.memory_space<vmem>>, %arg5: memref<1x32xf32, #tpu.memory_space<vmem>>, %arg6: memref<5x32x64xbf16, #tpu.memory_space<vmem>>, %arg7: memref<1x64xf32, #tpu.memory_space<vmem>>, %arg8: memref<5x64x128xbf16, #tpu.memory_space<vmem>>, %arg9: memref<1x128xf32, #tpu.memory_space<vmem>>, %arg10: memref<128x384xbf16, #tpu.memory_space<vmem>>, %arg11: memref<1x384xf32, #tpu.memory_space<vmem>>, %arg12: memref<128x128xbf16, #tpu.memory_space<vmem>>, %arg13: memref<1x128xf32, #tpu.memory_space<vmem>>, %arg14: memref<1x128xf32, #tpu.memory_space<vmem>>, %arg15: memref<1x128xf32, #tpu.memory_space<vmem>>, %arg16: memref<128x2048xbf16, #tpu.memory_space<vmem>>, %arg17: memref<1x2048xf32, #tpu.memory_space<vmem>>, %arg18: memref<2048x128xbf16, #tpu.memory_space<vmem>>, %arg19: memref<1x128xf32, #tpu.memory_space<vmem>>, %arg20: memref<1x128xf32, #tpu.memory_space<vmem>>, %arg21: memref<1x128xf32, #tpu.memory_space<vmem>>, %arg22: memref<128x64xbf16, #tpu.memory_space<vmem>>, %arg23: memref<1x64xf32, #tpu.memory_space<vmem>>, %arg24: memref<1x1x64xf32, #tpu.memory_space<vmem>>, %arg25: memref<16x128xf32, #tpu.memory_space<vmem>>) attributes {dimension_semantics = [#tpu.dimension_semantics<parallel>], iteration_bounds = array<i64: 2>, scalar_prefetch = 0 : i64, scratch_operands = 1 : i64, tpu.core_type = #tpu.core_type<tc>, window_params = [{transform_indices = @transform_0, window_bounds = array<i64: 1, 16, 7>}, {pipeline_mode = #tpu.pipeline_mode<synchronous>, transform_indices = @transform_1, window_bounds = array<i64: 16, 1>}, {pipeline_mode = #tpu.pipeline_mode<synchronous>, transform_indices = @transform_2, window_bounds = array<i64: 16, 1>}, {pipeline_mode = #tpu.pipeline_mode<synchronous>, transform_indices = @transform_3, window_bounds = array<i64: 5, 7, 32>}, {pipeline_mode = #tpu.pipeline_mode<synchronous>, transform_indices = @transform_4, window_bounds = array<i64: 1, 32>}, {pipeline_mode = #tpu.pipeline_mode<synchronous>, transform_indices = @transform_5, window_bounds = array<i64: 5, 32, 64>}, {pipeline_mode = #tpu.pipeline_mode<synchronous>, transform_indices = @transform_6, window_bounds = array<i64: 1, 64>}, {pipeline_mode = #tpu.pipeline_mode<synchronous>, transform_indices = @transform_7, window_bounds = array<i64: 5, 64, 128>}, {pipeline_mode = #tpu.pipeline_mode<synchronous>, transform_indices = @transform_8, window_bounds = array<i64: 1, 128>}, {pipeline_mode = #tpu.pipeline_mode<synchronous>, transform_indices = @transform_9, window_bounds = array<i64: 128, 384>}, {pipeline_mode = #tpu.pipeline_mode<synchronous>, transform_indices = @transform_10, window_bounds = array<i64: 1, 384>}, {pipeline_mode = #tpu.pipeline_mode<synchronous>, transform_indices = @transform_11, window_bounds = array<i64: 128, 128>}, {pipeline_mode = #tpu.pipeline_mode<synchronous>, transform_indices = @transform_12, window_bounds = array<i64: 1, 128>}, {pipeline_mode = #tpu.pipeline_mode<synchronous>, transform_indices = @transform_13, window_bounds = array<i64: 1, 128>}, {pipeline_mode = #tpu.pipeline_mode<synchronous>, transform_indices = @transform_14, window_bounds = array<i64: 1, 128>}, {pipeline_mode = #tpu.pipeline_mode<synchronous>, transform_indices = @transform_15, window_bounds = array<i64: 128, 2048>}, {pipeline_mode = #tpu.pipeline_mode<synchronous>, transform_indices = @transform_16, window_bounds = array<i64: 1, 2048>}, {pipeline_mode = #tpu.pipeline_mode<synchronous>, transform_indices = @transform_17, window_bounds = array<i64: 2048, 128>}, {pipeline_mode = #tpu.pipeline_mode<synchronous>, transform_indices = @transform_18, window_bounds = array<i64: 1, 128>}, {pipeline_mode = #tpu.pipeline_mode<synchronous>, transform_indices = @transform_19, window_bounds = array<i64: 1, 128>}, {pipeline_mode = #tpu.pipeline_mode<synchronous>, transform_indices = @transform_20, window_bounds = array<i64: 1, 128>}, {pipeline_mode = #tpu.pipeline_mode<synchronous>, transform_indices = @transform_21, window_bounds = array<i64: 128, 64>}, {pipeline_mode = #tpu.pipeline_mode<synchronous>, transform_indices = @transform_22, window_bounds = array<i64: 1, 64>}, {transform_indices = @transform_23, window_bounds = array<i64: 1, 1, 64>}]} {
    %c0 = arith.constant 0 : index
    %c0_0 = arith.constant 0 : index
    %c0_1 = arith.constant 0 : index
    %0 = vector.load %arg1[%c0, %c0_0, %c0_1] : memref<1x16x7xf32, #tpu.memory_space<vmem>>, vector<1x16x7xf32>
    %1 = vector.shape_cast %0 : vector<1x16x7xf32> to vector<16x7xf32>
    %c0_2 = arith.constant 0 : index
    %c0_3 = arith.constant 0 : index
    %2 = vector.load %arg2[%c0_2, %c0_3] : memref<16x1xf32, #tpu.memory_space<vmem>>, vector<16x1xf32>
    %3 = vector.broadcast %2 : vector<16x1xf32> to vector<16x7xf32>
    %4 = arith.mulf %1, %3 : vector<16x7xf32>
    %c0_4 = arith.constant 0 : index
    %c0_5 = arith.constant 0 : index
    %5 = vector.load %arg3[%c0_4, %c0_5] : memref<16x1xf32, #tpu.memory_space<vmem>>, vector<16x1xf32>
    %6 = vector.broadcast %5 : vector<16x1xf32> to vector<16x7xf32>
    %7 = arith.addf %4, %6 : vector<16x7xf32>
    %cst = arith.constant 0.000000e+00 : bf16
    %8 = vector.broadcast %cst : bf16 to vector<2x7xbf16>
    %9 = arith.truncf %7 : vector<16x7xf32> to vector<16x7xbf16>
    %10 = tpu.concatenate %8, %9, %8 in 0 : vector<2x7xbf16>, vector<16x7xbf16>, vector<2x7xbf16> -> vector<20x7xbf16>
    %cst_6 = arith.constant 0.000000e+00 : f32
    %11 = vector.broadcast %cst_6 : f32 to vector<16x32xf32>
    %12 = vector.extract_strided_slice %10 {offsets = [0, 0], sizes = [16, 7], strides = [1, 1]} : vector<20x7xbf16> to vector<16x7xbf16>
    %c0_7 = arith.constant 0 : index
    %c0_8 = arith.constant 0 : index
    %c0_9 = arith.constant 0 : index
    %13 = vector.load %arg4[%c0_7, %c0_8, %c0_9] : memref<5x7x32xbf16, #tpu.memory_space<vmem>>, vector<1x7x32xbf16>
    %14 = vector.shape_cast %13 : vector<1x7x32xbf16> to vector<7x32xbf16>
    %cst_10 = arith.constant dense<0.000000e+00> : vector<16x32xf32>
    %15 = tpu.matmul %12, %14, %cst_10 {dimension_numbers = #tpu.dot_dimension_numbers<[1], [0], [0], [1], [0, 0, 1, 1], [], []>} : vector<16x7xbf16>, vector<7x32xbf16>, vector<16x32xf32> -> vector<16x32xf32>
    %16 = arith.addf %11, %15 : vector<16x32xf32>
    %17 = vector.extract_strided_slice %10 {offsets = [1, 0], sizes = [16, 7], strides = [1, 1]} : vector<20x7xbf16> to vector<16x7xbf16>
    %c1 = arith.constant 1 : index
    %c0_11 = arith.constant 0 : index
    %c0_12 = arith.constant 0 : index
    %18 = vector.load %arg4[%c1, %c0_11, %c0_12] : memref<5x7x32xbf16, #tpu.memory_space<vmem>>, vector<1x7x32xbf16>
    %19 = vector.shape_cast %18 : vector<1x7x32xbf16> to vector<7x32xbf16>
    %cst_13 = arith.constant dense<0.000000e+00> : vector<16x32xf32>
    %20 = tpu.matmul %17, %19, %cst_13 {dimension_numbers = #tpu.dot_dimension_numbers<[1], [0], [0], [1], [0, 0, 1, 1], [], []>} : vector<16x7xbf16>, vector<7x32xbf16>, vector<16x32xf32> -> vector<16x32xf32>
    %21 = arith.addf %16, %20 : vector<16x32xf32>
    %22 = vector.extract_strided_slice %10 {offsets = [2, 0], sizes = [16, 7], strides = [1, 1]} : vector<20x7xbf16> to vector<16x7xbf16>
    %c2 = arith.constant 2 : index
    %c0_14 = arith.constant 0 : index
    %c0_15 = arith.constant 0 : index
    %23 = vector.load %arg4[%c2, %c0_14, %c0_15] : memref<5x7x32xbf16, #tpu.memory_space<vmem>>, vector<1x7x32xbf16>
    %24 = vector.shape_cast %23 : vector<1x7x32xbf16> to vector<7x32xbf16>
    %cst_16 = arith.constant dense<0.000000e+00> : vector<16x32xf32>
    %25 = tpu.matmul %22, %24, %cst_16 {dimension_numbers = #tpu.dot_dimension_numbers<[1], [0], [0], [1], [0, 0, 1, 1], [], []>} : vector<16x7xbf16>, vector<7x32xbf16>, vector<16x32xf32> -> vector<16x32xf32>
    %26 = arith.addf %21, %25 : vector<16x32xf32>
    %27 = vector.extract_strided_slice %10 {offsets = [3, 0], sizes = [16, 7], strides = [1, 1]} : vector<20x7xbf16> to vector<16x7xbf16>
    %c3 = arith.constant 3 : index
    %c0_17 = arith.constant 0 : index
    %c0_18 = arith.constant 0 : index
    %28 = vector.load %arg4[%c3, %c0_17, %c0_18] : memref<5x7x32xbf16, #tpu.memory_space<vmem>>, vector<1x7x32xbf16>
    %29 = vector.shape_cast %28 : vector<1x7x32xbf16> to vector<7x32xbf16>
    %cst_19 = arith.constant dense<0.000000e+00> : vector<16x32xf32>
    %30 = tpu.matmul %27, %29, %cst_19 {dimension_numbers = #tpu.dot_dimension_numbers<[1], [0], [0], [1], [0, 0, 1, 1], [], []>} : vector<16x7xbf16>, vector<7x32xbf16>, vector<16x32xf32> -> vector<16x32xf32>
    %31 = arith.addf %26, %30 : vector<16x32xf32>
    %32 = vector.extract_strided_slice %10 {offsets = [4, 0], sizes = [16, 7], strides = [1, 1]} : vector<20x7xbf16> to vector<16x7xbf16>
    %c4 = arith.constant 4 : index
    %c0_20 = arith.constant 0 : index
    %c0_21 = arith.constant 0 : index
    %33 = vector.load %arg4[%c4, %c0_20, %c0_21] : memref<5x7x32xbf16, #tpu.memory_space<vmem>>, vector<1x7x32xbf16>
    %34 = vector.shape_cast %33 : vector<1x7x32xbf16> to vector<7x32xbf16>
    %cst_22 = arith.constant dense<0.000000e+00> : vector<16x32xf32>
    %35 = tpu.matmul %32, %34, %cst_22 {dimension_numbers = #tpu.dot_dimension_numbers<[1], [0], [0], [1], [0, 0, 1, 1], [], []>} : vector<16x7xbf16>, vector<7x32xbf16>, vector<16x32xf32> -> vector<16x32xf32>
    %36 = arith.addf %31, %35 : vector<16x32xf32>
    %c0_23 = arith.constant 0 : index
    %c0_24 = arith.constant 0 : index
    %37 = vector.load %arg5[%c0_23, %c0_24] : memref<1x32xf32, #tpu.memory_space<vmem>>, vector<1x32xf32>
    %38 = vector.broadcast %37 : vector<1x32xf32> to vector<16x32xf32>
    %39 = arith.addf %36, %38 : vector<16x32xf32>
    %cst_25 = arith.constant 0.000000e+00 : f32
    %40 = vector.broadcast %cst_25 : f32 to vector<16x32xf32>
    %41 = arith.maximumf %39, %40 : vector<16x32xf32>
    %cst_26 = arith.constant 0.000000e+00 : bf16
    %42 = vector.broadcast %cst_26 : bf16 to vector<2x32xbf16>
    %43 = arith.truncf %41 : vector<16x32xf32> to vector<16x32xbf16>
    %44 = tpu.concatenate %42, %43, %42 in 0 : vector<2x32xbf16>, vector<16x32xbf16>, vector<2x32xbf16> -> vector<20x32xbf16>
    %cst_27 = arith.constant 0.000000e+00 : f32
    %45 = vector.broadcast %cst_27 : f32 to vector<16x64xf32>
    %46 = vector.extract_strided_slice %44 {offsets = [0, 0], sizes = [16, 32], strides = [1, 1]} : vector<20x32xbf16> to vector<16x32xbf16>
    %c0_28 = arith.constant 0 : index
    %c0_29 = arith.constant 0 : index
    %c0_30 = arith.constant 0 : index
    %47 = vector.load %arg6[%c0_28, %c0_29, %c0_30] : memref<5x32x64xbf16, #tpu.memory_space<vmem>>, vector<1x32x64xbf16>
    %48 = vector.shape_cast %47 : vector<1x32x64xbf16> to vector<32x64xbf16>
    %cst_31 = arith.constant dense<0.000000e+00> : vector<16x64xf32>
    %49 = tpu.matmul %46, %48, %cst_31 {dimension_numbers = #tpu.dot_dimension_numbers<[1], [0], [0], [1], [0, 0, 1, 1], [], []>} : vector<16x32xbf16>, vector<32x64xbf16>, vector<16x64xf32> -> vector<16x64xf32>
    %50 = arith.addf %45, %49 : vector<16x64xf32>
    %51 = vector.extract_strided_slice %44 {offsets = [1, 0], sizes = [16, 32], strides = [1, 1]} : vector<20x32xbf16> to vector<16x32xbf16>
    %c1_32 = arith.constant 1 : index
    %c0_33 = arith.constant 0 : index
    %c0_34 = arith.constant 0 : index
    %52 = vector.load %arg6[%c1_32, %c0_33, %c0_34] : memref<5x32x64xbf16, #tpu.memory_space<vmem>>, vector<1x32x64xbf16>
    %53 = vector.shape_cast %52 : vector<1x32x64xbf16> to vector<32x64xbf16>
    %cst_35 = arith.constant dense<0.000000e+00> : vector<16x64xf32>
    %54 = tpu.matmul %51, %53, %cst_35 {dimension_numbers = #tpu.dot_dimension_numbers<[1], [0], [0], [1], [0, 0, 1, 1], [], []>} : vector<16x32xbf16>, vector<32x64xbf16>, vector<16x64xf32> -> vector<16x64xf32>
    %55 = arith.addf %50, %54 : vector<16x64xf32>
    %56 = vector.extract_strided_slice %44 {offsets = [2, 0], sizes = [16, 32], strides = [1, 1]} : vector<20x32xbf16> to vector<16x32xbf16>
    %c2_36 = arith.constant 2 : index
    %c0_37 = arith.constant 0 : index
    %c0_38 = arith.constant 0 : index
    %57 = vector.load %arg6[%c2_36, %c0_37, %c0_38] : memref<5x32x64xbf16, #tpu.memory_space<vmem>>, vector<1x32x64xbf16>
    %58 = vector.shape_cast %57 : vector<1x32x64xbf16> to vector<32x64xbf16>
    %cst_39 = arith.constant dense<0.000000e+00> : vector<16x64xf32>
    %59 = tpu.matmul %56, %58, %cst_39 {dimension_numbers = #tpu.dot_dimension_numbers<[1], [0], [0], [1], [0, 0, 1, 1], [], []>} : vector<16x32xbf16>, vector<32x64xbf16>, vector<16x64xf32> -> vector<16x64xf32>
    %60 = arith.addf %55, %59 : vector<16x64xf32>
    %61 = vector.extract_strided_slice %44 {offsets = [3, 0], sizes = [16, 32], strides = [1, 1]} : vector<20x32xbf16> to vector<16x32xbf16>
    %c3_40 = arith.constant 3 : index
    %c0_41 = arith.constant 0 : index
    %c0_42 = arith.constant 0 : index
    %62 = vector.load %arg6[%c3_40, %c0_41, %c0_42] : memref<5x32x64xbf16, #tpu.memory_space<vmem>>, vector<1x32x64xbf16>
    %63 = vector.shape_cast %62 : vector<1x32x64xbf16> to vector<32x64xbf16>
    %cst_43 = arith.constant dense<0.000000e+00> : vector<16x64xf32>
    %64 = tpu.matmul %61, %63, %cst_43 {dimension_numbers = #tpu.dot_dimension_numbers<[1], [0], [0], [1], [0, 0, 1, 1], [], []>} : vector<16x32xbf16>, vector<32x64xbf16>, vector<16x64xf32> -> vector<16x64xf32>
    %65 = arith.addf %60, %64 : vector<16x64xf32>
    %66 = vector.extract_strided_slice %44 {offsets = [4, 0], sizes = [16, 32], strides = [1, 1]} : vector<20x32xbf16> to vector<16x32xbf16>
    %c4_44 = arith.constant 4 : index
    %c0_45 = arith.constant 0 : index
    %c0_46 = arith.constant 0 : index
    %67 = vector.load %arg6[%c4_44, %c0_45, %c0_46] : memref<5x32x64xbf16, #tpu.memory_space<vmem>>, vector<1x32x64xbf16>
    %68 = vector.shape_cast %67 : vector<1x32x64xbf16> to vector<32x64xbf16>
    %cst_47 = arith.constant dense<0.000000e+00> : vector<16x64xf32>
    %69 = tpu.matmul %66, %68, %cst_47 {dimension_numbers = #tpu.dot_dimension_numbers<[1], [0], [0], [1], [0, 0, 1, 1], [], []>} : vector<16x32xbf16>, vector<32x64xbf16>, vector<16x64xf32> -> vector<16x64xf32>
    %70 = arith.addf %65, %69 : vector<16x64xf32>
    %c0_48 = arith.constant 0 : index
    %c0_49 = arith.constant 0 : index
    %71 = vector.load %arg7[%c0_48, %c0_49] : memref<1x64xf32, #tpu.memory_space<vmem>>, vector<1x64xf32>
    %72 = vector.broadcast %71 : vector<1x64xf32> to vector<16x64xf32>
    %73 = arith.addf %70, %72 : vector<16x64xf32>
    %cst_50 = arith.constant 0.000000e+00 : f32
    %74 = vector.broadcast %cst_50 : f32 to vector<16x64xf32>
    %75 = arith.maximumf %73, %74 : vector<16x64xf32>
    %cst_51 = arith.constant 0.000000e+00 : bf16
    %76 = vector.broadcast %cst_51 : bf16 to vector<2x64xbf16>
    %77 = arith.truncf %75 : vector<16x64xf32> to vector<16x64xbf16>
    %78 = tpu.concatenate %76, %77, %76 in 0 : vector<2x64xbf16>, vector<16x64xbf16>, vector<2x64xbf16> -> vector<20x64xbf16>
    %cst_52 = arith.constant 0.000000e+00 : f32
    %79 = vector.broadcast %cst_52 : f32 to vector<16x128xf32>
    %80 = vector.extract_strided_slice %78 {offsets = [0, 0], sizes = [16, 64], strides = [1, 1]} : vector<20x64xbf16> to vector<16x64xbf16>
    %c0_53 = arith.constant 0 : index
    %c0_54 = arith.constant 0 : index
    %c0_55 = arith.constant 0 : index
    %81 = vector.load %arg8[%c0_53, %c0_54, %c0_55] : memref<5x64x128xbf16, #tpu.memory_space<vmem>>, vector<1x64x128xbf16>
    %82 = vector.shape_cast %81 : vector<1x64x128xbf16> to vector<64x128xbf16>
    %cst_56 = arith.constant dense<0.000000e+00> : vector<16x128xf32>
    %83 = tpu.matmul %80, %82, %cst_56 {dimension_numbers = #tpu.dot_dimension_numbers<[1], [0], [0], [1], [0, 0, 1, 1], [], []>} : vector<16x64xbf16>, vector<64x128xbf16>, vector<16x128xf32> -> vector<16x128xf32>
    %84 = arith.addf %79, %83 : vector<16x128xf32>
    %85 = vector.extract_strided_slice %78 {offsets = [1, 0], sizes = [16, 64], strides = [1, 1]} : vector<20x64xbf16> to vector<16x64xbf16>
    %c1_57 = arith.constant 1 : index
    %c0_58 = arith.constant 0 : index
    %c0_59 = arith.constant 0 : index
    %86 = vector.load %arg8[%c1_57, %c0_58, %c0_59] : memref<5x64x128xbf16, #tpu.memory_space<vmem>>, vector<1x64x128xbf16>
    %87 = vector.shape_cast %86 : vector<1x64x128xbf16> to vector<64x128xbf16>
    %cst_60 = arith.constant dense<0.000000e+00> : vector<16x128xf32>
    %88 = tpu.matmul %85, %87, %cst_60 {dimension_numbers = #tpu.dot_dimension_numbers<[1], [0], [0], [1], [0, 0, 1, 1], [], []>} : vector<16x64xbf16>, vector<64x128xbf16>, vector<16x128xf32> -> vector<16x128xf32>
    %89 = arith.addf %84, %88 : vector<16x128xf32>
    %90 = vector.extract_strided_slice %78 {offsets = [2, 0], sizes = [16, 64], strides = [1, 1]} : vector<20x64xbf16> to vector<16x64xbf16>
    %c2_61 = arith.constant 2 : index
    %c0_62 = arith.constant 0 : index
    %c0_63 = arith.constant 0 : index
    %91 = vector.load %arg8[%c2_61, %c0_62, %c0_63] : memref<5x64x128xbf16, #tpu.memory_space<vmem>>, vector<1x64x128xbf16>
    %92 = vector.shape_cast %91 : vector<1x64x128xbf16> to vector<64x128xbf16>
    %cst_64 = arith.constant dense<0.000000e+00> : vector<16x128xf32>
    %93 = tpu.matmul %90, %92, %cst_64 {dimension_numbers = #tpu.dot_dimension_numbers<[1], [0], [0], [1], [0, 0, 1, 1], [], []>} : vector<16x64xbf16>, vector<64x128xbf16>, vector<16x128xf32> -> vector<16x128xf32>
    %94 = arith.addf %89, %93 : vector<16x128xf32>
    %95 = vector.extract_strided_slice %78 {offsets = [3, 0], sizes = [16, 64], strides = [1, 1]} : vector<20x64xbf16> to vector<16x64xbf16>
    %c3_65 = arith.constant 3 : index
    %c0_66 = arith.constant 0 : index
    %c0_67 = arith.constant 0 : index
    %96 = vector.load %arg8[%c3_65, %c0_66, %c0_67] : memref<5x64x128xbf16, #tpu.memory_space<vmem>>, vector<1x64x128xbf16>
    %97 = vector.shape_cast %96 : vector<1x64x128xbf16> to vector<64x128xbf16>
    %cst_68 = arith.constant dense<0.000000e+00> : vector<16x128xf32>
    %98 = tpu.matmul %95, %97, %cst_68 {dimension_numbers = #tpu.dot_dimension_numbers<[1], [0], [0], [1], [0, 0, 1, 1], [], []>} : vector<16x64xbf16>, vector<64x128xbf16>, vector<16x128xf32> -> vector<16x128xf32>
    %99 = arith.addf %94, %98 : vector<16x128xf32>
    %100 = vector.extract_strided_slice %78 {offsets = [4, 0], sizes = [16, 64], strides = [1, 1]} : vector<20x64xbf16> to vector<16x64xbf16>
    %c4_69 = arith.constant 4 : index
    %c0_70 = arith.constant 0 : index
    %c0_71 = arith.constant 0 : index
    %101 = vector.load %arg8[%c4_69, %c0_70, %c0_71] : memref<5x64x128xbf16, #tpu.memory_space<vmem>>, vector<1x64x128xbf16>
    %102 = vector.shape_cast %101 : vector<1x64x128xbf16> to vector<64x128xbf16>
    %cst_72 = arith.constant dense<0.000000e+00> : vector<16x128xf32>
    %103 = tpu.matmul %100, %102, %cst_72 {dimension_numbers = #tpu.dot_dimension_numbers<[1], [0], [0], [1], [0, 0, 1, 1], [], []>} : vector<16x64xbf16>, vector<64x128xbf16>, vector<16x128xf32> -> vector<16x128xf32>
    %104 = arith.addf %99, %103 : vector<16x128xf32>
    %c0_73 = arith.constant 0 : index
    %c0_74 = arith.constant 0 : index
    %105 = vector.load %arg9[%c0_73, %c0_74] : memref<1x128xf32, #tpu.memory_space<vmem>>, vector<1x128xf32>
    %106 = vector.broadcast %105 : vector<1x128xf32> to vector<16x128xf32>
    %107 = arith.addf %104, %106 : vector<16x128xf32>
    %cst_75 = arith.constant 0.000000e+00 : f32
    %108 = vector.broadcast %cst_75 : f32 to vector<16x128xf32>
    %109 = arith.maximumf %107, %108 : vector<16x128xf32>
    %110 = arith.truncf %109 : vector<16x128xf32> to vector<16x128xbf16>
    %c0_76 = arith.constant 0 : index
    %c0_77 = arith.constant 0 : index
    %111 = vector.load %arg10[%c0_76, %c0_77] : memref<128x384xbf16, #tpu.memory_space<vmem>>, vector<128x384xbf16>
    %cst_78 = arith.constant dense<0.000000e+00> : vector<16x384xf32>
    %112 = tpu.matmul %110, %111, %cst_78 {dimension_numbers = #tpu.dot_dimension_numbers<[1], [0], [0], [1], [0, 0, 1, 1], [], []>} : vector<16x128xbf16>, vector<128x384xbf16>, vector<16x384xf32> -> vector<16x384xf32>
    %c0_79 = arith.constant 0 : index
    %c0_80 = arith.constant 0 : index
    %113 = vector.load %arg11[%c0_79, %c0_80] : memref<1x384xf32, #tpu.memory_space<vmem>>, vector<1x384xf32>
    %114 = vector.broadcast %113 : vector<1x384xf32> to vector<16x384xf32>
    %115 = arith.addf %112, %114 : vector<16x384xf32>
    %116 = vector.extract_strided_slice %115 {offsets = [0, 0], sizes = [16, 128], strides = [1, 1]} : vector<16x384xf32> to vector<16x128xf32>
    %117 = vector.extract_strided_slice %115 {offsets = [0, 128], sizes = [16, 128], strides = [1, 1]} : vector<16x384xf32> to vector<16x128xf32>
    %118 = vector.extract_strided_slice %115 {offsets = [0, 256], sizes = [16, 128], strides = [1, 1]} : vector<16x384xf32> to vector<16x128xf32>
    %119 = vector.extract_strided_slice %116 {offsets = [0, 0], sizes = [16, 16], strides = [1, 1]} : vector<16x128xf32> to vector<16x16xf32>
    %120 = vector.extract_strided_slice %117 {offsets = [0, 0], sizes = [16, 16], strides = [1, 1]} : vector<16x128xf32> to vector<16x16xf32>
    %121 = vector.extract_strided_slice %118 {offsets = [0, 0], sizes = [16, 16], strides = [1, 1]} : vector<16x128xf32> to vector<16x16xf32>
    %cst_81 = arith.constant dense<0.000000e+00> : vector<16x16xf32>
    %122 = tpu.matmul %119, %120, %cst_81 {dimension_numbers = #tpu.dot_dimension_numbers<[1], [1], [0], [0], [0, 0, 1, 0], [], []>} : vector<16x16xf32>, vector<16x16xf32>, vector<16x16xf32> -> vector<16x16xf32>
    %cst_82 = arith.constant 2.500000e-01 : f32
    %123 = vector.broadcast %cst_82 : f32 to vector<16x16xf32>
    %124 = arith.mulf %122, %123 : vector<16x16xf32>
    %cst_83 = arith.constant dense<0xFF800000> : vector<16xf32>
    %125 = vector.multi_reduction <maximumf>, %124, %cst_83 [1] : vector<16x16xf32> to vector<16xf32>
    %126 = vector.shape_cast %125 : vector<16xf32> to vector<16x1xf32>
    %127 = vector.broadcast %126 : vector<16x1xf32> to vector<16x16xf32>
    %128 = arith.subf %124, %127 : vector<16x16xf32>
    %129 = math.exp %128 : vector<16x16xf32>
    %cst_84 = arith.constant dense<0.000000e+00> : vector<16xf32>
    %130 = vector.multi_reduction <add>, %129, %cst_84 [1] : vector<16x16xf32> to vector<16xf32>
    %131 = vector.shape_cast %130 : vector<16xf32> to vector<16x1xf32>
    %132 = tpu.reciprocal %131 {approx = true} : vector<16x1xf32> -> vector<16x1xf32>
    %133 = vector.broadcast %132 : vector<16x1xf32> to vector<16x16xf32>
    %134 = arith.mulf %129, %133 : vector<16x16xf32>
    %cst_85 = arith.constant dense<0.000000e+00> : vector<16x16xf32>
    %135 = tpu.matmul %134, %121, %cst_85 {dimension_numbers = #tpu.dot_dimension_numbers<[1], [0], [0], [1], [0, 0, 1, 1], [], []>} : vector<16x16xf32>, vector<16x16xf32>, vector<16x16xf32> -> vector<16x16xf32>
    %c0_86 = arith.constant 0 : index
    %c0_87 = arith.constant 0 : index
    %136 = vector.load %arg25[%c0_86, %c0_87] : memref<16x128xf32, #tpu.memory_space<vmem>>, vector<16x16xf32>
    tpu.vector_store %arg25[%c0_86, %c0_87], %135 {strides = array<i32>} : memref<16x128xf32, #tpu.memory_space<vmem>>, vector<16x16xf32>,
    %137 = vector.extract_strided_slice %116 {offsets = [0, 16], sizes = [16, 16], strides = [1, 1]} : vector<16x128xf32> to vector<16x16xf32>
    %138 = vector.extract_strided_slice %117 {offsets = [0, 16], sizes = [16, 16], strides = [1, 1]} : vector<16x128xf32> to vector<16x16xf32>
    %139 = vector.extract_strided_slice %118 {offsets = [0, 16], sizes = [16, 16], strides = [1, 1]} : vector<16x128xf32> to vector<16x16xf32>
    %cst_88 = arith.constant dense<0.000000e+00> : vector<16x16xf32>
    %140 = tpu.matmul %137, %138, %cst_88 {dimension_numbers = #tpu.dot_dimension_numbers<[1], [1], [0], [0], [0, 0, 1, 0], [], []>} : vector<16x16xf32>, vector<16x16xf32>, vector<16x16xf32> -> vector<16x16xf32>
    %cst_89 = arith.constant 2.500000e-01 : f32
    %141 = vector.broadcast %cst_89 : f32 to vector<16x16xf32>
    %142 = arith.mulf %140, %141 : vector<16x16xf32>
    %cst_90 = arith.constant dense<0xFF800000> : vector<16xf32>
    %143 = vector.multi_reduction <maximumf>, %142, %cst_90 [1] : vector<16x16xf32> to vector<16xf32>
    %144 = vector.shape_cast %143 : vector<16xf32> to vector<16x1xf32>
    %145 = vector.broadcast %144 : vector<16x1xf32> to vector<16x16xf32>
    %146 = arith.subf %142, %145 : vector<16x16xf32>
    %147 = math.exp %146 : vector<16x16xf32>
    %cst_91 = arith.constant dense<0.000000e+00> : vector<16xf32>
    %148 = vector.multi_reduction <add>, %147, %cst_91 [1] : vector<16x16xf32> to vector<16xf32>
    %149 = vector.shape_cast %148 : vector<16xf32> to vector<16x1xf32>
    %150 = tpu.reciprocal %149 {approx = true} : vector<16x1xf32> -> vector<16x1xf32>
    %151 = vector.broadcast %150 : vector<16x1xf32> to vector<16x16xf32>
    %152 = arith.mulf %147, %151 : vector<16x16xf32>
    %cst_92 = arith.constant dense<0.000000e+00> : vector<16x16xf32>
    %153 = tpu.matmul %152, %139, %cst_92 {dimension_numbers = #tpu.dot_dimension_numbers<[1], [0], [0], [1], [0, 0, 1, 1], [], []>} : vector<16x16xf32>, vector<16x16xf32>, vector<16x16xf32> -> vector<16x16xf32>
    %c0_93 = arith.constant 0 : index
    %c16 = arith.constant 16 : index
    %154 = vector.load %arg25[%c0_93, %c16] : memref<16x128xf32, #tpu.memory_space<vmem>>, vector<16x16xf32>
    tpu.vector_store %arg25[%c0_93, %c16], %153 {strides = array<i32>} : memref<16x128xf32, #tpu.memory_space<vmem>>, vector<16x16xf32>,
    %155 = vector.extract_strided_slice %116 {offsets = [0, 32], sizes = [16, 16], strides = [1, 1]} : vector<16x128xf32> to vector<16x16xf32>
    %156 = vector.extract_strided_slice %117 {offsets = [0, 32], sizes = [16, 16], strides = [1, 1]} : vector<16x128xf32> to vector<16x16xf32>
    %157 = vector.extract_strided_slice %118 {offsets = [0, 32], sizes = [16, 16], strides = [1, 1]} : vector<16x128xf32> to vector<16x16xf32>
    %cst_94 = arith.constant dense<0.000000e+00> : vector<16x16xf32>
    %158 = tpu.matmul %155, %156, %cst_94 {dimension_numbers = #tpu.dot_dimension_numbers<[1], [1], [0], [0], [0, 0, 1, 0], [], []>} : vector<16x16xf32>, vector<16x16xf32>, vector<16x16xf32> -> vector<16x16xf32>
    %cst_95 = arith.constant 2.500000e-01 : f32
    %159 = vector.broadcast %cst_95 : f32 to vector<16x16xf32>
    %160 = arith.mulf %158, %159 : vector<16x16xf32>
    %cst_96 = arith.constant dense<0xFF800000> : vector<16xf32>
    %161 = vector.multi_reduction <maximumf>, %160, %cst_96 [1] : vector<16x16xf32> to vector<16xf32>
    %162 = vector.shape_cast %161 : vector<16xf32> to vector<16x1xf32>
    %163 = vector.broadcast %162 : vector<16x1xf32> to vector<16x16xf32>
    %164 = arith.subf %160, %163 : vector<16x16xf32>
    %165 = math.exp %164 : vector<16x16xf32>
    %cst_97 = arith.constant dense<0.000000e+00> : vector<16xf32>
    %166 = vector.multi_reduction <add>, %165, %cst_97 [1] : vector<16x16xf32> to vector<16xf32>
    %167 = vector.shape_cast %166 : vector<16xf32> to vector<16x1xf32>
    %168 = tpu.reciprocal %167 {approx = true} : vector<16x1xf32> -> vector<16x1xf32>
    %169 = vector.broadcast %168 : vector<16x1xf32> to vector<16x16xf32>
    %170 = arith.mulf %165, %169 : vector<16x16xf32>
    %cst_98 = arith.constant dense<0.000000e+00> : vector<16x16xf32>
    %171 = tpu.matmul %170, %157, %cst_98 {dimension_numbers = #tpu.dot_dimension_numbers<[1], [0], [0], [1], [0, 0, 1, 1], [], []>} : vector<16x16xf32>, vector<16x16xf32>, vector<16x16xf32> -> vector<16x16xf32>
    %c0_99 = arith.constant 0 : index
    %c32 = arith.constant 32 : index
    %172 = vector.load %arg25[%c0_99, %c32] : memref<16x128xf32, #tpu.memory_space<vmem>>, vector<16x16xf32>
    tpu.vector_store %arg25[%c0_99, %c32], %171 {strides = array<i32>} : memref<16x128xf32, #tpu.memory_space<vmem>>, vector<16x16xf32>,
    %173 = vector.extract_strided_slice %116 {offsets = [0, 48], sizes = [16, 16], strides = [1, 1]} : vector<16x128xf32> to vector<16x16xf32>
    %174 = vector.extract_strided_slice %117 {offsets = [0, 48], sizes = [16, 16], strides = [1, 1]} : vector<16x128xf32> to vector<16x16xf32>
    %175 = vector.extract_strided_slice %118 {offsets = [0, 48], sizes = [16, 16], strides = [1, 1]} : vector<16x128xf32> to vector<16x16xf32>
    %cst_100 = arith.constant dense<0.000000e+00> : vector<16x16xf32>
    %176 = tpu.matmul %173, %174, %cst_100 {dimension_numbers = #tpu.dot_dimension_numbers<[1], [1], [0], [0], [0, 0, 1, 0], [], []>} : vector<16x16xf32>, vector<16x16xf32>, vector<16x16xf32> -> vector<16x16xf32>
    %cst_101 = arith.constant 2.500000e-01 : f32
    %177 = vector.broadcast %cst_101 : f32 to vector<16x16xf32>
    %178 = arith.mulf %176, %177 : vector<16x16xf32>
    %cst_102 = arith.constant dense<0xFF800000> : vector<16xf32>
    %179 = vector.multi_reduction <maximumf>, %178, %cst_102 [1] : vector<16x16xf32> to vector<16xf32>
    %180 = vector.shape_cast %179 : vector<16xf32> to vector<16x1xf32>
    %181 = vector.broadcast %180 : vector<16x1xf32> to vector<16x16xf32>
    %182 = arith.subf %178, %181 : vector<16x16xf32>
    %183 = math.exp %182 : vector<16x16xf32>
    %cst_103 = arith.constant dense<0.000000e+00> : vector<16xf32>
    %184 = vector.multi_reduction <add>, %183, %cst_103 [1] : vector<16x16xf32> to vector<16xf32>
    %185 = vector.shape_cast %184 : vector<16xf32> to vector<16x1xf32>
    %186 = tpu.reciprocal %185 {approx = true} : vector<16x1xf32> -> vector<16x1xf32>
    %187 = vector.broadcast %186 : vector<16x1xf32> to vector<16x16xf32>
    %188 = arith.mulf %183, %187 : vector<16x16xf32>
    %cst_104 = arith.constant dense<0.000000e+00> : vector<16x16xf32>
    %189 = tpu.matmul %188, %175, %cst_104 {dimension_numbers = #tpu.dot_dimension_numbers<[1], [0], [0], [1], [0, 0, 1, 1], [], []>} : vector<16x16xf32>, vector<16x16xf32>, vector<16x16xf32> -> vector<16x16xf32>
    %c0_105 = arith.constant 0 : index
    %c48 = arith.constant 48 : index
    %190 = vector.load %arg25[%c0_105, %c48] : memref<16x128xf32, #tpu.memory_space<vmem>>, vector<16x16xf32>
    tpu.vector_store %arg25[%c0_105, %c48], %189 {strides = array<i32>} : memref<16x128xf32, #tpu.memory_space<vmem>>, vector<16x16xf32>,
    %191 = vector.extract_strided_slice %116 {offsets = [0, 64], sizes = [16, 16], strides = [1, 1]} : vector<16x128xf32> to vector<16x16xf32>
    %192 = vector.extract_strided_slice %117 {offsets = [0, 64], sizes = [16, 16], strides = [1, 1]} : vector<16x128xf32> to vector<16x16xf32>
    %193 = vector.extract_strided_slice %118 {offsets = [0, 64], sizes = [16, 16], strides = [1, 1]} : vector<16x128xf32> to vector<16x16xf32>
    %cst_106 = arith.constant dense<0.000000e+00> : vector<16x16xf32>
    %194 = tpu.matmul %191, %192, %cst_106 {dimension_numbers = #tpu.dot_dimension_numbers<[1], [1], [0], [0], [0, 0, 1, 0], [], []>} : vector<16x16xf32>, vector<16x16xf32>, vector<16x16xf32> -> vector<16x16xf32>
    %cst_107 = arith.constant 2.500000e-01 : f32
    %195 = vector.broadcast %cst_107 : f32 to vector<16x16xf32>
    %196 = arith.mulf %194, %195 : vector<16x16xf32>
    %cst_108 = arith.constant dense<0xFF800000> : vector<16xf32>
    %197 = vector.multi_reduction <maximumf>, %196, %cst_108 [1] : vector<16x16xf32> to vector<16xf32>
    %198 = vector.shape_cast %197 : vector<16xf32> to vector<16x1xf32>
    %199 = vector.broadcast %198 : vector<16x1xf32> to vector<16x16xf32>
    %200 = arith.subf %196, %199 : vector<16x16xf32>
    %201 = math.exp %200 : vector<16x16xf32>
    %cst_109 = arith.constant dense<0.000000e+00> : vector<16xf32>
    %202 = vector.multi_reduction <add>, %201, %cst_109 [1] : vector<16x16xf32> to vector<16xf32>
    %203 = vector.shape_cast %202 : vector<16xf32> to vector<16x1xf32>
    %204 = tpu.reciprocal %203 {approx = true} : vector<16x1xf32> -> vector<16x1xf32>
    %205 = vector.broadcast %204 : vector<16x1xf32> to vector<16x16xf32>
    %206 = arith.mulf %201, %205 : vector<16x16xf32>
    %cst_110 = arith.constant dense<0.000000e+00> : vector<16x16xf32>
    %207 = tpu.matmul %206, %193, %cst_110 {dimension_numbers = #tpu.dot_dimension_numbers<[1], [0], [0], [1], [0, 0, 1, 1], [], []>} : vector<16x16xf32>, vector<16x16xf32>, vector<16x16xf32> -> vector<16x16xf32>
    %c0_111 = arith.constant 0 : index
    %c64 = arith.constant 64 : index
    %208 = vector.load %arg25[%c0_111, %c64] : memref<16x128xf32, #tpu.memory_space<vmem>>, vector<16x16xf32>
    tpu.vector_store %arg25[%c0_111, %c64], %207 {strides = array<i32>} : memref<16x128xf32, #tpu.memory_space<vmem>>, vector<16x16xf32>,
    %209 = vector.extract_strided_slice %116 {offsets = [0, 80], sizes = [16, 16], strides = [1, 1]} : vector<16x128xf32> to vector<16x16xf32>
    %210 = vector.extract_strided_slice %117 {offsets = [0, 80], sizes = [16, 16], strides = [1, 1]} : vector<16x128xf32> to vector<16x16xf32>
    %211 = vector.extract_strided_slice %118 {offsets = [0, 80], sizes = [16, 16], strides = [1, 1]} : vector<16x128xf32> to vector<16x16xf32>
    %cst_112 = arith.constant dense<0.000000e+00> : vector<16x16xf32>
    %212 = tpu.matmul %209, %210, %cst_112 {dimension_numbers = #tpu.dot_dimension_numbers<[1], [1], [0], [0], [0, 0, 1, 0], [], []>} : vector<16x16xf32>, vector<16x16xf32>, vector<16x16xf32> -> vector<16x16xf32>
    %cst_113 = arith.constant 2.500000e-01 : f32
    %213 = vector.broadcast %cst_113 : f32 to vector<16x16xf32>
    %214 = arith.mulf %212, %213 : vector<16x16xf32>
    %cst_114 = arith.constant dense<0xFF800000> : vector<16xf32>
    %215 = vector.multi_reduction <maximumf>, %214, %cst_114 [1] : vector<16x16xf32> to vector<16xf32>
    %216 = vector.shape_cast %215 : vector<16xf32> to vector<16x1xf32>
    %217 = vector.broadcast %216 : vector<16x1xf32> to vector<16x16xf32>
    %218 = arith.subf %214, %217 : vector<16x16xf32>
    %219 = math.exp %218 : vector<16x16xf32>
    %cst_115 = arith.constant dense<0.000000e+00> : vector<16xf32>
    %220 = vector.multi_reduction <add>, %219, %cst_115 [1] : vector<16x16xf32> to vector<16xf32>
    %221 = vector.shape_cast %220 : vector<16xf32> to vector<16x1xf32>
    %222 = tpu.reciprocal %221 {approx = true} : vector<16x1xf32> -> vector<16x1xf32>
    %223 = vector.broadcast %222 : vector<16x1xf32> to vector<16x16xf32>
    %224 = arith.mulf %219, %223 : vector<16x16xf32>
    %cst_116 = arith.constant dense<0.000000e+00> : vector<16x16xf32>
    %225 = tpu.matmul %224, %211, %cst_116 {dimension_numbers = #tpu.dot_dimension_numbers<[1], [0], [0], [1], [0, 0, 1, 1], [], []>} : vector<16x16xf32>, vector<16x16xf32>, vector<16x16xf32> -> vector<16x16xf32>
    %c0_117 = arith.constant 0 : index
    %c80 = arith.constant 80 : index
    %226 = vector.load %arg25[%c0_117, %c80] : memref<16x128xf32, #tpu.memory_space<vmem>>, vector<16x16xf32>
    tpu.vector_store %arg25[%c0_117, %c80], %225 {strides = array<i32>} : memref<16x128xf32, #tpu.memory_space<vmem>>, vector<16x16xf32>,
    %227 = vector.extract_strided_slice %116 {offsets = [0, 96], sizes = [16, 16], strides = [1, 1]} : vector<16x128xf32> to vector<16x16xf32>
    %228 = vector.extract_strided_slice %117 {offsets = [0, 96], sizes = [16, 16], strides = [1, 1]} : vector<16x128xf32> to vector<16x16xf32>
    %229 = vector.extract_strided_slice %118 {offsets = [0, 96], sizes = [16, 16], strides = [1, 1]} : vector<16x128xf32> to vector<16x16xf32>
    %cst_118 = arith.constant dense<0.000000e+00> : vector<16x16xf32>
    %230 = tpu.matmul %227, %228, %cst_118 {dimension_numbers = #tpu.dot_dimension_numbers<[1], [1], [0], [0], [0, 0, 1, 0], [], []>} : vector<16x16xf32>, vector<16x16xf32>, vector<16x16xf32> -> vector<16x16xf32>
    %cst_119 = arith.constant 2.500000e-01 : f32
    %231 = vector.broadcast %cst_119 : f32 to vector<16x16xf32>
    %232 = arith.mulf %230, %231 : vector<16x16xf32>
    %cst_120 = arith.constant dense<0xFF800000> : vector<16xf32>
    %233 = vector.multi_reduction <maximumf>, %232, %cst_120 [1] : vector<16x16xf32> to vector<16xf32>
    %234 = vector.shape_cast %233 : vector<16xf32> to vector<16x1xf32>
    %235 = vector.broadcast %234 : vector<16x1xf32> to vector<16x16xf32>
    %236 = arith.subf %232, %235 : vector<16x16xf32>
    %237 = math.exp %236 : vector<16x16xf32>
    %cst_121 = arith.constant dense<0.000000e+00> : vector<16xf32>
    %238 = vector.multi_reduction <add>, %237, %cst_121 [1] : vector<16x16xf32> to vector<16xf32>
    %239 = vector.shape_cast %238 : vector<16xf32> to vector<16x1xf32>
    %240 = tpu.reciprocal %239 {approx = true} : vector<16x1xf32> -> vector<16x1xf32>
    %241 = vector.broadcast %240 : vector<16x1xf32> to vector<16x16xf32>
    %242 = arith.mulf %237, %241 : vector<16x16xf32>
    %cst_122 = arith.constant dense<0.000000e+00> : vector<16x16xf32>
    %243 = tpu.matmul %242, %229, %cst_122 {dimension_numbers = #tpu.dot_dimension_numbers<[1], [0], [0], [1], [0, 0, 1, 1], [], []>} : vector<16x16xf32>, vector<16x16xf32>, vector<16x16xf32> -> vector<16x16xf32>
    %c0_123 = arith.constant 0 : index
    %c96 = arith.constant 96 : index
    %244 = vector.load %arg25[%c0_123, %c96] : memref<16x128xf32, #tpu.memory_space<vmem>>, vector<16x16xf32>
    tpu.vector_store %arg25[%c0_123, %c96], %243 {strides = array<i32>} : memref<16x128xf32, #tpu.memory_space<vmem>>, vector<16x16xf32>,
    %245 = vector.extract_strided_slice %116 {offsets = [0, 112], sizes = [16, 16], strides = [1, 1]} : vector<16x128xf32> to vector<16x16xf32>
    %246 = vector.extract_strided_slice %117 {offsets = [0, 112], sizes = [16, 16], strides = [1, 1]} : vector<16x128xf32> to vector<16x16xf32>
    %247 = vector.extract_strided_slice %118 {offsets = [0, 112], sizes = [16, 16], strides = [1, 1]} : vector<16x128xf32> to vector<16x16xf32>
    %cst_124 = arith.constant dense<0.000000e+00> : vector<16x16xf32>
    %248 = tpu.matmul %245, %246, %cst_124 {dimension_numbers = #tpu.dot_dimension_numbers<[1], [1], [0], [0], [0, 0, 1, 0], [], []>} : vector<16x16xf32>, vector<16x16xf32>, vector<16x16xf32> -> vector<16x16xf32>
    %cst_125 = arith.constant 2.500000e-01 : f32
    %249 = vector.broadcast %cst_125 : f32 to vector<16x16xf32>
    %250 = arith.mulf %248, %249 : vector<16x16xf32>
    %cst_126 = arith.constant dense<0xFF800000> : vector<16xf32>
    %251 = vector.multi_reduction <maximumf>, %250, %cst_126 [1] : vector<16x16xf32> to vector<16xf32>
    %252 = vector.shape_cast %251 : vector<16xf32> to vector<16x1xf32>
    %253 = vector.broadcast %252 : vector<16x1xf32> to vector<16x16xf32>
    %254 = arith.subf %250, %253 : vector<16x16xf32>
    %255 = math.exp %254 : vector<16x16xf32>
    %cst_127 = arith.constant dense<0.000000e+00> : vector<16xf32>
    %256 = vector.multi_reduction <add>, %255, %cst_127 [1] : vector<16x16xf32> to vector<16xf32>
    %257 = vector.shape_cast %256 : vector<16xf32> to vector<16x1xf32>
    %258 = tpu.reciprocal %257 {approx = true} : vector<16x1xf32> -> vector<16x1xf32>
    %259 = vector.broadcast %258 : vector<16x1xf32> to vector<16x16xf32>
    %260 = arith.mulf %255, %259 : vector<16x16xf32>
    %cst_128 = arith.constant dense<0.000000e+00> : vector<16x16xf32>
    %261 = tpu.matmul %260, %247, %cst_128 {dimension_numbers = #tpu.dot_dimension_numbers<[1], [0], [0], [1], [0, 0, 1, 1], [], []>} : vector<16x16xf32>, vector<16x16xf32>, vector<16x16xf32> -> vector<16x16xf32>
    %c0_129 = arith.constant 0 : index
    %c112 = arith.constant 112 : index
    %262 = vector.load %arg25[%c0_129, %c112] : memref<16x128xf32, #tpu.memory_space<vmem>>, vector<16x16xf32>
    tpu.vector_store %arg25[%c0_129, %c112], %261 {strides = array<i32>} : memref<16x128xf32, #tpu.memory_space<vmem>>, vector<16x16xf32>,
    %c0_130 = arith.constant 0 : index
    %c0_131 = arith.constant 0 : index
    %263 = vector.load %arg25[%c0_130, %c0_131] : memref<16x128xf32, #tpu.memory_space<vmem>>, vector<16x128xf32>
    %264 = arith.truncf %263 : vector<16x128xf32> to vector<16x128xbf16>
    %c0_132 = arith.constant 0 : index
    %c0_133 = arith.constant 0 : index
    %265 = vector.load %arg12[%c0_132, %c0_133] : memref<128x128xbf16, #tpu.memory_space<vmem>>, vector<128x128xbf16>
    %cst_134 = arith.constant dense<0.000000e+00> : vector<16x128xf32>
    %266 = tpu.matmul %264, %265, %cst_134 {dimension_numbers = #tpu.dot_dimension_numbers<[1], [0], [0], [1], [0, 0, 1, 1], [], []>} : vector<16x128xbf16>, vector<128x128xbf16>, vector<16x128xf32> -> vector<16x128xf32>
    %c0_135 = arith.constant 0 : index
    %c0_136 = arith.constant 0 : index
    %267 = vector.load %arg13[%c0_135, %c0_136] : memref<1x128xf32, #tpu.memory_space<vmem>>, vector<1x128xf32>
    %268 = vector.broadcast %267 : vector<1x128xf32> to vector<16x128xf32>
    %269 = arith.addf %266, %268 : vector<16x128xf32>
    %270 = arith.addf %109, %269 : vector<16x128xf32>
    %cst_137 = arith.constant dense<0.000000e+00> : vector<16xf32>
    %271 = vector.multi_reduction <add>, %270, %cst_137 [1] : vector<16x128xf32> to vector<16xf32>
    %272 = vector.shape_cast %271 : vector<16xf32> to vector<16x1xf32>
    %cst_138 = arith.constant 1.280000e+02 : f32
    %273 = vector.broadcast %cst_138 : f32 to vector<16x1xf32>
    %274 = arith.divf %272, %273 : vector<16x1xf32>
    %275 = vector.broadcast %274 : vector<16x1xf32> to vector<16x128xf32>
    %276 = arith.subf %270, %275 : vector<16x128xf32>
    %277 = arith.mulf %276, %276 : vector<16x128xf32>
    %cst_139 = arith.constant dense<0.000000e+00> : vector<16xf32>
    %278 = vector.multi_reduction <add>, %277, %cst_139 [1] : vector<16x128xf32> to vector<16xf32>
    %279 = vector.shape_cast %278 : vector<16xf32> to vector<16x1xf32>
    %cst_140 = arith.constant 1.280000e+02 : f32
    %280 = vector.broadcast %cst_140 : f32 to vector<16x1xf32>
    %281 = arith.divf %279, %280 : vector<16x1xf32>
    %282 = vector.broadcast %274 : vector<16x1xf32> to vector<16x128xf32>
    %283 = arith.subf %270, %282 : vector<16x128xf32>
    %cst_141 = arith.constant 9.99999974E-6 : f32
    %284 = vector.broadcast %cst_141 : f32 to vector<16x1xf32>
    %285 = arith.addf %281, %284 : vector<16x1xf32>
    %286 = math.rsqrt %285 : vector<16x1xf32>
    %287 = vector.broadcast %286 : vector<16x1xf32> to vector<16x128xf32>
    %288 = arith.mulf %283, %287 : vector<16x128xf32>
    %c0_142 = arith.constant 0 : index
    %c0_143 = arith.constant 0 : index
    %289 = vector.load %arg14[%c0_142, %c0_143] : memref<1x128xf32, #tpu.memory_space<vmem>>, vector<1x128xf32>
    %290 = vector.broadcast %289 : vector<1x128xf32> to vector<16x128xf32>
    %291 = arith.mulf %288, %290 : vector<16x128xf32>
    %c0_144 = arith.constant 0 : index
    %c0_145 = arith.constant 0 : index
    %292 = vector.load %arg15[%c0_144, %c0_145] : memref<1x128xf32, #tpu.memory_space<vmem>>, vector<1x128xf32>
    %293 = vector.broadcast %292 : vector<1x128xf32> to vector<16x128xf32>
    %294 = arith.addf %291, %293 : vector<16x128xf32>
    %295 = arith.truncf %294 : vector<16x128xf32> to vector<16x128xbf16>
    %cst_146 = arith.constant 0.000000e+00 : f32
    %296 = vector.broadcast %cst_146 : f32 to vector<16x128xf32>
    %c0_147 = arith.constant 0 : index
    %c0_148 = arith.constant 0 : index
    %297 = vector.load %arg16[%c0_147, %c0_148] : memref<128x2048xbf16, #tpu.memory_space<vmem>>, vector<128x512xbf16>
    %cst_149 = arith.constant dense<0.000000e+00> : vector<16x512xf32>
    %298 = tpu.matmul %295, %297, %cst_149 {dimension_numbers = #tpu.dot_dimension_numbers<[1], [0], [0], [1], [0, 0, 1, 1], [], []>} : vector<16x128xbf16>, vector<128x512xbf16>, vector<16x512xf32> -> vector<16x512xf32>
    %c0_150 = arith.constant 0 : index
    %c0_151 = arith.constant 0 : index
    %299 = vector.load %arg17[%c0_150, %c0_151] : memref<1x2048xf32, #tpu.memory_space<vmem>>, vector<1x512xf32>
    %300 = vector.broadcast %299 : vector<1x512xf32> to vector<16x512xf32>
    %301 = arith.addf %298, %300 : vector<16x512xf32>
    %cst_152 = arith.constant 0.000000e+00 : f32
    %302 = vector.broadcast %cst_152 : f32 to vector<16x512xf32>
    %303 = arith.maximumf %301, %302 : vector<16x512xf32>
    %304 = arith.truncf %303 : vector<16x512xf32> to vector<16x512xbf16>
    %c0_153 = arith.constant 0 : index
    %c0_154 = arith.constant 0 : index
    %305 = vector.load %arg18[%c0_153, %c0_154] : memref<2048x128xbf16, #tpu.memory_space<vmem>>, vector<512x128xbf16>
    %cst_155 = arith.constant dense<0.000000e+00> : vector<16x128xf32>
    %306 = tpu.matmul %304, %305, %cst_155 {dimension_numbers = #tpu.dot_dimension_numbers<[1], [0], [0], [1], [0, 0, 1, 1], [], []>} : vector<16x512xbf16>, vector<512x128xbf16>, vector<16x128xf32> -> vector<16x128xf32>
    %307 = arith.addf %296, %306 : vector<16x128xf32>
    %c0_156 = arith.constant 0 : index
    %c512 = arith.constant 512 : index
    %308 = vector.load %arg16[%c0_156, %c512] : memref<128x2048xbf16, #tpu.memory_space<vmem>>, vector<128x512xbf16>
    %cst_157 = arith.constant dense<0.000000e+00> : vector<16x512xf32>
    %309 = tpu.matmul %295, %308, %cst_157 {dimension_numbers = #tpu.dot_dimension_numbers<[1], [0], [0], [1], [0, 0, 1, 1], [], []>} : vector<16x128xbf16>, vector<128x512xbf16>, vector<16x512xf32> -> vector<16x512xf32>
    %c0_158 = arith.constant 0 : index
    %c512_159 = arith.constant 512 : index
    %310 = vector.load %arg17[%c0_158, %c512_159] : memref<1x2048xf32, #tpu.memory_space<vmem>>, vector<1x512xf32>
    %311 = vector.broadcast %310 : vector<1x512xf32> to vector<16x512xf32>
    %312 = arith.addf %309, %311 : vector<16x512xf32>
    %cst_160 = arith.constant 0.000000e+00 : f32
    %313 = vector.broadcast %cst_160 : f32 to vector<16x512xf32>
    %314 = arith.maximumf %312, %313 : vector<16x512xf32>
    %315 = arith.truncf %314 : vector<16x512xf32> to vector<16x512xbf16>
    %c512_161 = arith.constant 512 : index
    %c0_162 = arith.constant 0 : index
    %316 = vector.load %arg18[%c512_161, %c0_162] : memref<2048x128xbf16, #tpu.memory_space<vmem>>, vector<512x128xbf16>
    %cst_163 = arith.constant dense<0.000000e+00> : vector<16x128xf32>
    %317 = tpu.matmul %315, %316, %cst_163 {dimension_numbers = #tpu.dot_dimension_numbers<[1], [0], [0], [1], [0, 0, 1, 1], [], []>} : vector<16x512xbf16>, vector<512x128xbf16>, vector<16x128xf32> -> vector<16x128xf32>
    %318 = arith.addf %307, %317 : vector<16x128xf32>
    %c0_164 = arith.constant 0 : index
    %c1024 = arith.constant 1024 : index
    %319 = vector.load %arg16[%c0_164, %c1024] : memref<128x2048xbf16, #tpu.memory_space<vmem>>, vector<128x512xbf16>
    %cst_165 = arith.constant dense<0.000000e+00> : vector<16x512xf32>
    %320 = tpu.matmul %295, %319, %cst_165 {dimension_numbers = #tpu.dot_dimension_numbers<[1], [0], [0], [1], [0, 0, 1, 1], [], []>} : vector<16x128xbf16>, vector<128x512xbf16>, vector<16x512xf32> -> vector<16x512xf32>
    %c0_166 = arith.constant 0 : index
    %c1024_167 = arith.constant 1024 : index
    %321 = vector.load %arg17[%c0_166, %c1024_167] : memref<1x2048xf32, #tpu.memory_space<vmem>>, vector<1x512xf32>
    %322 = vector.broadcast %321 : vector<1x512xf32> to vector<16x512xf32>
    %323 = arith.addf %320, %322 : vector<16x512xf32>
    %cst_168 = arith.constant 0.000000e+00 : f32
    %324 = vector.broadcast %cst_168 : f32 to vector<16x512xf32>
    %325 = arith.maximumf %323, %324 : vector<16x512xf32>
    %326 = arith.truncf %325 : vector<16x512xf32> to vector<16x512xbf16>
    %c1024_169 = arith.constant 1024 : index
    %c0_170 = arith.constant 0 : index
    %327 = vector.load %arg18[%c1024_169, %c0_170] : memref<2048x128xbf16, #tpu.memory_space<vmem>>, vector<512x128xbf16>
    %cst_171 = arith.constant dense<0.000000e+00> : vector<16x128xf32>
    %328 = tpu.matmul %326, %327, %cst_171 {dimension_numbers = #tpu.dot_dimension_numbers<[1], [0], [0], [1], [0, 0, 1, 1], [], []>} : vector<16x512xbf16>, vector<512x128xbf16>, vector<16x128xf32> -> vector<16x128xf32>
    %329 = arith.addf %318, %328 : vector<16x128xf32>
    %c0_172 = arith.constant 0 : index
    %c1536 = arith.constant 1536 : index
    %330 = vector.load %arg16[%c0_172, %c1536] : memref<128x2048xbf16, #tpu.memory_space<vmem>>, vector<128x512xbf16>
    %cst_173 = arith.constant dense<0.000000e+00> : vector<16x512xf32>
    %331 = tpu.matmul %295, %330, %cst_173 {dimension_numbers = #tpu.dot_dimension_numbers<[1], [0], [0], [1], [0, 0, 1, 1], [], []>} : vector<16x128xbf16>, vector<128x512xbf16>, vector<16x512xf32> -> vector<16x512xf32>
    %c0_174 = arith.constant 0 : index
    %c1536_175 = arith.constant 1536 : index
    %332 = vector.load %arg17[%c0_174, %c1536_175] : memref<1x2048xf32, #tpu.memory_space<vmem>>, vector<1x512xf32>
    %333 = vector.broadcast %332 : vector<1x512xf32> to vector<16x512xf32>
    %334 = arith.addf %331, %333 : vector<16x512xf32>
    %cst_176 = arith.constant 0.000000e+00 : f32
    %335 = vector.broadcast %cst_176 : f32 to vector<16x512xf32>
    %336 = arith.maximumf %334, %335 : vector<16x512xf32>
    %337 = arith.truncf %336 : vector<16x512xf32> to vector<16x512xbf16>
    %c1536_177 = arith.constant 1536 : index
    %c0_178 = arith.constant 0 : index
    %338 = vector.load %arg18[%c1536_177, %c0_178] : memref<2048x128xbf16, #tpu.memory_space<vmem>>, vector<512x128xbf16>
    %cst_179 = arith.constant dense<0.000000e+00> : vector<16x128xf32>
    %339 = tpu.matmul %337, %338, %cst_179 {dimension_numbers = #tpu.dot_dimension_numbers<[1], [0], [0], [1], [0, 0, 1, 1], [], []>} : vector<16x512xbf16>, vector<512x128xbf16>, vector<16x128xf32> -> vector<16x128xf32>
    %340 = arith.addf %329, %339 : vector<16x128xf32>
    %c0_180 = arith.constant 0 : index
    %c0_181 = arith.constant 0 : index
    %341 = vector.load %arg19[%c0_180, %c0_181] : memref<1x128xf32, #tpu.memory_space<vmem>>, vector<1x128xf32>
    %342 = vector.broadcast %341 : vector<1x128xf32> to vector<16x128xf32>
    %343 = arith.addf %340, %342 : vector<16x128xf32>
    %344 = arith.addf %294, %343 : vector<16x128xf32>
    %cst_182 = arith.constant dense<0.000000e+00> : vector<16xf32>
    %345 = vector.multi_reduction <add>, %344, %cst_182 [1] : vector<16x128xf32> to vector<16xf32>
    %346 = vector.shape_cast %345 : vector<16xf32> to vector<16x1xf32>
    %cst_183 = arith.constant 1.280000e+02 : f32
    %347 = vector.broadcast %cst_183 : f32 to vector<16x1xf32>
    %348 = arith.divf %346, %347 : vector<16x1xf32>
    %349 = vector.broadcast %348 : vector<16x1xf32> to vector<16x128xf32>
    %350 = arith.subf %344, %349 : vector<16x128xf32>
    %351 = arith.mulf %350, %350 : vector<16x128xf32>
    %cst_184 = arith.constant dense<0.000000e+00> : vector<16xf32>
    %352 = vector.multi_reduction <add>, %351, %cst_184 [1] : vector<16x128xf32> to vector<16xf32>
    %353 = vector.shape_cast %352 : vector<16xf32> to vector<16x1xf32>
    %cst_185 = arith.constant 1.280000e+02 : f32
    %354 = vector.broadcast %cst_185 : f32 to vector<16x1xf32>
    %355 = arith.divf %353, %354 : vector<16x1xf32>
    %356 = vector.broadcast %348 : vector<16x1xf32> to vector<16x128xf32>
    %357 = arith.subf %344, %356 : vector<16x128xf32>
    %cst_186 = arith.constant 9.99999974E-6 : f32
    %358 = vector.broadcast %cst_186 : f32 to vector<16x1xf32>
    %359 = arith.addf %355, %358 : vector<16x1xf32>
    %360 = math.rsqrt %359 : vector<16x1xf32>
    %361 = vector.broadcast %360 : vector<16x1xf32> to vector<16x128xf32>
    %362 = arith.mulf %357, %361 : vector<16x128xf32>
    %c0_187 = arith.constant 0 : index
    %c0_188 = arith.constant 0 : index
    %363 = vector.load %arg20[%c0_187, %c0_188] : memref<1x128xf32, #tpu.memory_space<vmem>>, vector<1x128xf32>
    %364 = vector.broadcast %363 : vector<1x128xf32> to vector<16x128xf32>
    %365 = arith.mulf %362, %364 : vector<16x128xf32>
    %c0_189 = arith.constant 0 : index
    %c0_190 = arith.constant 0 : index
    %366 = vector.load %arg21[%c0_189, %c0_190] : memref<1x128xf32, #tpu.memory_space<vmem>>, vector<1x128xf32>
    %367 = vector.broadcast %366 : vector<1x128xf32> to vector<16x128xf32>
    %368 = arith.addf %365, %367 : vector<16x128xf32>
    %cst_191 = arith.constant 0.000000e+00 : f32
    %369 = vector.broadcast %cst_191 : f32 to vector<16x128xf32>
    %370 = arith.maximumf %368, %369 : vector<16x128xf32>
    %cst_192 = arith.constant dense<0xFF800000> : vector<128xf32>
    %371 = vector.multi_reduction <maximumf>, %370, %cst_192 [0] : vector<16x128xf32> to vector<128xf32>
    %372 = vector.shape_cast %371 : vector<128xf32> to vector<1x128xf32>
    %373 = arith.truncf %372 : vector<1x128xf32> to vector<1x128xbf16>
    %c0_193 = arith.constant 0 : index
    %c0_194 = arith.constant 0 : index
    %374 = vector.load %arg22[%c0_193, %c0_194] : memref<128x64xbf16, #tpu.memory_space<vmem>>, vector<128x64xbf16>
    %cst_195 = arith.constant dense<0.000000e+00> : vector<1x64xf32>
    %375 = tpu.matmul %373, %374, %cst_195 {dimension_numbers = #tpu.dot_dimension_numbers<[1], [0], [0], [1], [0, 0, 1, 1], [], []>} : vector<1x128xbf16>, vector<128x64xbf16>, vector<1x64xf32> -> vector<1x64xf32>
    %c0_196 = arith.constant 0 : index
    %c0_197 = arith.constant 0 : index
    %376 = vector.load %arg23[%c0_196, %c0_197] : memref<1x64xf32, #tpu.memory_space<vmem>>, vector<1x64xf32>
    %377 = arith.addf %375, %376 : vector<1x64xf32>
    %cst_198 = arith.constant dense<0xFF800000> : vector<1xf32>
    %378 = vector.multi_reduction <maximumf>, %377, %cst_198 [1] : vector<1x64xf32> to vector<1xf32>
    %379 = vector.shape_cast %378 : vector<1xf32> to vector<1x1xf32>
    %380 = vector.broadcast %379 : vector<1x1xf32> to vector<1x64xf32>
    %381 = arith.subf %377, %380 : vector<1x64xf32>
    %382 = math.exp %381 : vector<1x64xf32>
    %cst_199 = arith.constant dense<0.000000e+00> : vector<1xf32>
    %383 = vector.multi_reduction <add>, %382, %cst_199 [1] : vector<1x64xf32> to vector<1xf32>
    %384 = vector.shape_cast %383 : vector<1xf32> to vector<1x1xf32>
    %385 = vector.broadcast %384 : vector<1x1xf32> to vector<1x64xf32>
    %386 = arith.divf %382, %385 : vector<1x64xf32>
    %c0_200 = arith.constant 0 : index
    %c0_201 = arith.constant 0 : index
    %c0_202 = arith.constant 0 : index
    %387 = vector.load %arg24[%c0_200, %c0_201, %c0_202] : memref<1x1x64xf32, #tpu.memory_space<vmem>>, vector<1x1x64xf32>
    %388 = vector.shape_cast %387 : vector<1x1x64xf32> to vector<1x64xf32>
    %389 = vector.shape_cast %386 : vector<1x64xf32> to vector<1x1x64xf32>
    tpu.vector_store %arg24[%c0_200, %c0_201, %c0_202], %389 {strides = array<i32>} : memref<1x1x64xf32, #tpu.memory_space<vmem>>, vector<1x1x64xf32>,
    return
  }
  func.func @transform_0(%arg0: i32) -> (i32, i32, i32) {
    %c0_i32 = arith.constant 0 : i32
    %c0_i32_0 = arith.constant 0 : i32
    %c0_i32_1 = arith.constant 0 : i32
    return %arg0, %c0_i32, %c0_i32_0 : i32, i32, i32
  }
  func.func @transform_1(%arg0: i32) -> (i32, i32) {
    %c0_i32 = arith.constant 0 : i32
    %c0_i32_0 = arith.constant 0 : i32
    %c0_i32_1 = arith.constant 0 : i32
    return %c0_i32, %c0_i32_0 : i32, i32
  }
  func.func @transform_2(%arg0: i32) -> (i32, i32) {
    %c0_i32 = arith.constant 0 : i32
    %c0_i32_0 = arith.constant 0 : i32
    %c0_i32_1 = arith.constant 0 : i32
    return %c0_i32, %c0_i32_0 : i32, i32
  }
  func.func @transform_3(%arg0: i32) -> (i32, i32, i32) {
    %c0_i32 = arith.constant 0 : i32
    %c0_i32_0 = arith.constant 0 : i32
    %c0_i32_1 = arith.constant 0 : i32
    %c0_i32_2 = arith.constant 0 : i32
    return %c0_i32, %c0_i32_0, %c0_i32_1 : i32, i32, i32
  }
  func.func @transform_4(%arg0: i32) -> (i32, i32) {
    %c0_i32 = arith.constant 0 : i32
    %c0_i32_0 = arith.constant 0 : i32
    %c0_i32_1 = arith.constant 0 : i32
    return %c0_i32, %c0_i32_0 : i32, i32
  }
  func.func @transform_5(%arg0: i32) -> (i32, i32, i32) {
    %c0_i32 = arith.constant 0 : i32
    %c0_i32_0 = arith.constant 0 : i32
    %c0_i32_1 = arith.constant 0 : i32
    %c0_i32_2 = arith.constant 0 : i32
    return %c0_i32, %c0_i32_0, %c0_i32_1 : i32, i32, i32
  }
  func.func @transform_6(%arg0: i32) -> (i32, i32) {
    %c0_i32 = arith.constant 0 : i32
    %c0_i32_0 = arith.constant 0 : i32
    %c0_i32_1 = arith.constant 0 : i32
    return %c0_i32, %c0_i32_0 : i32, i32
  }
  func.func @transform_7(%arg0: i32) -> (i32, i32, i32) {
    %c0_i32 = arith.constant 0 : i32
    %c0_i32_0 = arith.constant 0 : i32
    %c0_i32_1 = arith.constant 0 : i32
    %c0_i32_2 = arith.constant 0 : i32
    return %c0_i32, %c0_i32_0, %c0_i32_1 : i32, i32, i32
  }
  func.func @transform_8(%arg0: i32) -> (i32, i32) {
    %c0_i32 = arith.constant 0 : i32
    %c0_i32_0 = arith.constant 0 : i32
    %c0_i32_1 = arith.constant 0 : i32
    return %c0_i32, %c0_i32_0 : i32, i32
  }
  func.func @transform_9(%arg0: i32) -> (i32, i32) {
    %c0_i32 = arith.constant 0 : i32
    %c0_i32_0 = arith.constant 0 : i32
    %c0_i32_1 = arith.constant 0 : i32
    return %c0_i32, %c0_i32_0 : i32, i32
  }
  func.func @transform_10(%arg0: i32) -> (i32, i32) {
    %c0_i32 = arith.constant 0 : i32
    %c0_i32_0 = arith.constant 0 : i32
    %c0_i32_1 = arith.constant 0 : i32
    return %c0_i32, %c0_i32_0 : i32, i32
  }
  func.func @transform_11(%arg0: i32) -> (i32, i32) {
    %c0_i32 = arith.constant 0 : i32
    %c0_i32_0 = arith.constant 0 : i32
    %c0_i32_1 = arith.constant 0 : i32
    return %c0_i32, %c0_i32_0 : i32, i32
  }
  func.func @transform_12(%arg0: i32) -> (i32, i32) {
    %c0_i32 = arith.constant 0 : i32
    %c0_i32_0 = arith.constant 0 : i32
    %c0_i32_1 = arith.constant 0 : i32
    return %c0_i32, %c0_i32_0 : i32, i32
  }
  func.func @transform_13(%arg0: i32) -> (i32, i32) {
    %c0_i32 = arith.constant 0 : i32
    %c0_i32_0 = arith.constant 0 : i32
    %c0_i32_1 = arith.constant 0 : i32
    return %c0_i32, %c0_i32_0 : i32, i32
  }
  func.func @transform_14(%arg0: i32) -> (i32, i32) {
    %c0_i32 = arith.constant 0 : i32
    %c0_i32_0 = arith.constant 0 : i32
    %c0_i32_1 = arith.constant 0 : i32
    return %c0_i32, %c0_i32_0 : i32, i32
  }
  func.func @transform_15(%arg0: i32) -> (i32, i32) {
    %c0_i32 = arith.constant 0 : i32
    %c0_i32_0 = arith.constant 0 : i32
    %c0_i32_1 = arith.constant 0 : i32
    return %c0_i32, %c0_i32_0 : i32, i32
  }
  func.func @transform_16(%arg0: i32) -> (i32, i32) {
    %c0_i32 = arith.constant 0 : i32
    %c0_i32_0 = arith.constant 0 : i32
    %c0_i32_1 = arith.constant 0 : i32
    return %c0_i32, %c0_i32_0 : i32, i32
  }
  func.func @transform_17(%arg0: i32) -> (i32, i32) {
    %c0_i32 = arith.constant 0 : i32
    %c0_i32_0 = arith.constant 0 : i32
    %c0_i32_1 = arith.constant 0 : i32
    return %c0_i32, %c0_i32_0 : i32, i32
  }
  func.func @transform_18(%arg0: i32) -> (i32, i32) {
    %c0_i32 = arith.constant 0 : i32
    %c0_i32_0 = arith.constant 0 : i32
    %c0_i32_1 = arith.constant 0 : i32
    return %c0_i32, %c0_i32_0 : i32, i32
  }
  func.func @transform_19(%arg0: i32) -> (i32, i32) {
    %c0_i32 = arith.constant 0 : i32
    %c0_i32_0 = arith.constant 0 : i32
    %c0_i32_1 = arith.constant 0 : i32
    return %c0_i32, %c0_i32_0 : i32, i32
  }
  func.func @transform_20(%arg0: i32) -> (i32, i32) {
    %c0_i32 = arith.constant 0 : i32
    %c0_i32_0 = arith.constant 0 : i32
    %c0_i32_1 = arith.constant 0 : i32
    return %c0_i32, %c0_i32_0 : i32, i32
  }
  func.func @transform_21(%arg0: i32) -> (i32, i32) {
    %c0_i32 = arith.constant 0 : i32
    %c0_i32_0 = arith.constant 0 : i32
    %c0_i32_1 = arith.constant 0 : i32
    return %c0_i32, %c0_i32_0 : i32, i32
  }
  func.func @transform_22(%arg0: i32) -> (i32, i32) {
    %c0_i32 = arith.constant 0 : i32
    %c0_i32_0 = arith.constant 0 : i32
    %c0_i32_1 = arith.constant 0 : i32
    return %c0_i32, %c0_i32_0 : i32, i32
  }
  func.func @transform_23(%arg0: i32) -> (i32, i32, i32) {
    %c0_i32 = arith.constant 0 : i32
    %c0_i32_0 = arith.constant 0 : i32
    %c0_i32_1 = arith.constant 0 : i32
    return %arg0, %c0_i32, %c0_i32_0 : i32, i32, i32
  }
}

</mosaic_0001>

<bundles_post_ra>
// kernel: forward.1
= control target key start
LH: loop header
LB: loop body
LE: loop exit
PB: predicated region body
PF: predicated region fallthrough
CT: control target
= control target key end

     0   :  { %s10520_s0 = inlined_call_operand.vmem [shape: f32[2,16,7], index: 0, kind: input, shape index: {}]   ;;  %s10521_s1 = inlined_call_operand.vmem [shape: f32[16,1], index: 1, kind: input, shape index: {}]   ;;  %s10522_s2 = inlined_call_operand.vmem [shape: f32[16,1], index: 2, kind: input, shape index: {}]   ;;  %s10523_s3 = inlined_call_operand.vmem [shape: bf16[5,7,32], index: 3, kind: input, shape index: {}]   ;;  %s10524_s4 = inlined_call_operand.vmem [shape: f32[1,32], index: 4, kind: input, shape index: {}]   ;;  %s10525_s5 = inlined_call_operand.vmem [shape: bf16[5,32,64], index: 5, kind: input, shape index: {}]   ;;  %s10526_s6 = inlined_call_operand.vmem [shape: f32[1,64], index: 6, kind: input, shape index: {}]   ;;  %s10527_s7 = inlined_call_operand.hbm [shape: bf16[5,64,128], index: 7, kind: input, shape index: {}]   ;;  %s10528_s8 = inlined_call_operand.hbm [shape: f32[1,128], index: 8, kind: input, shape index: {}]   ;;  %s10529_s9 = inlined_call_operand.vmem [shape: bf16[128,384], index: 9, kind: input, shape index: {}]   ;;  %s10530_s10 = inlined_call_operand.hbm [shape: f32[1,384], index: 10, kind: input, shape index: {}]   ;;  %s10531_s11 = inlined_call_operand.hbm [shape: bf16[128,128], index: 11, kind: input, shape index: {}]   ;;  %s10532_s12 = inlined_call_operand.hbm [shape: f32[1,128], index: 12, kind: input, shape index: {}]   ;;  %s10533_s13 = inlined_call_operand.hbm [shape: f32[1,128], index: 13, kind: input, shape index: {}]   ;;  %s10534_s14 = inlined_call_operand.hbm [shape: f32[1,128], index: 14, kind: input, shape index: {}]   ;;  %s10535_s15 = inlined_call_operand.hbm [shape: bf16[128,2048], index: 15, kind: input, shape index: {}]   ;;  %s10536_s16 = inlined_call_operand.hbm [shape: f32[1,2048], index: 16, kind: input, shape index: {}]   ;;  %s10537_s17 = inlined_call_operand.hbm [shape: bf16[2048,128], index: 17, kind: input, shape index: {}]   ;;  %s10538_s18 = inlined_call_operand.hbm [shape: f32[1,128], index: 18, kind: input, shape index: {}]   ;;  %s10539_s19 = inlined_call_operand.hbm [shape: f32[1,128], index: 19, kind: input, shape index: {}]   ;;  %s10540_s20 = inlined_call_operand.hbm [shape: f32[1,128], index: 20, kind: input, shape index: {}]   ;;  %s10541_s21 = inlined_call_operand.vmem [shape: bf16[128,64], index: 21, kind: input, shape index: {}]   ;;  %s10542_s22 = inlined_call_operand.hbm [shape: f32[1,64], index: 22, kind: input, shape index: {}]   ;;  %s10543_s23 = inlined_call_operand.hbm [shape: f32[2,1,64], index: 23, kind: output, shape index: {}]  }
   0x1   :  { %10566 = sst [smem:[#allocation44_spill]] %s10520_s0 }
   0x2   :  { %10567 = sst [smem:[#allocation45_spill]] %s10521_s1 }
   0x3   :  { %10568 = sst [smem:[#allocation46_spill]] %s10522_s2 }
   0x4   :  { %10569 = sst [smem:[#allocation47_spill]] %s10523_s3 }
   0x5   :  { %10570 = sst [smem:[#allocation48_spill]] %s10524_s4 }
   0x6   :  { %10571 = sst [smem:[#allocation49_spill]] %s10525_s5 }
   0x7   :  { %10572 = sst [smem:[#allocation50_spill]] %s10526_s6 }
   0x8   :  { %10573 = sst [smem:[#allocation51_spill]] %s10527_s7 }
   0x9   :  { %10574 = sst [smem:[#allocation52_spill]] %s10528_s8 }
   0xa   :  { %10575 = sst [smem:[#allocation53_spill]] %s10531_s11 }
   0xb   :  { %10576 = sst [smem:[#allocation54_spill]] %s10533_s13 }
   0xc   :  { %10577 = sst [smem:[#allocation55_spill]] %s10543_s23 }
   0xd   :  { %28 = vsyncpa [#allocation4], 0 }
   0xe   :  { %29 = vsyncpa [#allocation7], 0 }
   0xf   :  { %30 = vsyncpa [#allocation10], 0 }
  0x10   :  { %31 = vsyncpa [#allocation13], 0 }
  0x11   :  { %32 = vsyncpa [#allocation16], 0 }
  0x12   :  { %33 = vsyncpa [#allocation19], 0 }
  0x13   :  { %34 = vsyncpa [#allocation22], 0 }
  0x14   :  { %35 = vsyncpa [#allocation25], 0 }
  0x15   :  { %36 = vsyncpa [#allocation5], 0 }
  0x16   :  { %38 = vsyncpa [#allocation5 + $0x1], 0  ;;  %s9451_s4 = smov 0   ;;  %s9453_s30 = smov 0  }
  0x17   :  { %s9455_s24 = smov 0   ;;  %s9457_s25 = smov 0  }
  0x18 LB: > { %10578 = sst [smem:[#allocation36_spill]] %s9288_s4  ;;  %s9472_s5 = sadd.s32 4294967295, %s9300_s25   ;;  %s9300_s25 = sphi %s9457_s25, %s10632_s25   ;;  %s9296_s24 = sphi %s9455_s24, %s10635_s24   ;;  %s9292_s30 = sphi %s9453_s30, %s10634_s30   ;;  %s9288_s4 = sphi %s9451_s4, %s10633_s4  }
  0x19   : > { %10579 = sst [smem:[#allocation37_spill]] %s9292_s30  ;;  %s7111_s1 = sadd.s32 4294967294, %s9300_s25  }
  0x1a   : > { %10580 = sst [smem:[#allocation38_spill]] %s9296_s24  ;;  %s9476_s26 = sadd.s32 1, %s9300_s25  }
  0x1b   : > { %10581 = sst [smem:[#allocation39_spill]] %s9300_s25  ;;  %s539_s2 = sadd.s32 1, %s9296_s24 }
  0x1c   : > { %10582 = sst [smem:[#allocation40_spill]] %s9476_s26  ;;  %s536_s6 = ssub.s32 %s9300_s25, %s9476_s26 }
  0x1d   : > { %p549_p0 = scmp.ne.s32.totalorder %s9296_s24, %s9292_s30  ;;  %p537_p1 = scmp.eq.s32.totalorder %s536_s6, 0 }
  0x1e   : > { %p550_p2 = scmp.eq.s32.totalorder %s9472_s5, 1  ;;  %p555_p3 = scmp.ne.s32.totalorder %s9292_s30, %s9288_s4 }
  0x1f   : > { %p556_p4 = scmp.eq.s32.totalorder %s7111_s1, 1  ;;  %p7112_p7 = scmp.ge.s32.totalorder %s9300_s25, 1 }
  0x20   : > { %s9487_s27 = scalar_select %p537_p1, %s9296_s24, %s539_s2  }
  0x21   : > { %p9489_p5 = por %p550_p2, %p549_p0  ;;  %p9493_p6 = por %p556_p4, %p555_p3 }
  0x22   : > { %10583 = sst [smem:[#allocation41_spill]] %s9487_s27  ;;  %p563_p8 = scmp.lt.s32.totalorder %s9300_s25, 3 }
  0x23   : > { %s10584_s7 = scalar_select %p9489_p5, 1, 0 }
  0x24   : > { %s10586_s28 = scalar_select %p9493_p6, 1, 0 }
  0x25   : > { %10585 = sst [smem:[#allocation42_spill]] %s10584_s7  ;;  %p10556_p9 = scmp.eq.s32.totalorder %s9472_s5, 0 }
  0x26   : > { %10587 = sst [smem:[#allocation43_spill]] %s10586_s28  ;;  %p9500_p10 = pnand %p7112_p7, %p563_p8 }
  0x27   : > { %s9302_s3 = smov [#allocation6]   ;;  %s9303_s2 = smov [#allocation9]  }
  0x28   : > { %s10588_s29 = scalar_select %p9500_p10, 1, 0 }
  0x29   : > { %s607_s0 = sshll.u32 %s9302_s3, 4  ;;  %p8324_p11 = pneg %p9500_p10  ;;  %s608_s0 = int_to_ptr.vmem [resolvable:$true] %s607_s0 }
  0x2a   : > { %s631_s6 = sshll.u32 %s9303_s2, 4  ;;  %s9304_s27 = smov [#allocation12]   ;;  %s9512_s6 = int_to_ptr.vmem [resolvable:$true] %s631_s6 }
  0x2b   : > { %p9508_p12 = pnand %p10556_p9, %p8324_p11  ;;  %s9514_s24 = sshll.u32 %s9304_s27, 4  ;;  %s657_s24 = int_to_ptr.vmem [resolvable:$true] %s9514_s24 }
  0x2c   : > { %s10590_s8 = sld [smem:[#allocation52_spill]] }
  0x2d   : > { %p9524_p0 = pneg %p9508_p12 }
  0x32   : > { %s8814_s3 = scalar_lea.hbm %s10590_s8, 16 }
  0x33   : > { %p8815_p13 = scmp.ne.s32.totalorder %s10590_s8, %s8814_s3  ;;  %p8821_p3 = scmp.lt.u32.totalorder %s8814_s3, %s10590_s8 }
  0x35   : > { %p8817_p1 = pnand %p9524_p0, %p8815_p13 }
  0x37   : > { %p8818_p2 = pneg %p8817_p1 }
  0x39   : > { %p8823_p4 = pnand %p8821_p3, %p8818_p2 }
  0x3b   : > { %8826 = shalt.err (!%p8823_p4)
}
  0x3c   : > { %s8827_s26 = scalar_lea.vmem %s608_s0, 16  ;;  %s8834_s4 = scalar_lea.vmem %s608_s0, 32 }
  0x3d   : > { %p8828_p7 = scmp.ne.s32.totalorder %s608_s0, %s8827_s26  ;;  %p8835_p9 = scmp.lt.s32.totalorder %s608_s0, %s608_s0 }
  0x3e   : > { %p8836_p6 = scmp.lt.s32.totalorder %s8834_s4, %s8827_s26 }
  0x3f   : > { %p8830_p8 = pnand %p8828_p7, %p9524_p0 }
  0x40   : > { %p8837_p5 = por %p8836_p6, %p8835_p9 }
  0x41   : > { %p8831_p11 = pneg %p8830_p8 }
  0x43   : > { %p8838_p10 = pnand %p8837_p5, %p8831_p11 }
  0x45   : > { %8841 = shalt.err (!%p8838_p10)
}
  0x46   : > { %8330 = dma.hbm_to_vmem [thread:$0]  (!%p9508_p12), %s10590_s8, 16, %s608_s0, [#allocation7]  }
  0x47   : > { %s10592_s11 = sld [smem:[#allocation53_spill]] }
  0x4d   : > { %s8842_s27 = scalar_lea.hbm %s10592_s11, 1024 }
  0x4e   : > { %p8843_p13 = scmp.ne.s32.totalorder %s10592_s11, %s8842_s27  ;;  %p8849_p5 = scmp.lt.u32.totalorder %s8842_s27, %s10592_s11 }
  0x50   : > { %p8845_p1 = pnand %p8843_p13, %p9524_p0 }
  0x52   : > { %p8846_p6 = pneg %p8845_p1 }
  0x54   : > { %p8851_p9 = pnand %p8849_p5, %p8846_p6 }
  0x56   : > { %8854 = shalt.err (!%p8851_p9)
}
  0x57   : > { %s8855_s0 = scalar_lea.vmem %s9512_s6, 1024  ;;  %p8863_p4 = scmp.lt.s32.totalorder %s9512_s6, %s9512_s6 }
  0x58   : > { %p8856_p10 = scmp.ne.s32.totalorder %s9512_s6, %s8855_s0  ;;  %p8864_p7 = scmp.lt.s32.totalorder %s8855_s0, %s8855_s0 }
  0x5a   : > { %p8858_p2 = pnand %p8856_p10, %p9524_p0  ;;  %p8865_p8 = por %p8864_p7, %p8863_p4 }
  0x5c   : > { %p8859_p3 = pneg %p8858_p2 }
  0x5e   : > { %p8866_p11 = pnand %p8865_p8, %p8859_p3 }
  0x60   : > { %8869 = shalt.err (!%p8866_p11)
}
  0x61   : > { %s10564_s30 = smov 64   ;;  %s10562_s7 = smov 4  }
  0x62   : > { %8336 = dma.hbm_to_vmem [thread:$0]  (!%p9508_p12), %s10592_s11, 1024, %s9512_s6, [#allocation10], %s10564_s30, %s10564_s30, %s10562_s7  }
  0x63   : > { %s10593_s13 = sld [smem:[#allocation54_spill]] }
  0x69   : > { %s8870_s27 = scalar_lea.hbm %s10593_s13, 16 }
  0x6a   : > { %p8871_p13 = scmp.ne.s32.totalorder %s10593_s13, %s8870_s27  ;;  %p8877_p5 = scmp.lt.u32.totalorder %s8870_s27, %s10593_s13 }
  0x6c   : > { %p8873_p1 = pnand %p8871_p13, %p9524_p0 }
  0x6e   : > { %p8874_p6 = pneg %p8873_p1 }
  0x70   : > { %p8879_p9 = pnand %p8877_p5, %p8874_p6 }
  0x72   : > { %8882 = shalt.err (!%p8879_p9)
}
  0x73   : > { %s8883_s25 = scalar_lea.vmem %s657_s24, 16  ;;  %s8890_s6 = scalar_lea.vmem %s657_s24, 32 }
  0x74   : > { %p8884_p10 = scmp.ne.s32.totalorder %s657_s24, %s8883_s25  ;;  %p8891_p4 = scmp.lt.s32.totalorder %s657_s24, %s657_s24 }
  0x75   : > { %p8892_p7 = scmp.lt.s32.totalorder %s8890_s6, %s8883_s25 }
  0x76   : > { %p8886_p2 = pnand %p8884_p10, %p9524_p0 }
  0x77   : > { %p8893_p8 = por %p8892_p7, %p8891_p4 }
  0x78   : > { %p8887_p3 = pneg %p8886_p2 }
  0x7a   : > { %p8894_p11 = pnand %p8893_p8, %p8887_p3 }
  0x7c   : > { %8897 = shalt.err (!%p8894_p11)
}
  0x7d   : > { %8342 = dma.hbm_to_vmem [thread:$0]  (!%p9508_p12), %s10593_s13, 16, %s657_s24, [#allocation13]  }
  0x7e   : > { %s9307_s8 = smov [#allocation15]   ;;  %s8898_s4 = scalar_lea.hbm %s10535_s15, 16384 }
  0x7f   : > { %s677_s2 = sshll.u32 %s9307_s8, 4  ;;  %p8899_p13 = scmp.ne.s32.totalorder %s10535_s15, %s8898_s4  ;;  %s678_s2 = int_to_ptr.vmem [resolvable:$true] %s677_s2 }
  0x80   : > { %p8905_p5 = scmp.lt.u32.totalorder %s8898_s4, %s10535_s15 }
  0x81   : > { %p8901_p1 = pnand %p8899_p13, %p9524_p0 }
  0x83   : > { %p8902_p6 = pneg %p8901_p1 }
  0x85   : > { %p8907_p9 = pnand %p8905_p5, %p8902_p6 }
  0x87   : > { %8910 = shalt.err (!%p8907_p9)
}
  0x88   : > { %s8911_s24 = scalar_lea.vmem %s678_s2, 16384  ;;  %p8919_p4 = scmp.lt.s32.totalorder %s678_s2, %s678_s2 }
  0x89   : > { %p8912_p10 = scmp.ne.s32.totalorder %s678_s2, %s8911_s24  ;;  %p8920_p7 = scmp.lt.s32.totalorder %s8911_s24, %s8911_s24 }
  0x8b   : > { %p8914_p2 = pnand %p8912_p10, %p9524_p0  ;;  %p8921_p8 = por %p8920_p7, %p8919_p4 }
  0x8d   : > { %p8915_p3 = pneg %p8914_p2 }
  0x8f   : > { %p8922_p11 = pnand %p8921_p8, %p8915_p3 }
  0x91   : > { %8925 = shalt.err (!%p8922_p11)
}
  0x92   : > { %s9308_s7 = smov 1024   ;;  %s9309_s8 = smov [#allocation18]  }
  0x93   : > { %8348 = dma.hbm_to_vmem [thread:$0]  (!%p9508_p12), %s10535_s15, 16384, %s678_s2, [#allocation16], %s9308_s7, %s9308_s7, %s10564_s30  }
  0x94   : > { %s701_s27 = sshll.u32 %s9309_s8, 4  ;;  %s9310_s26 = smov [#allocation21]   ;;  %s702_s27 = int_to_ptr.vmem [resolvable:$true] %s701_s27 }
  0x95   : > { %s726_s4 = sshll.u32 %s9310_s26, 4  ;;  %s8926_s6 = scalar_lea.hbm %s10537_s17, 16384  ;;  %s727_s4 = int_to_ptr.vmem [resolvable:$true] %s726_s4 }
  0x96   : > { %p8927_p13 = scmp.ne.s32.totalorder %s10537_s17, %s8926_s6  ;;  %p8933_p5 = scmp.lt.u32.totalorder %s8926_s6, %s10537_s17 }
  0x98   : > { %p8929_p1 = pnand %p8927_p13, %p9524_p0 }
  0x9a   : > { %p8930_p6 = pneg %p8929_p1 }
  0x9c   : > { %p8935_p9 = pnand %p8933_p5, %p8930_p6 }
  0x9e   : > { %8938 = shalt.err (!%p8935_p9)
}
  0x9f   : > { %s8939_s2 = scalar_lea.vmem %s702_s27, 16384  ;;  %p8947_p4 = scmp.lt.s32.totalorder %s702_s27, %s702_s27 }
  0xa0   : > { %p8940_p10 = scmp.ne.s32.totalorder %s702_s27, %s8939_s2  ;;  %p8948_p7 = scmp.lt.s32.totalorder %s8939_s2, %s8939_s2 }
  0xa2   : > { %p8942_p2 = pnand %p8940_p10, %p9524_p0  ;;  %p8949_p8 = por %p8948_p7, %p8947_p4 }
  0xa4   : > { %p8943_p3 = pneg %p8942_p2 }
  0xa6   : > { %p8950_p11 = pnand %p8949_p8, %p8943_p3 }
  0xa8   : > { %8953 = shalt.err (!%p8950_p11)
}
  0xa9   : > { %s10594_s11 = smov 4   ;;  %s8954_s26 = scalar_lea.hbm %s10539_s19, 16 }
  0xaa   : > { %8354 = dma.hbm_to_vmem [thread:$0]  (!%p9508_p12), %s10537_s17, 16384, %s702_s27, [#allocation19], %s10564_s30, %s10564_s30, %s10594_s11  }
  0xab   : > { %p8955_p13 = scmp.ne.s32.totalorder %s10539_s19, %s8954_s26  ;;  %p8961_p5 = scmp.lt.u32.totalorder %s8954_s26, %s10539_s19 }
  0xad   : > { %p8957_p1 = pnand %p8955_p13, %p9524_p0 }
  0xaf   : > { %p8958_p6 = pneg %p8957_p1 }
  0xb1   : > { %p8963_p9 = pnand %p8961_p5, %p8958_p6 }
  0xb3   : > { %8966 = shalt.err (!%p8963_p9)
}
  0xb4   : > { %s8967_s28 = scalar_lea.vmem %s727_s4, 16  ;;  %s8974_s27 = scalar_lea.vmem %s727_s4, 32 }
  0xb5   : > { %p8968_p10 = scmp.ne.s32.totalorder %s727_s4, %s8967_s28  ;;  %p8975_p4 = scmp.lt.s32.totalorder %s727_s4, %s727_s4 }
  0xb6   : > { %p8976_p7 = scmp.lt.s32.totalorder %s8974_s27, %s8967_s28 }
  0xb7   : > { %p8970_p2 = pnand %p8968_p10, %p9524_p0 }
  0xb8   : > { %p8977_p8 = por %p8976_p7, %p8975_p4 }
  0xb9   : > { %p8971_p3 = pneg %p8970_p2 }
  0xbb   : > { %p8978_p11 = pnand %p8977_p8, %p8971_p3 }
  0xbd   : > { %8981 = shalt.err (!%p8978_p11)
}
  0xbe   : > { %8360 = dma.hbm_to_vmem [thread:$0]  (!%p9508_p12), %s10539_s19, 16, %s727_s4, [#allocation22]  }
  0xbf   : > { %s9311_s7 = smov [#allocation3]   ;;  %s9312_s8 = smov [#allocation8]  }
  0xc0   : > { %s593_s3 = sshll.u32 %s9311_s7, 4  ;;  %s621_s26 = sshll.u32 %s9312_s8, 4  ;;  %s594_s3 = int_to_ptr.vmem [resolvable:$true] %s593_s3  ;;  %s622_s26 = int_to_ptr.vmem [resolvable:$true] %s621_s26 }
  0xc1   : > { %s10595_s6 = sld [smem:[#allocation51_spill]] }
  0xc7   : > { %s8982_s24 = scalar_lea.hbm %s10595_s6, 2560 }
  0xc8   : > { %p8983_p13 = scmp.ne.s32.totalorder %s10595_s6, %s8982_s24  ;;  %p8989_p5 = scmp.lt.u32.totalorder %s8982_s24, %s10595_s6 }
  0xca   : > { %p8985_p1 = pnand %p8983_p13, %p9524_p0 }
  0xcc   : > { %p8986_p6 = pneg %p8985_p1 }
  0xce   : > { %p8991_p9 = pnand %p8989_p5, %p8986_p6 }
  0xd0   : > { %8994 = shalt.err (!%p8991_p9)
}
  0xd1   : > { %s8995_s4 = scalar_lea.vmem %s594_s3, 2560  ;;  %p9003_p4 = scmp.lt.s32.totalorder %s594_s3, %s594_s3 }
  0xd2   : > { %p8996_p10 = scmp.ne.s32.totalorder %s594_s3, %s8995_s4  ;;  %p9004_p7 = scmp.lt.s32.totalorder %s8995_s4, %s8995_s4 }
  0xd4   : > { %p8998_p2 = pnand %p8996_p10, %p9524_p0  ;;  %p9005_p8 = por %p9004_p7, %p9003_p4 }
  0xd6   : > { %p8999_p3 = pneg %p8998_p2 }
  0xd8   : > { %p9006_p11 = pnand %p9005_p8, %p8999_p3 }
  0xda   : > { %9009 = shalt.err (!%p9006_p11)
}
  0xdb   : > { %s10596_s13 = smov 64   ;;  %s9010_s25 = scalar_lea.hbm %s10530_s10, 48 }
  0xdc   : > { %8327 = dma.hbm_to_vmem [thread:$0]  (!%p9508_p12), %s10595_s6, 2560, %s594_s3, [#allocation4], %s10596_s13, %s10596_s13, %s10594_s11  }
  0xdd   : > { %p9011_p13 = scmp.ne.s32.totalorder %s10530_s10, %s9010_s25  ;;  %p9017_p5 = scmp.lt.u32.totalorder %s9010_s25, %s10530_s10 }
  0xdf   : > { %p9013_p1 = pnand %p9011_p13, %p9524_p0 }
  0xe1   : > { %p9014_p6 = pneg %p9013_p1 }
  0xe3   : > { %p9019_p9 = pnand %p9017_p5, %p9014_p6 }
  0xe5   : > { %9022 = shalt.err (!%p9019_p9)
}
  0xe6   : > { %s9023_s4 = scalar_lea.vmem %s622_s26, 48  ;;  %s9030_s11 = scalar_lea.vmem %s622_s26, 64 }
  0xe7   : > { %p9024_p10 = scmp.ne.s32.totalorder %s622_s26, %s9023_s4  ;;  %p9031_p4 = scmp.lt.s32.totalorder %s622_s26, %s622_s26 }
  0xe8   : > { %p9032_p7 = scmp.lt.s32.totalorder %s9030_s11, %s9023_s4 }
  0xe9   : > { %p9026_p2 = pnand %p9024_p10, %p9524_p0 }
  0xea   : > { %p9033_p8 = por %p9032_p7, %p9031_p4 }
  0xeb   : > { %p9027_p3 = pneg %p9026_p2 }
  0xed   : > { %p9034_p11 = pnand %p9033_p8, %p9027_p3 }
  0xef   : > { %9037 = shalt.err (!%p9034_p11)
}
  0xf0   : > { %8333 = dma.hbm_to_vmem [thread:$0]  (!%p9508_p12), %s10530_s10, 48, %s622_s26, [#allocation7]  }
  0xf1   : > { %s9313_s30 = smov [#allocation11]   ;;  %s9314_s8 = smov [#allocation14]  }
  0xf2   : > { %s645_s7 = sshll.u32 %s9313_s30, 4  ;;  %s667_s0 = sshll.u32 %s9314_s8, 4  ;;  %s646_s7 = int_to_ptr.vmem [resolvable:$true] %s645_s7  ;;  %s668_s0 = int_to_ptr.vmem [resolvable:$true] %s667_s0 }
  0xf3   : > { %s9038_s28 = scalar_lea.hbm %s10532_s12, 16 }
  0xf4   : > { %p9039_p13 = scmp.ne.s32.totalorder %s10532_s12, %s9038_s28  ;;  %p9045_p5 = scmp.lt.u32.totalorder %s9038_s28, %s10532_s12 }
  0xf6   : > { %p9041_p1 = pnand %p9039_p13, %p9524_p0 }
  0xf8   : > { %p9042_p6 = pneg %p9041_p1 }
  0xfa   : > { %p9047_p9 = pnand %p9045_p5, %p9042_p6 }
  0xfc   : > { %9050 = shalt.err (!%p9047_p9)
}
  0xfd   : > { %s9051_s26 = scalar_lea.vmem %s646_s7, 16  ;;  %s9058_s3 = scalar_lea.vmem %s646_s7, 32 }
  0xfe   : > { %p9052_p10 = scmp.ne.s32.totalorder %s646_s7, %s9051_s26  ;;  %p9059_p4 = scmp.lt.s32.totalorder %s646_s7, %s646_s7 }
  0xff   : > { %p9060_p7 = scmp.lt.s32.totalorder %s9058_s3, %s9051_s26 }
 0x100   : > { %p9054_p2 = pnand %p9052_p10, %p9524_p0 }
 0x101   : > { %p9061_p8 = por %p9060_p7, %p9059_p4 }
 0x102   : > { %p9055_p3 = pneg %p9054_p2 }
 0x104   : > { %p9062_p11 = pnand %p9061_p8, %p9055_p3 }
 0x106   : > { %9065 = shalt.err (!%p9062_p11)
}
 0x107   : > { %8339 = dma.hbm_to_vmem [thread:$0]  (!%p9508_p12), %s10532_s12, 16, %s646_s7, [#allocation10]  }
 0x108   : > { %s9066_s24 = scalar_lea.hbm %s10534_s14, 16 }
 0x109   : > { %p9067_p13 = scmp.ne.s32.totalorder %s10534_s14, %s9066_s24  ;;  %p9073_p5 = scmp.lt.u32.totalorder %s9066_s24, %s10534_s14 }
 0x10b   : > { %p9069_p1 = pnand %p9067_p13, %p9524_p0 }
 0x10d   : > { %p9070_p6 = pneg %p9069_p1 }
 0x10f   : > { %p9075_p9 = pnand %p9073_p5, %p9070_p6 }
 0x111   : > { %9078 = shalt.err (!%p9075_p9)
}
 0x112   : > { %s9079_s11 = scalar_lea.vmem %s668_s0, 16  ;;  %s9086_s7 = scalar_lea.vmem %s668_s0, 32 }
 0x113   : > { %p9080_p10 = scmp.ne.s32.totalorder %s668_s0, %s9079_s11  ;;  %p9087_p4 = scmp.lt.s32.totalorder %s668_s0, %s668_s0 }
 0x114   : > { %p9088_p7 = scmp.lt.s32.totalorder %s9086_s7, %s9079_s11 }
 0x115   : > { %p9082_p2 = pnand %p9080_p10, %p9524_p0 }
 0x116   : > { %p9089_p8 = por %p9088_p7, %p9087_p4 }
 0x117   : > { %p9083_p3 = pneg %p9082_p2 }
 0x119   : > { %p9090_p11 = pnand %p9089_p8, %p9083_p3 }
 0x11b   : > { %9093 = shalt.err (!%p9090_p11)
}
 0x11c   : > { %8345 = dma.hbm_to_vmem [thread:$0]  (!%p9508_p12), %s10534_s14, 16, %s668_s0, [#allocation13]  }
 0x11d   : > { %s9315_s13 = smov [#allocation17]   ;;  %s9316_s8 = smov [#allocation20]  }
 0x11e   : > { %s691_s30 = sshll.u32 %s9315_s13, 4  ;;  %s715_s25 = sshll.u32 %s9316_s8, 4  ;;  %s692_s30 = int_to_ptr.vmem [resolvable:$true] %s691_s30  ;;  %s716_s25 = int_to_ptr.vmem [resolvable:$true] %s715_s25 }
 0x11f   : > { %s9094_s27 = scalar_lea.hbm %s10536_s16, 256 }
 0x120   : > { %p9095_p13 = scmp.ne.s32.totalorder %s10536_s16, %s9094_s27  ;;  %p9101_p5 = scmp.lt.u32.totalorder %s9094_s27, %s10536_s16 }
 0x122   : > { %p9097_p1 = pnand %p9095_p13, %p9524_p0 }
 0x124   : > { %p9098_p6 = pneg %p9097_p1 }
 0x126   : > { %p9103_p9 = pnand %p9101_p5, %p9098_p6 }
 0x128   : > { %9106 = shalt.err (!%p9103_p9)
}
 0x129   : > { %s9107_s0 = scalar_lea.vmem %s692_s30, 256  ;;  %p9115_p4 = scmp.lt.s32.totalorder %s692_s30, %s692_s30 }
 0x12a   : > { %p9108_p10 = scmp.ne.s32.totalorder %s692_s30, %s9107_s0  ;;  %p9116_p7 = scmp.lt.s32.totalorder %s9107_s0, %s9107_s0 }
 0x12c   : > { %p9110_p2 = pnand %p9108_p10, %p9524_p0  ;;  %p9117_p8 = por %p9116_p7, %p9115_p4 }
 0x12e   : > { %p9111_p3 = pneg %p9110_p2 }
 0x130   : > { %p9118_p11 = pnand %p9117_p8, %p9111_p3 }
 0x132   : > { %9121 = shalt.err (!%p9118_p11)
}
 0x133   : > { %8351 = dma.hbm_to_vmem [thread:$0]  (!%p9508_p12), %s10536_s16, 256, %s692_s30, [#allocation16]  }
 0x134   : > { %s9122_s24 = scalar_lea.hbm %s10538_s18, 16 }
 0x135   : > { %p9123_p13 = scmp.ne.s32.totalorder %s10538_s18, %s9122_s24  ;;  %p9129_p5 = scmp.lt.u32.totalorder %s9122_s24, %s10538_s18 }
 0x137   : > { %p9125_p1 = pnand %p9123_p13, %p9524_p0 }
 0x139   : > { %p9126_p6 = pneg %p9125_p1 }
 0x13b   : > { %p9131_p9 = pnand %p9129_p5, %p9126_p6 }
 0x13d   : > { %9134 = shalt.err (!%p9131_p9)
}
 0x13e   : > { %s9135_s11 = scalar_lea.vmem %s716_s25, 16  ;;  %s9142_s30 = scalar_lea.vmem %s716_s25, 32 }
 0x13f   : > { %p9136_p10 = scmp.ne.s32.totalorder %s716_s25, %s9135_s11  ;;  %p9143_p4 = scmp.lt.s32.totalorder %s716_s25, %s716_s25 }
 0x140   : > { %p9144_p7 = scmp.lt.s32.totalorder %s9142_s30, %s9135_s11 }
 0x141   : > { %p9138_p2 = pnand %p9136_p10, %p9524_p0 }
 0x142   : > { %p9145_p8 = por %p9144_p7, %p9143_p4 }
 0x143   : > { %p9139_p3 = pneg %p9138_p2 }
 0x145   : > { %p9146_p11 = pnand %p9145_p8, %p9139_p3 }
 0x147   : > { %9149 = shalt.err (!%p9146_p11)
}
 0x148   : > { %8357 = dma.hbm_to_vmem [thread:$0]  (!%p9508_p12), %s10538_s18, 16, %s716_s25, [#allocation19]  }
 0x149   : > { %s9317_s26 = smov [#allocation23]   ;;  %s9318_s13 = smov [#allocation24]  }
 0x14a   : > { %s737_s3 = sshll.u32 %s9317_s26, 4  ;;  %s751_s8 = sshll.u32 %s9318_s13, 4  ;;  %s738_s3 = int_to_ptr.vmem [resolvable:$true] %s737_s3  ;;  %s752_s8 = int_to_ptr.vmem [resolvable:$true] %s751_s8 }
 0x14b   : > { %s9150_s27 = scalar_lea.hbm %s10540_s20, 16 }
 0x14c   : > { %p9151_p13 = scmp.ne.s32.totalorder %s10540_s20, %s9150_s27  ;;  %p9157_p5 = scmp.lt.u32.totalorder %s9150_s27, %s10540_s20 }
 0x14e   : > { %p9153_p1 = pnand %p9151_p13, %p9524_p0 }
 0x150   : > { %p9154_p6 = pneg %p9153_p1 }
 0x152   : > { %p9159_p9 = pnand %p9157_p5, %p9154_p6 }
 0x154   : > { %9162 = shalt.err (!%p9159_p9)
}
 0x155   : > { %s9163_s25 = scalar_lea.vmem %s738_s3, 16  ;;  %s9170_s7 = scalar_lea.vmem %s738_s3, 32 }
 0x156   : > { %p9164_p10 = scmp.ne.s32.totalorder %s738_s3, %s9163_s25  ;;  %p9171_p4 = scmp.lt.s32.totalorder %s738_s3, %s738_s3 }
 0x157   : > { %p9172_p7 = scmp.lt.s32.totalorder %s9170_s7, %s9163_s25 }
 0x158   : > { %p9166_p2 = pnand %p9164_p10, %p9524_p0 }
 0x159   : > { %p9173_p8 = por %p9172_p7, %p9171_p4 }
 0x15a   : > { %p9167_p3 = pneg %p9166_p2 }
 0x15c   : > { %p9174_p11 = pnand %p9173_p8, %p9167_p3 }
 0x15e   : > { %9177 = shalt.err (!%p9174_p11)
}
 0x15f   : > { %8363 = dma.hbm_to_vmem [thread:$0]  (!%p9508_p12), %s10540_s20, 16, %s738_s3, [#allocation22]  }
 0x160   : > { %s9178_s28 = scalar_lea.hbm %s10542_s22, 16 }
 0x161   : > { %p9179_p13 = scmp.ne.s32.totalorder %s10542_s22, %s9178_s28  ;;  %p9185_p5 = scmp.lt.u32.totalorder %s9178_s28, %s10542_s22 }
 0x163   : > { %p9181_p1 = pnand %p9179_p13, %p9524_p0 }
 0x165   : > { %p9182_p6 = pneg %p9181_p1 }
 0x167   : > { %p9187_p9 = pnand %p9185_p5, %p9182_p6 }
 0x169   : > { %9190 = shalt.err (!%p9187_p9)
}
 0x16a   : > { %s9191_s30 = scalar_lea.vmem %s752_s8, 16  ;;  %s9198_s3 = scalar_lea.vmem %s752_s8, 32 }
 0x16b   : > { %p9192_p10 = scmp.ne.s32.totalorder %s752_s8, %s9191_s30  ;;  %p9199_p4 = scmp.lt.s32.totalorder %s752_s8, %s752_s8 }
 0x16c   : > { %p9200_p7 = scmp.lt.s32.totalorder %s9198_s3, %s9191_s30 }
 0x16d   : > { %p9194_p2 = pnand %p9192_p10, %p9524_p0 }
 0x16e   : > { %p9201_p8 = por %p9200_p7, %p9199_p4 }
 0x16f   : > { %p9195_p3 = pneg %p9194_p2 }
 0x171   : > { %p9202_p11 = pnand %p9201_p8, %p9195_p3 }
 0x173   : > { %9205 = shalt.err (!%p9202_p11)
}
 0x174   : > { %8366 = dma.hbm_to_vmem [thread:$0]  (!%p9508_p12), %s10542_s22, 16, %s752_s8, [#allocation25]  }
 0x175   : > { %p10597_p13 = scmp.ne.s32.totalorder %s10588_s29, 0 }
 0x176   : > { %p10598_p1 = scmp.eq.s32.totalorder (!%p10597_p13), %s9472_s5, 0 }
 0x177   : > { %772 = sbr.rel (%p10597_p13) target bundleno = 8125 (0x1fbd), region = 112 }
 0x17e   : > { %9251 = dma.done.wait (%p10598_p1), [#allocation4], 2560   ;;  %p10599_p0 = pmov %p10598_p1 }
 0x180   : > { %9253 = vsyncadd (%p10599_p0), [#allocation4], 4294964736  ;;  %p10600_p6 = pmov %p10599_p0 }
 0x181   : > { %p10601_p5 = pmov %p10599_p0 }
 0x182   : > { %9255 = dma.done.wait (%p10600_p6), [#allocation7], 64  }
 0x183   : > { %9257 = vsyncadd (%p10601_p5), [#allocation7], 4294967232  ;;  %p10602_p9 = pmov %p10599_p0 }
 0x184   : > { %p10603_p12 = pmov %p10599_p0 }
 0x185   : > { %9259 = dma.done.wait (%p10602_p9), [#allocation10], 1040  }
 0x186   : > { %9261 = vsyncadd (%p10603_p12), [#allocation10], 4294966256  ;;  %p10604_p10 = pmov %p10599_p0 }
 0x187   : > { %p10605_p2 = pmov %p10599_p0 }
 0x188   : > { %9263 = dma.done.wait (%p10604_p10), [#allocation13], 32  }
 0x189   : > { %9265 = vsyncadd (%p10605_p2), [#allocation13], 4294967264  ;;  %p10606_p3 = pmov %p10599_p0 }
 0x18a   : > { %p10607_p4 = pmov %p10599_p0 }
 0x18b   : > { %9267 = dma.done.wait (%p10606_p3), [#allocation16], 16640  }
 0x18c   : > { %9269 = vsyncadd (%p10607_p4), [#allocation16], 4294950656  ;;  %p10608_p7 = pmov %p10599_p0 }
 0x18d   : > { %p10609_p8 = pmov %p10599_p0 }
 0x18e   : > { %9271 = dma.done.wait (%p10608_p7), [#allocation19], 16400  }
 0x18f   : > { %9273 = vsyncadd (%p10609_p8), [#allocation19], 4294950896  ;;  %p10610_p11 = pmov %p10599_p0 }
 0x190   : > { %p10611_p13 = pmov %p10599_p0 }
 0x191   : > { %9275 = dma.done.wait (%p10610_p11), [#allocation22], 32  }
 0x192   : > { %9277 = vsyncadd (%p10611_p13), [#allocation22], 4294967264  ;;  %p10612_p1 = pmov %p10599_p0 }
 0x194   : > { %9279 = dma.done.wait (%p10612_p1), [#allocation25], 16  }
 0x195   : > { %9281 = vsyncadd (%p10599_p0), [#allocation25], 4294967280  ;;  %v9319_v0 = vmov 0   ;;  %s10613_s1 = sld [smem:[#allocation46_spill]]  ;;  %s10614_s26 = sld [smem:[#allocation45_spill]]  ;;  %vm949_vm0 = vcmask 1042432  }
 0x196   : > { %8461 = vset.pattern.permute.xlu1 %v9319_v0  ;;  %8460 = vset.pattern.permute.xlu0 %v9319_v0  ;;  %vm950_vm1 = vcmask 1043456   ;;  %v9320_v5 = vmov 65535   ;;  %s10615_s11 = sld [smem:[#allocation47_spill]]  ;;  %v9321_v10 = vmov 0.0   ;;  %vm9322_vm2 = vmmov 0   ;;  %p887_p6 = scmp.lt.s32.totalorder %s9472_s5, 1 }
 0x197   : > { %v951_v6 = vsel %vm949_vm0, 4294967295, %v9320_v5  ;;  %7890 = vmatprep.subr.bf16.mxu1 %v9321_v10  ;;  %7884 = vmatprep.subr.bf16.mxu0 %v9321_v10  ;;  %s10616_s8 = sld [smem:[#allocation44_spill]]  ;;  %vm926_vm3 = vcmask 1040384   ;;  %vm945_vm4 = vcmask 56320   ;;  %vm934_vm5 = vsmask.f32 7424 }
 0x198   : > { %v9841_v8 = vsel %vm950_vm1, %v951_v6, 0  ;;  %7892 = vmatprep.mubr.msk.bf16.mxu1 %vm9322_vm2, %v9321_v10  ;;  %7886 = vmatprep.mubr.msk.bf16.mxu0 %vm9322_vm2, %v9321_v10  ;;  %s888_s25 = scalar_select %p887_p6, %s9472_s5, 1  ;;  %vm1102_vm6 = vsmask.f32 6400  ;;  %vm1047_vm7 = vcmask 1046528   ;;  %vm1163_vm8 = vcmask 1045504  }
 0x199   : > { %s10619_s2 = sld [smem:[#allocation48_spill]]  ;;  %vm1264_vm9 = vcmask 261120   ;;  %s10620_s30 = sld [smem:[#allocation50_spill]]  ;;  %vm1638_vm10 = vcmask 523264   ;;  %vm2277_vm11 = vcmask 130048   ;;  %vm2684_vm13 = vcmask 261248  }
 0x19a   : > { %s7566_s7 = sshll.u32 %s888_s25, 4  ;;  %s10617_s25 = sld [smem:[#allocation49_spill]]  ;;  %vm10125_vm12 = vmpackc.low %vm2277_vm11, %vm2277_vm11  ;;  %vm2897_vm14 = vcmask 392448   ;;  %vm3110_vm15 = vcmask 523648   ;;  %vm3323_vm0 = vcmask 654848   ;;  %vm3536_vm1 = vcmask 786048  }
 0x19b   : > { %v909_v1 = vld [vmem:[%s10613_s1] sm:$0xff]  ;;  %v910_v3 = vld [vmem:[%s10613_s1 + $0x8] sm:$0xff]  ;;  %s9323_s27 = smov 112   ;;  %s9325_s4 = smov 80  }
 0x19c   : > { %v895_v2 = vld [vmem:[%s10614_s26] sm:$0xff]  ;;  %913 = vperm.xlu1 %8461, %v909_v1   ;;  %v896_v4 = vld [vmem:[%s10614_s26 + $0x8] sm:$0xff]  ;;  %v7152_v46 = vld [vmem:[%s10615_s11 + $0x10] sm:$0xf]  ;;  %s9327_s3 = smov 48   ;;  %s9329_s23 = smov 16  }
 0x19d   : > { %899 = vperm.xlu0 %8460, %v895_v2   ;;  %v931_v7 = vld [vmem:[%s10615_s11] sm:$0xf]  ;;  %v7145_v11 = vld [vmem:[%s10615_s11 + $0x4] sm:$0xf]  ;;  %s891_s0 = scalar_lea.vmem %s10616_s8, %s7566_s7  ;;  %v7150_v23 = vld [vmem:[%s10615_s11 + $0xc] sm:$0xf]  ;;  %v1171_v49 = vand.u32 %v7152_v46, %v9841_v8 }
 0x19e   : > { %v1000_v9 = vand.u32 %v9841_v8, %v931_v7  ;;  %v954_v12 = vand.u32 %v7145_v11, %v9841_v8  ;;  %v893_v13 = vld [vmem:[%s891_s0] sm:$0xff]  ;;  %v894_v16 = vld [vmem:[%s891_s0 + $0x8] sm:$0xff]  ;;  %v1116_v26 = vand.u32 %v7150_v23, %v9841_v8  ;;  %s10623_s13 = sld [smem:[#allocation37_spill]]  ;;  %s10624_s24 = sld [smem:[#allocation42_spill]] }
 0x19f   : > { %v7148_v33 = vld [vmem:[%s10615_s11 + $0x8] sm:$0xf] }
 0x1a0   : > { %918 = vperm.xlu1 %8461, %v910_v3   ;;  %7891 = vmatpush3.bf16.msra.mxu1 %v1000_v9  ;;  %v1055_v41 = vand.u32 %v7148_v33, %v9841_v8  ;;  %s10618_s7 = smov %s10617_s25  ;;  %v8532_v54 = vld [vmem:[%s10617_s25] sm:$0xff]   ;;  %s9328_s25 = smov 32  }
 0x1a1   : > { %904 = vperm.xlu0 %8460, %v896_v4   ;;  %7902 = vmatprep.subr.bf16.mxu1 %v9321_v10  ;;  %v8533_v55 = vld [vmem:[%s10618_s7 + $0x8] sm:$0xff]   ;;  %v8534_v56 = vld [vmem:[%s10618_s7 + $0x10] sm:$0xff]   ;;  %v8536_v57 = vld [vmem:[%s10618_s7 + $0x18] sm:$0xff]  }
 0x1a2   : > { %7885 = vmatpush3.bf16.msra.mxu0 %v954_v12  ;;  %v8538_v46 = vld [vmem:[%s10618_s7 + $0x20] sm:$0xff]  }
 0x1a3   : > { %7896 = vmatprep.subr.bf16.mxu0 %v9321_v10 }
 0x1a4   : > { %s885_s28 = sand.u32 1, %s10623_s13   ;;  %p10627_p9 = scmp.ne.s32.totalorder %s10624_s24, 0 }
 0x1a5   : > { %s6908_s8 = scalar_lea.sflag [#allocation5], %s885_s28 }
 0x21b   : > { %v914_v14 = vpop.permute.xlu1 %913 }
 0x21c   : > { %v900_v15 = vpop.permute.xlu0 %899 }
 0x21d   : > { %v907_v17 = vmul.f32 %v900_v15, %v893_v13 }
 0x21f   : > { %v919_v20 = vpop.permute.xlu1 %918  ;;  %v921_v21 = vadd.f32 %v914_v14, %v907_v17 }
 0x220   : > { %v905_v18 = vpop.permute.xlu0 %904 }
 0x221   : > { %v908_v19 = vmul.f32 %v905_v18, %v894_v16 }
 0x223   : > { %v922_v22 = vadd.f32 %v919_v20, %v908_v19  ;;  %v7154_v19 = vld [vmem:[%s10619_s2] ss:$0 sm:$0xff]  ;;  %s9324_s2 = smov 96  }
 0x225   : > { %v923_v24 = vpack.c.bf16 %v922_v22, %v921_v21 }
 0x227   : > { %v925_v25 = vrot.slane %v923_v24, 7 }
 0x229   : > { %v930_v27 = vsel %vm926_vm3, %v925_v25, 0  ;;  %v929_v28 = vsel %vm926_vm3, 0, %v925_v25 }
 0x22a   : > { %v1106_v29 = vshrl.u32 %v930_v27, 16  ;;  %7893 = vmatmul.mubr.msk.bf16.vlgmr.msra.gmra.mrb[0].mxu1 %vm945_vm4, %v929_v28  ;;  %v935_v30 = vshrl.u32 %v929_v28, 16  ;;  %v937_v31 = vshll.u32 %v929_v28, 16  ;;  %v941_v32 = vshll.u32 %v930_v27, 16 }
 0x22b   : > { %7903 = vmatpush3.bf16.msra.mxu1 %v1116_v26  ;;  %7904 = vmatprep.mubr.msk.bf16.mxu1 %vm9322_vm2, %v9321_v10  ;;  %v1048_v47 = vrot.slane %v929_v28, 1  ;;  %v1049_v48 = vrot.slane %v930_v27, 1  ;;  %v1164_v51 = vrot.slane %v929_v28, 2  ;;  %v1165_v52 = vrot.slane %v930_v27, 2 }
 0x22c   : > { %v1108_v34 = vrot.slane %v1106_v29, 1  ;;  %v939_v35 = vrot.slane %v937_v31, 1  ;;  %v1103_v36 = vrot.slane %v935_v30, 1  ;;  %7914 = vmatprep.subr.bf16.mxu1 %v9321_v10  ;;  %v1109_v37 = vrot.slane %v941_v32, 2 }
 0x22d   : > { %v1104_v38 = vrot.slane %v937_v31, 2  ;;  %v943_v40 = vrot.slane %v941_v32, 1  ;;  %v1050_v50 = vsel %vm1047_vm7, %v1048_v47, %v1049_v48  ;;  %v1166_v53 = vsel %vm1163_vm8, %v1164_v51, %v1165_v52  ;;  %v8535_v31 = vld [vmem:[%s10618_s7 + $0x30] sm:$0xff]   ;;  %v8539_v51 = vld [vmem:[%s10618_s7 + $0x28] sm:$0xff]  }
 0x22e   : > { %v940_v39 = vor.u32 %v939_v35, %v935_v30  ;;  %v1110_v43 = vor.u32 %v1109_v37, %v1108_v34 }
 0x22f   : > { %v1105_v42 = vor.u32 %v1104_v38, %v1103_v36  ;;  %v8537_v38 = vld [vmem:[%s10618_s7 + $0x38] sm:$0xff]  }
 0x230   : > { %v944_v44 = vsel %vm934_vm5, %v940_v39, %v943_v40 }
 0x231   : > { %7887 = vmatmul.mubr.msk.bf16.vlgmr.msra.gmra.mrb[0].mxu0 %vm945_vm4, %v944_v44  ;;  %v1111_v45 = vsel %vm1102_vm6, %v1105_v42, %v1110_v43 }
 0x232   : > { %7897 = vmatpush3.bf16.msra.mxu0 %v1055_v41  ;;  %7905 = vmatmul.mubr.msk.bf16.vlgmr.msra.gmra.mrb[4].mxu1 %vm945_vm4, %v1111_v45 }
 0x233   : > { %7898 = vmatprep.mubr.msk.bf16.mxu0 %vm9322_vm2, %v9321_v10  ;;  %7908 = vmatprep.subr.bf16.mxu0 %v9321_v10 }
 0x234   : > { %7918 = vmatprep.mubr.msk.bf16.mxu1 %vm9322_vm2, %v9321_v10  ;;  %7915 = vmatpush3.bf16.msra.mxu1 %v8534_v56  ;;  %v8541_v56 = vld [vmem:[%s10618_s7 + $0x48] sm:$0xff]  }
 0x235   : > { %7916 = vmatprep.subr.bf16.mxu1 %v9321_v10 }
 0x238   : > { %7917 = vmatpush3.bf16.msra.mxu1 %v8536_v57 }
 0x239   : > { %7899 = vmatmul.mubr.msk.bf16.vlgmr.msra.gmra.mrb[4].mxu0 %vm945_vm4, %v1050_v50  ;;  %7930 = vmatprep.subr.bf16.mxu1 %v9321_v10 }
 0x23a   : > { %7909 = vmatpush3.bf16.msra.mxu0 %v1171_v49  ;;  %7910 = vmatprep.mubr.msk.bf16.mxu0 %vm9322_vm2, %v9321_v10 }
 0x23b   : > { %7922 = vmatprep.subr.bf16.mxu0 %v9321_v10 }
 0x241   : > { %7911 = vmatmul.mubr.msk.bf16.vlgmr.msra.gmra.mrb[8].mxu0 %vm945_vm4, %v1166_v53  ;;  %vm3962_vm4 = vcmask 1048448  }
 0x242   : > { %7926 = vmatprep.mubr.msk.bf16.mxu0 %vm9322_vm2, %v9321_v10  ;;  %7923 = vmatpush3.bf16.msra.mxu0 %v8532_v54  ;;  %v8540_v54 = vld [vmem:[%s10618_s7 + $0x40] sm:$0xff]  }
 0x243   : > { %7924 = vmatprep.subr.bf16.mxu0 %v9321_v10 }
 0x246   : > { %7925 = vmatpush3.bf16.msra.mxu0 %v8533_v55 }
 0x247   : > { %7938 = vmatprep.subr.bf16.mxu0 %v9321_v10 }
 0x2fd   : > { %v1036_v58 = vpop.f32.mrb[0].mxu1 }
 0x2fe   : > { %v7894_v59 = vpop.f32.mrb[1].mxu1 }
 0x2ff   : > { %v1039_v60 = vpop.f32.mrb[2].mxu1 }
 0x300   : > { %v7895_v61 = vpop.f32.mrb[3].mxu1 }
 0x301   : > { %v8543_v61 = vld [vmem:[#allocation3 + $0x8] sm:$0xff]  }
 0x304   : > { %v990_v62 = vpop.f32.mrb[0].mxu0 }
 0x305   : > { %v1037_v63 = vadd.f32 %v1036_v58, %v990_v62  ;;  %v7888_v1 = vpop.f32.mrb[1].mxu0  ;;  %v1152_v2 = vpop.f32.mrb[4].mxu1  ;;  %v8544_v62 = vld [vmem:[#allocation3 + $0x20] sm:$0xff]  }
 0x306   : > { %v993_v3 = vpop.f32.mrb[2].mxu0  ;;  %v7906_v4 = vpop.f32.mrb[5].mxu1  ;;  %v8546_v1 = vld [vmem:[#allocation3 + $0x28] sm:$0xff]  }
 0x307   : > { %v1040_v5 = vadd.f32 %v1039_v60, %v993_v3  ;;  %v7889_v6 = vpop.f32.mrb[3].mxu0  ;;  %v1155_v7 = vpop.f32.mrb[6].mxu1  ;;  %v8542_v60 = vld [vmem:[#allocation3] sm:$0xff]   ;;  %v8548_v3 = vld [vmem:[#allocation3 + $0x30] sm:$0xff]   ;;  %v8550_v4 = vld [vmem:[#allocation3 + $0x38] sm:$0xff]  }
 0x308   : > { %v7907_v8 = vpop.f32.mrb[7].mxu1 }
 0x30c   : > { %v1091_v9 = vpop.f32.mrb[4].mxu0 }
 0x30d   : > { %v1098_v11 = vadd.f32 %v1091_v9, %v1037_v63  ;;  %v7900_v12 = vpop.f32.mrb[5].mxu0  ;;  %v8545_v63 = vld [vmem:[#allocation3 + $0x10] sm:$0xff]  }
 0x30e   : > { %v1094_v13 = vpop.f32.mrb[6].mxu0 }
 0x30f   : > { %v1099_v14 = vadd.f32 %v1094_v13, %v1040_v5  ;;  %v7901_v15 = vpop.f32.mrb[7].mxu0  ;;  %v1159_v16 = vadd.f32 %v1152_v2, %v1098_v11  ;;  %v8547_v2 = vld [vmem:[#allocation3 + $0x18] sm:$0xff]  }
 0x311   : > { %v1160_v17 = vadd.f32 %v1155_v7, %v1099_v14 }
 0x314   : > { %v1207_v18 = vpop.f32.mrb[8].mxu0 }
 0x315   : > { %v1214_v20 = vadd.f32 %v1207_v18, %v1159_v16  ;;  %v7912_v21 = vpop.f32.mrb[9].mxu0 }
 0x316   : > { %v1210_v22 = vpop.f32.mrb[10].mxu0 }
 0x317   : > { %v1223_v23 = vadd.f32 %v7154_v19, %v1214_v20  ;;  %v1215_v24 = vadd.f32 %v1210_v22, %v1160_v17  ;;  %v7913_v25 = vpop.f32.mrb[11].mxu0 }
 0x319   : > { %v1224_v26 = vadd.f32 %v7154_v19, %v1215_v24  ;;  %v1225_v27 = vmax.f32 %v1223_v23, 0.0 }
 0x31b   : > { %v1226_v28 = vmax.f32 %v1224_v26, 0.0 }
 0x31d   : > { %v1227_v29 = vpack.c.bf16 %v1226_v28, %v1225_v27 }
 0x31f   : > { %v1229_v30 = vrot.slane %v1227_v29, 7  ;;  %v7186_v29 = vld [vmem:[%s10620_s30] ss:$0 sm:$0xff]  ;;  %s9326_s30 = smov 64  }
 0x321   : > { %v1232_v32 = vsel %vm926_vm3, %v1229_v30, 0  ;;  %v1231_v33 = vsel %vm926_vm3, 0, %v1229_v30 }
 0x322   : > { %v1248_v34 = vshll.u32 %v1232_v32, 16  ;;  %v1440_v35 = vshrl.u32 %v1232_v32, 16  ;;  %v1242_v36 = vshrl.u32 %v1231_v33, 16  ;;  %v1244_v37 = vshll.u32 %v1231_v33, 16  ;;  %7927 = vmatmul.mubr.msk.bf16.vlgmr.msra.gmra.mrb[12].mxu0 %vm1264_vm9, %v1231_v33 }
 0x323   : > { %7939 = vmatpush3.bf16.msra.mxu0 %v8535_v31  ;;  %7942 = vmatprep.mubr.msk.bf16.mxu0 %vm9322_vm2, %v9321_v10  ;;  %v1371_v52 = vrot.slane %v1231_v33, 1  ;;  %v1372_v53 = vrot.slane %v1232_v32, 1  ;;  %v1509_v57 = vrot.slane %v1231_v33, 2  ;;  %v1510_v58 = vrot.slane %v1232_v32, 2 }
 0x324   : > { %v1442_v39 = vrot.slane %v1440_v35, 1  ;;  %7940 = vmatprep.subr.bf16.mxu0 %v9321_v10  ;;  %v1246_v40 = vrot.slane %v1244_v37, 1  ;;  %v1437_v41 = vrot.slane %v1242_v36, 1  ;;  %v1438_v42 = vrot.slane %v1244_v37, 2 }
 0x325   : > { %v1443_v43 = vrot.slane %v1248_v34, 2  ;;  %v1250_v45 = vrot.slane %v1248_v34, 1  ;;  %v1373_v55 = vsel %vm1047_vm7, %v1371_v52, %v1372_v53  ;;  %v1511_v59 = vsel %vm1163_vm8, %v1509_v57, %v1510_v58  ;;  %v8552_v52 = vld [vmem:[#allocation3 + $0x40] sm:$0xff]   ;;  %v8553_v53 = vld [vmem:[#allocation3 + $0x70] sm:$0xff]  }
 0x326   : > { %v1247_v44 = vor.u32 %v1246_v40, %v1242_v36  ;;  %v1439_v47 = vor.u32 %v1438_v42, %v1437_v41  ;;  %v8549_v41 = vld [vmem:[#allocation3 + $0x60] sm:$0xff]  }
 0x327   : > { %7941 = vmatpush3.bf16.msra.mxu0 %v8537_v38  ;;  %v1444_v48 = vor.u32 %v1443_v43, %v1442_v39 }
 0x328   : > { %v1251_v49 = vsel %vm934_vm5, %v1247_v44, %v1250_v45  ;;  %7954 = vmatprep.subr.bf16.mxu0 %v9321_v10 }
 0x329   : > { %7919 = vmatmul.mubr.msk.bf16.vlgmr.msra.gmra.mrb[8].mxu1 %vm1264_vm9, %v1251_v49  ;;  %v1445_v50 = vsel %vm1102_vm6, %v1439_v47, %v1444_v48 }
 0x32a   : > { %7931 = vmatpush3.bf16.msra.mxu1 %v8538_v46  ;;  %7943 = vmatmul.mubr.msk.bf16.vlgmr.msra.gmra.mrb[16].mxu0 %vm1264_vm9, %v1445_v50  ;;  %v8551_v46 = vld [vmem:[#allocation3 + $0x68] sm:$0xff]  }
 0x32b   : > { %7932 = vmatprep.subr.bf16.mxu1 %v9321_v10  ;;  %7934 = vmatprep.mubr.msk.bf16.mxu1 %vm9322_vm2, %v9321_v10 }
 0x32c   : > { %7962 = vmatprep.mubr.msk.bf16.mxu0 %vm9322_vm2, %v9321_v10  ;;  %7955 = vmatpush3.bf16.msra.mxu0 %v8544_v62 }
 0x32d   : > { %7956 = vmatprep.subr.bf16.mxu0 %v9321_v10 }
 0x32e   : > { %7933 = vmatpush3.bf16.msra.mxu1 %v8539_v51 }
 0x32f   : > { %7946 = vmatprep.subr.bf16.mxu1 %v9321_v10 }
 0x330   : > { %7957 = vmatpush3.bf16.msra.mxu0 %v8546_v1 }
 0x331   : > { %7935 = vmatmul.mubr.msk.bf16.vlgmr.msra.gmra.mrb[12].mxu1 %vm1264_vm9, %v1373_v55  ;;  %7958 = vmatprep.subr.bf16.mxu0 %v9321_v10 }
 0x332   : > { %7947 = vmatpush3.bf16.msra.mxu1 %v8540_v54  ;;  %7950 = vmatprep.mubr.msk.bf16.mxu1 %vm9322_vm2, %v9321_v10 }
 0x333   : > { %7948 = vmatprep.subr.bf16.mxu1 %v9321_v10 }
 0x334   : > { %7959 = vmatpush3.bf16.msra.mxu0 %v8548_v3 }
 0x335   : > { %7960 = vmatprep.subr.bf16.mxu0 %v9321_v10 }
 0x336   : > { %7949 = vmatpush3.bf16.msra.mxu1 %v8541_v56 }
 0x337   : > { %7966 = vmatprep.subr.bf16.mxu1 %v9321_v10 }
 0x338   : > { %7961 = vmatpush3.bf16.msra.mxu0 %v8550_v4 }
 0x339   : > { %7951 = vmatmul.mubr.msk.bf16.vlgmr.msra.gmra.mrb[16].mxu1 %vm1264_vm9, %v1511_v59  ;;  %7978 = vmatprep.subr.bf16.mxu0 %v9321_v10  ;;  %v8554_v59 = vld [vmem:[#allocation3 + $0x48] sm:$0xff]  }
 0x33a   : > { %7974 = vmatprep.mubr.msk.bf16.mxu1 %vm9322_vm2, %v9321_v10  ;;  %7967 = vmatpush3.bf16.msra.mxu1 %v8542_v60  ;;  %v8555_v60 = vld [vmem:[#allocation3 + $0x78] sm:$0xff]  }
 0x33b   : > { %7968 = vmatprep.subr.bf16.mxu1 %v9321_v10 }
 0x33e   : > { %7969 = vmatpush3.bf16.msra.mxu1 %v8543_v61 }
 0x33f   : > { %7970 = vmatprep.subr.bf16.mxu1 %v9321_v10 }
 0x342   : > { %7971 = vmatpush3.bf16.msra.mxu1 %v8545_v63  ;;  %v8556_v63 = vld [vmem:[#allocation3 + $0x50] sm:$0xff]  }
 0x343   : > { %7972 = vmatprep.subr.bf16.mxu1 %v9321_v10 }
 0x346   : > { %7973 = vmatpush3.bf16.msra.mxu1 %v8547_v2  ;;  %v8557_v2 = vld [vmem:[#allocation3 + $0x58] sm:$0xff]  }
 0x347   : > { %7990 = vmatprep.subr.bf16.mxu1 %v9321_v10 }
 0x3f5   : > { %v1357_v5 = vpop.f32.mrb[12].mxu0 }
 0x3f6   : > { %v7928_v6 = vpop.f32.mrb[13].mxu0 }
 0x3f7   : > { %v1360_v7 = vpop.f32.mrb[14].mxu0 }
 0x3f8   : > { %v7929_v8 = vpop.f32.mrb[15].mxu0 }
 0x3f9   : > { %v8560_v8 = vld [vmem:[#allocation3 + $0x90] sm:$0xff]  }
 0x3fc   : > { %v1302_v9 = vpop.f32.mrb[8].mxu1 }
 0x3fd   : > { %v1358_v11 = vadd.f32 %v1357_v5, %v1302_v9  ;;  %v7920_v12 = vpop.f32.mrb[9].mxu1  ;;  %v1495_v13 = vpop.f32.mrb[16].mxu0  ;;  %v8558_v5 = vld [vmem:[#allocation3 + $0x80] sm:$0xff]   ;;  %v8561_v9 = vld [vmem:[#allocation3 + $0x98] sm:$0xff]  }
 0x3fe   : > { %v1305_v14 = vpop.f32.mrb[10].mxu1  ;;  %v7944_v15 = vpop.f32.mrb[17].mxu0 }
 0x3ff   : > { %v1361_v16 = vadd.f32 %v1360_v7, %v1305_v14  ;;  %v7921_v17 = vpop.f32.mrb[11].mxu1  ;;  %v1498_v18 = vpop.f32.mrb[18].mxu0  ;;  %v8559_v7 = vld [vmem:[#allocation3 + $0x88] sm:$0xff]   ;;  %v8564_v14 = vld [vmem:[%s10529_s9 + $0x4] ss:$12 sps:$4 sm:$0xff]  }
 0x400   : > { %v7945_v19 = vpop.f32.mrb[19].mxu0  ;;  %v8562_v15 = vld [vmem:[%s10529_s9] ss:$12 sps:$4 sm:$0xff]   ;;  %v8566_v17 = vld [vmem:[%s10529_s9 + $0x18] ss:$12 sps:$4 sm:$0xff]  }
 0x401   : > { %v8569_v19 = vld [vmem:[%s10529_s9 + $0x20] ss:$12 sps:$4 sm:$0xff]  }
 0x404   : > { %v1423_v20 = vpop.f32.mrb[12].mxu1 }
 0x405   : > { %v1430_v21 = vadd.f32 %v1423_v20, %v1358_v11  ;;  %v7936_v22 = vpop.f32.mrb[13].mxu1  ;;  %v8572_v20 = vld [vmem:[%s10529_s9 + $0x34] ss:$12 sps:$4 sm:$0xff]  }
 0x406   : > { %v1426_v23 = vpop.f32.mrb[14].mxu1  ;;  %v8573_v22 = vld [vmem:[%s10529_s9 + $0x38] ss:$12 sps:$4 sm:$0xff]  }
 0x407   : > { %v1431_v24 = vadd.f32 %v1426_v23, %v1361_v16  ;;  %v7937_v25 = vpop.f32.mrb[15].mxu1  ;;  %v1502_v26 = vadd.f32 %v1495_v13, %v1430_v21  ;;  %v8565_v16 = vld [vmem:[%s10529_s9 + $0x8] ss:$12 sps:$4 sm:$0xff]   ;;  %v8570_v21 = vld [vmem:[%s10529_s9 + $0x30] ss:$12 sps:$4 sm:$0xff]  }
 0x408   : > { %v8576_v23 = vld [vmem:[%s10529_s9 + $0x4c] ss:$12 sps:$4 sm:$0xff]   ;;  %v8577_v25 = vld [vmem:[%s10529_s9 + $0x50] ss:$12 sps:$4 sm:$0xff]  }
 0x409   : > { %v1503_v27 = vadd.f32 %v1498_v18, %v1431_v24  ;;  %v8568_v18 = vld [vmem:[%s10529_s9 + $0x1c] ss:$12 sps:$4 sm:$0xff]  }
 0x40a   : > { %v8574_v24 = vld [vmem:[%s10529_s9 + $0x48] ss:$12 sps:$4 sm:$0xff]  }
 0x40c   : > { %v1561_v28 = vpop.f32.mrb[16].mxu1 }
 0x40d   : > { %v1568_v30 = vadd.f32 %v1561_v28, %v1502_v26  ;;  %v7952_v31 = vpop.f32.mrb[17].mxu1  ;;  %v8580_v26 = vld [vmem:[%s10529_s9 + $0x64] ss:$12 sps:$4 sm:$0xff]   ;;  %v8581_v28 = vld [vmem:[%s10529_s9 + $0x68] ss:$12 sps:$4 sm:$0xff]  }
 0x40e   : > { %v1564_v32 = vpop.f32.mrb[18].mxu1  ;;  %v8585_v31 = vld [vmem:[%s10529_s9 + $0x80] ss:$12 sps:$4 sm:$0xff]  }
 0x40f   : > { %v1577_v33 = vadd.f32 %v7186_v29, %v1568_v30  ;;  %v1569_v34 = vadd.f32 %v1564_v32, %v1503_v27  ;;  %v7953_v35 = vpop.f32.mrb[19].mxu1  ;;  %v8578_v27 = vld [vmem:[%s10529_s9 + $0x60] ss:$12 sps:$4 sm:$0xff]   ;;  %v8582_v30 = vld [vmem:[%s10529_s9 + $0x78] ss:$12 sps:$4 sm:$0xff]  }
 0x410   : > { %v8588_v32 = vld [vmem:[%s10529_s9 + $0x94] ss:$12 sps:$4 sm:$0xff]   ;;  %v8592_v35 = vld [vmem:[%s10529_s9 + $0xac] ss:$12 sps:$4 sm:$0xff]  }
 0x411   : > { %v1578_v36 = vadd.f32 %v7186_v29, %v1569_v34  ;;  %v1579_v37 = vmax.f32 %v1577_v33, 0.0  ;;  %v8584_v29 = vld [vmem:[%s10529_s9 + $0x7c] ss:$12 sps:$4 sm:$0xff]   ;;  %v8589_v34 = vld [vmem:[%s10529_s9 + $0x98] ss:$12 sps:$4 sm:$0xff]  }
 0x412   : > { %v8586_v33 = vld [vmem:[%s10529_s9 + $0x90] ss:$12 sps:$4 sm:$0xff]  }
 0x413   : > { %v1580_v38 = vmax.f32 %v1578_v36, 0.0  ;;  %v8590_v36 = vld [vmem:[%s10529_s9 + $0xa8] ss:$12 sps:$4 sm:$0xff]  }
 0x415   : > { %v1581_v39 = vpack.c.bf16 %v1580_v38, %v1579_v37  ;;  %v8593_v37 = vld [vmem:[%s10529_s9 + $0xb0] ss:$12 sps:$4 sm:$0xff]  }
 0x417   : > { %v1583_v40 = vrot.slane %v1581_v39, 7 }
 0x419   : > { %v9973_v42 = vsel %vm926_vm3, %v1583_v40, 0  ;;  %v9976_v43 = vsel %vm926_vm3, 0, %v1583_v40  ;;  %vm3749_vm3 = vcmask 917248  }
 0x41a   : > { %v1610_v44 = vshll.u32 %v9973_v42, 16  ;;  %v1606_v45 = vshll.u32 %v9976_v43, 16  ;;  %7975 = vmatmul.mubr.msk.bf16.vlgmr.msra.gmra.mrb[20].mxu1 %vm1638_vm10, %v9976_v43  ;;  %v1604_v47 = vshrl.u32 %v9976_v43, 16  ;;  %v1846_v49 = vshrl.u32 %v9973_v42, 16 }
 0x41b   : > { %7991 = vmatpush3.bf16.msra.mxu1 %v8549_v41  ;;  %7998 = vmatprep.mubr.msk.bf16.mxu1 %vm9322_vm2, %v9321_v10  ;;  %v1761_v3 = vrot.slane %v9976_v43, 1  ;;  %v1762_v4 = vrot.slane %v9973_v42, 1  ;;  %v1931_v11 = vrot.slane %v9976_v43, 2  ;;  %v1932_v12 = vrot.slane %v9973_v42, 2 }
 0x41c   : > { %7992 = vmatprep.subr.bf16.mxu1 %v9321_v10  ;;  %v1608_v48 = vrot.slane %v1606_v45, 1  ;;  %v1612_v51 = vrot.slane %v1610_v44, 1  ;;  %v1848_v55 = vrot.slane %v1846_v49, 1  ;;  %v1843_v56 = vrot.slane %v1604_v47, 1 }
 0x41d   : > { %v1844_v57 = vrot.slane %v1606_v45, 2  ;;  %v1849_v58 = vrot.slane %v1610_v44, 2  ;;  %v1763_v6 = vsel %vm1047_vm7, %v1761_v3, %v1762_v4  ;;  %v1933_v13 = vsel %vm1163_vm8, %v1931_v11, %v1932_v12 }
 0x41e   : > { %v1609_v50 = vor.u32 %v1608_v48, %v1604_v47 }
 0x41f   : > { %7993 = vmatpush3.bf16.msra.mxu1 %v8551_v46  ;;  %v1845_v61 = vor.u32 %v1844_v57, %v1843_v56  ;;  %v1850_v62 = vor.u32 %v1849_v58, %v1848_v55 }
 0x420   : > { %v1613_v54 = vsel %vm934_vm5, %v1609_v50, %v1612_v51  ;;  %7994 = vmatprep.subr.bf16.mxu1 %v9321_v10 }
 0x421   : > { %7963 = vmatmul.mubr.msk.bf16.vlgmr.msra.gmra.mrb[20].mxu0 %vm1638_vm10, %v1613_v54  ;;  %v1851_v1 = vsel %vm1102_vm6, %v1845_v61, %v1850_v62  ;;  %v7212_v61 = vld [vmem:[#allocation6] ss:$0 sm:$0xff] }
 0x422   : > { %7979 = vmatpush3.bf16.msra.mxu0 %v8552_v52  ;;  %7986 = vmatprep.mubr.msk.bf16.mxu0 %vm9322_vm2, %v9321_v10 }
 0x423   : > { %7995 = vmatpush3.bf16.msra.mxu1 %v8553_v53  ;;  %7980 = vmatprep.subr.bf16.mxu0 %v9321_v10 }
 0x424   : > { %7996 = vmatprep.subr.bf16.mxu1 %v9321_v10 }
 0x426   : > { %7981 = vmatpush3.bf16.msra.mxu0 %v8554_v59 }
 0x427   : > { %7997 = vmatpush3.bf16.msra.mxu1 %v8555_v60  ;;  %7982 = vmatprep.subr.bf16.mxu0 %v9321_v10 }
 0x428   : > { %2193 = vmatprep.subr.bf16.mxu1 %v8564_v14 }
 0x42a   : > { %7983 = vmatpush3.bf16.msra.mxu0 %v8556_v63  ;;  %7999 = vmatmul.mubr.msk.bf16.vlgmr.msra.gmra.mrb[24].mxu1 %vm1638_vm10, %v1851_v1 }
 0x42b   : > { %7984 = vmatprep.subr.bf16.mxu0 %v9321_v10  ;;  %2225 = vmatprep.mubr.bf16.mxu1 %v9319_v0 }
 0x42c   : > { %2194 = vmatpush1.bf16.msra.mxu1 %v8562_v15 }
 0x42d   : > { %2195 = vmatprep.subr.bf16.mxu1 %v8568_v18 }
 0x42e   : > { %7985 = vmatpush3.bf16.msra.mxu0 %v8557_v2 }
 0x42f   : > { %8002 = vmatprep.subr.bf16.mxu0 %v9321_v10 }
 0x430   : > { %2196 = vmatpush1.bf16.msra.mxu1 %v8566_v17 }
 0x431   : > { %7987 = vmatmul.mubr.msk.bf16.vlgmr.msra.gmra.mrb[24].mxu0 %vm1638_vm10, %v1763_v6  ;;  %2197 = vmatprep.subr.bf16.mxu1 %v8572_v20 }
 0x432   : > { %8003 = vmatpush3.bf16.msra.mxu0 %v8558_v5  ;;  %8010 = vmatprep.mubr.msk.bf16.mxu0 %vm9322_vm2, %v9321_v10 }
 0x433   : > { %8004 = vmatprep.subr.bf16.mxu0 %v9321_v10 }
 0x434   : > { %2198 = vmatpush1.bf16.msra.mxu1 %v8570_v21 }
 0x435   : > { %2199 = vmatprep.subr.bf16.mxu1 %v8576_v23 }
 0x436   : > { %8005 = vmatpush3.bf16.msra.mxu0 %v8559_v7 }
 0x437   : > { %8006 = vmatprep.subr.bf16.mxu0 %v9321_v10 }
 0x438   : > { %2200 = vmatpush1.bf16.msra.mxu1 %v8574_v24 }
 0x439   : > { %2201 = vmatprep.subr.bf16.mxu1 %v8580_v26 }
 0x43a   : > { %8007 = vmatpush3.bf16.msra.mxu0 %v8560_v8 }
 0x43b   : > { %8008 = vmatprep.subr.bf16.mxu0 %v9321_v10 }
 0x43c   : > { %2202 = vmatpush1.bf16.msra.mxu1 %v8578_v27 }
 0x43d   : > { %2203 = vmatprep.subr.bf16.mxu1 %v8584_v29 }
 0x43e   : > { %8009 = vmatpush3.bf16.msra.mxu0 %v8561_v9  ;;  %v2050_v9 = vlaneseq }
 0x43f   : > { %8014 = vmatprep.subr.bf16.mxu0 %v9321_v10 }
 0x440   : > { %2204 = vmatpush1.bf16.msra.mxu1 %v8582_v30  ;;  %v10105_v11 = vshrl.u32 %v2050_v9, 7 }
 0x441   : > { %8011 = vmatmul.mubr.msk.bf16.vlgmr.msra.gmra.mrb[28].mxu0 %vm1638_vm10, %v1933_v13  ;;  %2205 = vmatprep.subr.bf16.mxu1 %v8588_v32  ;;  %v2048_v13 = vld [vmem:[#allocation8] sm:$0x7] }
 0x442   : > { %8030 = vmatprep.mubr.msk.bf16.mxu0 %vm9322_vm2, %v9321_v10  ;;  %8015 = vmatpush3.bf16.msra.mxu0 %v8565_v16  ;;  %v10108_v12 = vsub.s32 0, %v10105_v11  ;;  %v10111_v14 = vsub.s32 2, %v10105_v11  ;;  %v10114_v15 = vsub.s32 1, %v10105_v11 }
 0x443   : > { %8016 = vmatprep.subr.bf16.mxu0 %v9321_v10 }
 0x444   : > { %2206 = vmatpush1.bf16.msra.mxu1 %v8586_v33  ;;  %v2053_v16 = vrot.slane %v2048_v13, %v10108_v12  ;;  %v2061_v17 = vrot.slane %v2048_v13, %v10111_v14  ;;  %v2057_v20 = vrot.slane %v2048_v13, %v10114_v15 }
 0x445   : > { %2207 = vmatprep.subr.bf16.mxu1 %v8592_v35 }
 0x446   : > { %8017 = vmatpush3.bf16.msra.mxu0 %v8569_v19 }
 0x447   : > { %8018 = vmatprep.subr.bf16.mxu0 %v9321_v10 }
 0x448   : > { %2208 = vmatpush1.bf16.msra.mxu1 %v8590_v36 }
 0x44a   : > { %8019 = vmatpush3.bf16.msra.mxu0 %v8573_v22 }
 0x44b   : > { %8020 = vmatprep.subr.bf16.mxu0 %v9321_v10 }
 0x44e   : > { %8021 = vmatpush3.bf16.msra.mxu0 %v8577_v25 }
 0x44f   : > { %8022 = vmatprep.subr.bf16.mxu0 %v9321_v10 }
 0x452   : > { %8023 = vmatpush3.bf16.msra.mxu0 %v8581_v28 }
 0x453   : > { %8024 = vmatprep.subr.bf16.mxu0 %v9321_v10 }
 0x456   : > { %8025 = vmatpush3.bf16.msra.mxu0 %v8585_v31 }
 0x457   : > { %8026 = vmatprep.subr.bf16.mxu0 %v9321_v10 }
 0x45a   : > { %8027 = vmatpush3.bf16.msra.mxu0 %v8589_v34 }
 0x45b   : > { %8028 = vmatprep.subr.bf16.mxu0 %v9321_v10 }
 0x45e   : > { %8029 = vmatpush3.bf16.msra.mxu0 %v8593_v37 }
 0x4ed   : > { %v1743_v38 = vpop.f32.mrb[20].mxu1 }
 0x4ee   : > { %v7976_v39 = vpop.f32.mrb[21].mxu1 }
 0x4ef   : > { %v1746_v40 = vpop.f32.mrb[22].mxu1 }
 0x4f0   : > { %v7977_v41 = vpop.f32.mrb[23].mxu1 }
 0x4f4   : > { %v1676_v42 = vpop.f32.mrb[20].mxu0 }
 0x4f5   : > { %v1744_v43 = vadd.f32 %v1743_v38, %v1676_v42  ;;  %v7964_v44 = vpop.f32.mrb[21].mxu0 }
 0x4f6   : > { %v1679_v45 = vpop.f32.mrb[22].mxu0 }
 0x4f7   : > { %v1747_v46 = vadd.f32 %v1746_v40, %v1679_v45  ;;  %v7965_v47 = vpop.f32.mrb[23].mxu0 }
 0x4fd   : > { %v1913_v48 = vpop.f32.mrb[24].mxu1 }
 0x4fe   : > { %v8000_v49 = vpop.f32.mrb[25].mxu1 }
 0x4ff   : > { %v1916_v50 = vpop.f32.mrb[26].mxu1 }
 0x500   : > { %v8001_v51 = vpop.f32.mrb[27].mxu1 }
 0x504   : > { %v1825_v52 = vpop.f32.mrb[24].mxu0 }
 0x505   : > { %v1832_v53 = vadd.f32 %v1825_v52, %v1744_v43  ;;  %v7988_v54 = vpop.f32.mrb[25].mxu0 }
 0x506   : > { %v1828_v55 = vpop.f32.mrb[26].mxu0 }
 0x507   : > { %v1833_v56 = vadd.f32 %v1828_v55, %v1747_v46  ;;  %v7989_v57 = vpop.f32.mrb[27].mxu0  ;;  %v1920_v58 = vadd.f32 %v1913_v48, %v1832_v53 }
 0x509   : > { %v1921_v59 = vadd.f32 %v1916_v50, %v1833_v56 }
 0x514   : > { %v1995_v60 = vpop.f32.mrb[28].mxu0 }
 0x515   : > { %v2002_v62 = vadd.f32 %v1995_v60, %v1920_v58  ;;  %v8012_v63 = vpop.f32.mrb[29].mxu0 }
 0x516   : > { %v1998_v1 = vpop.f32.mrb[30].mxu0 }
 0x517   : > { %v10095_v2 = vadd.f32 %v7212_v61, %v2002_v62  ;;  %v2003_v3 = vadd.f32 %v1998_v1, %v1921_v59  ;;  %v8013_v4 = vpop.f32.mrb[31].mxu0 }
 0x519   : > { %v10097_v5 = vadd.f32 %v7212_v61, %v2003_v3  ;;  %v2013_v6 = vmax.f32 %v10095_v2, 0.0 }
 0x51b   : > { %v2014_v7 = vmax.f32 %v10097_v5, 0.0 }
 0x51d   : > { %v2015_v8 = vpack.c.bf16 %v2014_v7, %v2013_v6 }
 0x51f   : > { %2226 = vmatmul.mubr.bf16.vlgmr.msra.gmra.mrb[28].mxu1 %v2015_v8  ;;  %8031 = vmatmul.mubr.bf16.vlgmr.msra.gmra.mrb[32].mxu0 %v2015_v8 }
 0x5f2   : > { %v2227_v18 = vpop.f32.mrb[28].mxu1  ;;  %v2270_v19 = vpop.f32.mrb[32].mxu0 }
 0x5f3   : > { %v10119_v21 = vadd.f32 %v2227_v18, %v2053_v16  ;;  %v2229_v22 = vpop.f32.mrb[29].mxu1  ;;  %v8032_v23 = vpop.f32.mrb[33].mxu0  ;;  %v2271_v26 = vadd.f32 %v2270_v19, %v2061_v17 }
 0x5f4   : > { %v2231_v24 = vpop.f32.mrb[30].mxu1  ;;  %v2273_v25 = vpop.f32.mrb[34].mxu0  ;;  %v2230_v30 = vadd.f32 %v2229_v22, %v2057_v20 }
 0x5f5   : > { %v2274_v27 = vadd.f32 %v2273_v25, %v2061_v17  ;;  %v2233_v28 = vpop.f32.mrb[31].mxu1  ;;  %v8033_v29 = vpop.f32.mrb[35].mxu0  ;;  %8038 = vmatprep.mubr.msk.f32.mxu1 %vm2277_vm11, %v10119_v21  ;;  %v10137_v37 = vadd.f32 %v2231_v24, %v2053_v16 }
 0x5f6   : > { %v2234_v31 = vadd.f32 %v2233_v28, %v2057_v20 }
 0x5f7   : > { %v8192_v33 = vpack.c.bf16 %v2274_v27, %v2271_v26  ;;  %v10129_v34 = vpack.i.bf16 %v2274_v27, %v2271_v26 }
 0x5f8   : > { %v8186_v35 = vpack.c.bf16 %v2234_v31, %v2230_v30  ;;  %v10131_v36 = vpack.i.bf16 %v2234_v31, %v2230_v30 }
 0x5fa   : > { %8188 = vmatprep.subr.msk.bf16.mxu1 %vm10125_vm12, %v8186_v35 }
 0x5fb   : > { %8191 = vmatpush3.bf16.xpose.msk.msra.mxu1 %vm10125_vm12, %v8186_v35 }
 0x5fc   : > { %8193 = vmatprep.subr.bf16.mxu1 %v8192_v33 }
 0x602   : > { %8039 = vmatmul.mubr.msk.f32.vlgmr.msra.gmra.mrb[32].mxu1 %vm2277_vm11, %v10137_v37 }
 0x603   : > { %8195 = vmatpush3.bf16.msra.mxu1 %v8192_v33 }
 0x6d5   : > { %v8040_v38 = vpop.f32.mrb[32].mxu1 }
 0x6d6   : > { %v2366_v39 = vmul.f32 0.25, %v8040_v38  ;;  %v2356_v40 = vpop.f32.mrb[33].mxu1 }
 0x6d7   : > { %v2365_v41 = vmul.f32 0.25, %v2356_v40 }
 0x6d8   : > { %v2370_v42 = vsel %vm2277_vm11, %v2366_v39, -inf }
 0x6d9   : > { %2371 = vmax.xlane.f32.xlu1 %v2370_v42  ;;  %v2367_v43 = vsel %vm2277_vm11, %v2365_v41, -inf }
 0x6da   : > { %2368 = vmax.xlane.f32.xlu0 %v2367_v43 }
 0x6ea   : > { %8463 = vrot.lane.b32.xlu1 %v10131_v36, %s9323_s27 }
 0x6ee   : > { %8468 = vrot.lane.b32.xlu1 %v10131_v36, %s9324_s2 }
 0x6f2   : > { %2474 = vrot.lane.b32.xlu1 %v10137_v37, %s9323_s27 }
 0x6f6   : > { %2689 = vrot.lane.b32.xlu1 %v10137_v37, %s9324_s2 }
 0x766   : > { %v2372_v44 = vpop.xlane.xlu1 %2371 }
 0x767   : > { %v2374_v45 = vsub.f32 %v2366_v39, %v2372_v44  ;;  %v2369_v46 = vpop.xlane.xlu0 %2368 }
 0x768   : > { %v2373_v47 = vsub.f32 %v2365_v41, %v2369_v46 }
 0x769   : > { %v2377_v48 = vmul.f32 1.442695, %v2374_v45 }
 0x76a   : > { %v2375_v49 = vmul.f32 1.442695, %v2373_v47  ;;  %v8464_v50 = vpop.permute.xlu1 %8463 }
 0x76b   : > { %v8466_v51 = vunpack.i.h.bf16 %v8464_v50  ;;  %v8465_v52 = vunpack.i.l.bf16 %v8464_v50 }
 0x76c   : > { %8738 = vpow2.f32 %v2375_v49 }
 0x76d   : > { %v8196_v53 = vpack.c.bf16 %v8466_v51, %v8465_v52  ;;  %8740 = vpow2.f32 %v2377_v48 }
 0x76e   : > { %v8469_v61 = vpop.permute.xlu1 %8468 }
 0x76f   : > { %8198 = vmatprep.subr.msk.bf16.mxu1 %vm10125_vm12, %v8196_v53  ;;  %v8471_v63 = vunpack.i.h.bf16 %v8469_v61  ;;  %v8470_v1 = vunpack.i.l.bf16 %v8469_v61 }
 0x771   : > { %v8206_v8 = vpack.c.bf16 %v8471_v63, %v8470_v1 }
 0x772   : > { %v2475_v13 = vpop.permute.xlu1 %2474 }
 0x776   : > { %v8739_v54 = vpop.eup %8738  ;;  %v2690_v17 = vpop.permute.xlu1 %2689 }
 0x777   : > { %v2379_v55 = vsel %vm2277_vm11, %v8739_v54, 0.0  ;;  %v8741_v56 = vpop.eup %8740 }
 0x778   : > { %2380 = vadd.xlane.f32.xlu0 %v2379_v55  ;;  %v2382_v57 = vsel %vm2277_vm11, %v8741_v56, 0.0 }
 0x77c   : > { %2383 = vadd.xlane.f32.xlu0 %v2382_v57 }
 0x792   : > { %2472 = vrot.lane.b32.xlu0 %v10119_v21, %s9323_s27 }
 0x796   : > { %2687 = vrot.lane.b32.xlu0 %v10119_v21, %s9324_s2 }
 0x805   : > { %v2381_v58 = vpop.xlane.xlu0 %2380 }
 0x806   : > { %8742 = vrcp.f32 %v2381_v58 }
 0x809   : > { %v2384_v59 = vpop.xlane.xlu0 %2383 }
 0x80a   : > { %8744 = vrcp.f32 %v2384_v59 }
 0x80d   : > { %v2473_v9 = vpop.permute.xlu0 %2472 }
 0x810   : > { %v8743_v60 = vpop.eup %8742 }
 0x811   : > { %v2387_v62 = vmul.f32 %v8743_v60, %v8739_v54  ;;  %v2688_v16 = vpop.permute.xlu0 %2687 }
 0x813   : > { %8045 = vmatprep.mubr.msk.f32.mxu1 %vm2277_vm11, %v2387_v62 }
 0x814   : > { %v8745_v3 = vpop.eup %8744 }
 0x815   : > { %v2388_v4 = vmul.f32 %v8745_v3, %v8741_v56 }
 0x817   : > { %8046 = vmatmul.mubr.msk.f32.vlgmr.msra.gmra.mrb[34].mxu1 %vm2277_vm11, %v2388_v4 }
 0x818   : > { %8201 = vmatpush3.bf16.xpose.msk.msra.mxu1 %vm10125_vm12, %v8196_v53  ;;  %8052 = vmatprep.mubr.msk.f32.mxu1 %vm2277_vm11, %v2473_v9 }
 0x819   : > { %8208 = vmatprep.subr.msk.bf16.mxu1 %vm10125_vm12, %v8206_v8 }
 0x81f   : > { %8053 = vmatmul.mubr.msk.f32.vlgmr.msra.gmra.mrb[36].mxu1 %vm2277_vm11, %v2475_v13 }
 0x820   : > { %8211 = vmatpush3.bf16.xpose.msk.msra.mxu1 %vm10125_vm12, %v8206_v8  ;;  %8066 = vmatprep.mubr.msk.f32.mxu1 %vm2277_vm11, %v2688_v16 }
 0x827   : > { %8067 = vmatmul.mubr.msk.f32.vlgmr.msra.gmra.mrb[38].mxu1 %vm2277_vm11, %v2690_v17 }
 0x8ea   : > { %v8047_v18 = vpop.f32.mrb[34].mxu1 }
 0x8eb   : > { %2471 = vst.msk [vmem:[#allocation2 + $0x8] sm:$0xff] %vm2277_vm11, %v8047_v18  ;;  %v2461_v19 = vpop.f32.mrb[35].mxu1 }
 0x8ec   : > { %2470 = vst.msk [vmem:[#allocation2] sm:$0xff] %vm2277_vm11, %v2461_v19 }
 0x8f2   : > { %v8054_v20 = vpop.f32.mrb[36].mxu1 }
 0x8f3   : > { %v2564_v22 = vmul.f32 0.25, %v8054_v20  ;;  %v2554_v23 = vpop.f32.mrb[37].mxu1 }
 0x8f4   : > { %v2563_v24 = vmul.f32 0.25, %v2554_v23 }
 0x8f5   : > { %v2568_v25 = vsel %vm2277_vm11, %v2564_v22, -inf }
 0x8f6   : > { %2569 = vmax.xlane.f32.xlu1 %v2568_v25  ;;  %v2565_v26 = vsel %vm2277_vm11, %v2563_v24, -inf }
 0x8f7   : > { %2566 = vmax.xlane.f32.xlu0 %v2565_v26 }
 0x8fa   : > { %v8068_v27 = vpop.f32.mrb[38].mxu1 }
 0x8fb   : > { %v2769_v28 = vpop.f32.mrb[39].mxu1  ;;  %v2779_v30 = vmul.f32 0.25, %v8068_v27 }
 0x8fc   : > { %v2778_v29 = vmul.f32 0.25, %v2769_v28 }
 0x8fd   : > { %v2783_v33 = vsel %vm2277_vm11, %v2779_v30, -inf }
 0x8fe   : > { %v2780_v31 = vsel %vm2277_vm11, %v2778_v29, -inf }
 0x8ff   : > { %2781 = vmax.xlane.f32.xlu0 %v2780_v31 }
 0x903   : > { %2784 = vmax.xlane.f32.xlu0 %v2783_v33 }
 0x907   : > { %8473 = vrot.lane.b32.xlu1 %v10129_v34, %s9323_s27 }
 0x983   : > { %v2570_v35 = vpop.xlane.xlu1 %2569 }
 0x984   : > { %v2572_v38 = vsub.f32 %v2564_v22, %v2570_v35  ;;  %v2567_v39 = vpop.xlane.xlu0 %2566 }
 0x985   : > { %v2571_v40 = vsub.f32 %v2563_v24, %v2567_v39 }
 0x986   : > { %v2575_v41 = vmul.f32 1.442695, %v2572_v38 }
 0x987   : > { %v2573_v42 = vmul.f32 1.442695, %v2571_v40  ;;  %v8474_v43 = vpop.permute.xlu1 %8473 }
 0x988   : > { %8746 = vpow2.f32 %v2575_v41  ;;  %v8476_v44 = vunpack.i.h.bf16 %v8474_v43  ;;  %v8475_v45 = vunpack.i.l.bf16 %v8474_v43 }
 0x989   : > { %8748 = vpow2.f32 %v2573_v42 }
 0x98a   : > { %v8202_v46 = vpack.c.bf16 %v8476_v44, %v8475_v45 }
 0x98c   : > { %8203 = vmatprep.subr.bf16.mxu0 %v8202_v46  ;;  %v2782_v47 = vpop.xlane.xlu0 %2781 }
 0x98d   : > { %8205 = vmatpush3.bf16.msra.mxu0 %v8202_v46  ;;  %v2786_v57 = vsub.f32 %v2778_v29, %v2782_v47 }
 0x98f   : > { %v2788_v58 = vmul.f32 1.442695, %v2786_v57 }
 0x990   : > { %v2785_v48 = vpop.xlane.xlu0 %2784 }
 0x991   : > { %v2787_v49 = vsub.f32 %v2779_v30, %v2785_v48 }
 0x992   : > { %v8747_v50 = vpop.eup %8746 }
 0x993   : > { %v8749_v51 = vpop.eup %8748  ;;  %v2790_v52 = vmul.f32 1.442695, %v2787_v49  ;;  %v2580_v53 = vsel %vm2277_vm11, %v8747_v50, 0.0 }
 0x994   : > { %2581 = vadd.xlane.f32.xlu0 %v2580_v53  ;;  %v2577_v54 = vsel %vm2277_vm11, %v8749_v51, 0.0 }
 0x995   : > { %8750 = vpow2.f32 %v2790_v52  ;;  %2578 = vadd.xlane.f32.xlu1 %v2577_v54 }
 0x996   : > { %8752 = vpow2.f32 %v2788_v58 }
 0x99f   : > { %v8751_v55 = vpop.eup %8750 }
 0x9a0   : > { %v2795_v56 = vsel %vm2277_vm11, %v8751_v55, 0.0  ;;  %v8753_v59 = vpop.eup %8752 }
 0x9a1   : > { %2796 = vadd.xlane.f32.xlu0 %v2795_v56  ;;  %v2792_v60 = vsel %vm2277_vm11, %v8753_v59, 0.0 }
 0x9a6   : > { %8483 = vrot.lane.b32.xlu1 %v10131_v36, %s9325_s4 }
 0x9b7   : > { %8478 = vrot.lane.b32.xlu0 %v10129_v34, %s9324_s2 }
 0x9bb   : > { %2902 = vrot.lane.b32.xlu0 %v10137_v37, %s9325_s4 }
 0x9ca   : > { %2793 = vadd.xlane.f32.xlu1 %v2792_v60 }
 0x9db   : > { %2900 = vrot.lane.b32.xlu1 %v10119_v21, %s9325_s4 }
 0xa21   : > { %v2582_v61 = vpop.xlane.xlu0 %2581 }
 0xa22   : > { %8754 = vrcp.f32 %v2582_v61  ;;  %v2579_v62 = vpop.xlane.xlu1 %2578 }
 0xa23   : > { %8756 = vrcp.f32 %v2579_v62 }
 0xa26   : > { %v8484_v9 = vpop.permute.xlu1 %8483 }
 0xa27   : > { %v8486_v16 = vunpack.i.h.bf16 %v8484_v9  ;;  %v8485_v17 = vunpack.i.l.bf16 %v8484_v9 }
 0xa29   : > { %v8216_v22 = vpack.c.bf16 %v8486_v16, %v8485_v17 }
 0xa2c   : > { %v8755_v63 = vpop.eup %8754 }
 0xa2d   : > { %v8757_v1 = vpop.eup %8756  ;;  %v2586_v8 = vmul.f32 %v8755_v63, %v8747_v50 }
 0xa2e   : > { %v2797_v3 = vpop.xlane.xlu0 %2796  ;;  %v2585_v4 = vmul.f32 %v8757_v1, %v8749_v51 }
 0xa2f   : > { %8758 = vrcp.f32 %v2797_v3 }
 0xa30   : > { %8059 = vmatprep.mubr.msk.f32.mxu0 %vm2277_vm11, %v2585_v4 }
 0xa31   : > { %8060 = vmatmul.mubr.msk.f32.vlgmr.msra.gmra.mrb[36].mxu0 %vm2277_vm11, %v2586_v8 }
 0xa32   : > { %v8479_v13 = vpop.permute.xlu0 %8478 }
 0xa33   : > { %v8481_v18 = vunpack.i.h.bf16 %v8479_v13  ;;  %v8480_v19 = vunpack.i.l.bf16 %v8479_v13 }
 0xa35   : > { %v8212_v20 = vpack.c.bf16 %v8481_v18, %v8480_v19 }
 0xa36   : > { %v2903_v29 = vpop.permute.xlu0 %2902 }
 0xa37   : > { %8213 = vmatprep.subr.bf16.mxu0 %v8212_v20 }
 0xa38   : > { %8215 = vmatpush3.bf16.msra.mxu0 %v8212_v20 }
 0xa39   : > { %8218 = vmatprep.subr.msk.bf16.mxu0 %vm10125_vm12, %v8216_v22  ;;  %v8759_v24 = vpop.eup %8758 }
 0xa3a   : > { %v2801_v27 = vmul.f32 %v8759_v24, %v8751_v55 }
 0xa57   : > { %v2794_v23 = vpop.xlane.xlu1 %2793 }
 0xa58   : > { %8760 = vrcp.f32 %v2794_v23 }
 0xa5b   : > { %v2901_v28 = vpop.permute.xlu1 %2900 }
 0xa62   : > { %v8761_v25 = vpop.eup %8760 }
 0xa63   : > { %v2800_v26 = vmul.f32 %v8761_v25, %v8753_v59 }
 0xa65   : > { %8073 = vmatprep.mubr.msk.f32.mxu0 %vm2277_vm11, %v2800_v26 }
 0xa66   : > { %8074 = vmatmul.mubr.msk.f32.vlgmr.msra.gmra.mrb[38].mxu0 %vm2277_vm11, %v2801_v27 }
 0xa67   : > { %8221 = vmatpush3.bf16.xpose.msk.msra.mxu0 %vm10125_vm12, %v8216_v22  ;;  %8080 = vmatprep.mubr.msk.f32.mxu0 %vm2277_vm11, %v2901_v28 }
 0xa6e   : > { %8081 = vmatmul.mubr.msk.f32.vlgmr.msra.gmra.mrb[40].mxu0 %vm2277_vm11, %v2903_v29 }
 0xb04   : > { %v10201_v30 = vpop.f32.mrb[36].mxu0 }
 0xb05   : > { %v10203_v31 = vpop.f32.mrb[37].mxu0 }
 0xb39   : > { %v10205_v33 = vpop.f32.mrb[38].mxu0 }
 0xb3a   : > { %v10207_v35 = vpop.f32.mrb[39].mxu0 }
 0xb41   : > { %v8082_v38 = vpop.f32.mrb[40].mxu0 }
 0xb42   : > { %v2992_v39 = vmul.f32 0.25, %v8082_v38  ;;  %v2982_v40 = vpop.f32.mrb[41].mxu0 }
 0xb43   : > { %v2991_v41 = vmul.f32 0.25, %v2982_v40 }
 0xb44   : > { %v2996_v42 = vsel %vm2277_vm11, %v2992_v39, -inf }
 0xb45   : > { %2997 = vmax.xlane.f32.xlu0 %v2996_v42  ;;  %v2993_v43 = vsel %vm2277_vm11, %v2991_v41, -inf }
 0xb46   : > { %2994 = vmax.xlane.f32.xlu1 %v2993_v43 }
 0xbd2   : > { %v2998_v44 = vpop.xlane.xlu0 %2997 }
 0xbd3   : > { %v3000_v45 = vsub.f32 %v2992_v39, %v2998_v44  ;;  %v2995_v46 = vpop.xlane.xlu1 %2994 }
 0xbd4   : > { %v2999_v47 = vsub.f32 %v2991_v41, %v2995_v46 }
 0xbd5   : > { %v3003_v48 = vmul.f32 1.442695, %v3000_v45 }
 0xbd6   : > { %v3001_v49 = vmul.f32 1.442695, %v2999_v47 }
 0xbd7   : > { %8762 = vpow2.f32 %v3003_v48 }
 0xbd8   : > { %8764 = vpow2.f32 %v3001_v49 }
 0xbe1   : > { %v8763_v50 = vpop.eup %8762 }
 0xbe2   : > { %v8765_v51 = vpop.eup %8764  ;;  %v3008_v52 = vsel %vm2277_vm11, %v8763_v50, 0.0 }
 0xbe3   : > { %3009 = vadd.xlane.f32.xlu1 %v3008_v52  ;;  %v3005_v53 = vsel %vm2277_vm11, %v8765_v51, 0.0 }
 0xbe4   : > { %3006 = vadd.xlane.f32.xlu0 %v3005_v53 }
 0xbf4   : > { %8493 = vrot.lane.b32.xlu1 %v10131_v36, %s9326_s30 }
 0xbf8   : > { %3113 = vrot.lane.b32.xlu1 %v10119_v21, %s9326_s30 }
 0xbfa   : > { %8488 = vrot.lane.b32.xlu0 %v10129_v34, %s9325_s4 }
 0xbfe   : > { %3115 = vrot.lane.b32.xlu0 %v10137_v37, %s9326_s30 }
 0xc70   : > { %v3010_v54 = vpop.xlane.xlu1 %3009 }
 0xc71   : > { %8766 = vrcp.f32 %v3010_v54  ;;  %v3007_v55 = vpop.xlane.xlu0 %3006 }
 0xc72   : > { %8768 = vrcp.f32 %v3007_v55 }
 0xc74   : > { %v8494_v56 = vpop.permute.xlu1 %8493 }
 0xc75   : > { %v8489_v57 = vpop.permute.xlu0 %8488  ;;  %v8496_v58 = vunpack.i.h.bf16 %v8494_v56  ;;  %v8495_v59 = vunpack.i.l.bf16 %v8494_v56 }
 0xc76   : > { %v8491_v60 = vunpack.i.h.bf16 %v8489_v57  ;;  %v8490_v61 = vunpack.i.l.bf16 %v8489_v57 }
 0xc77   : > { %v8226_v63 = vpack.c.bf16 %v8496_v58, %v8495_v59 }
 0xc78   : > { %v8222_v62 = vpack.c.bf16 %v8491_v60, %v8490_v61  ;;  %v3114_v9 = vpop.permute.xlu1 %3113 }
 0xc79   : > { %v3116_v13 = vpop.permute.xlu0 %3115 }
 0xc7a   : > { %8223 = vmatprep.subr.bf16.mxu1 %v8222_v62 }
 0xc7b   : > { %v8767_v1 = vpop.eup %8766  ;;  %8225 = vmatpush3.bf16.msra.mxu1 %v8222_v62 }
 0xc7c   : > { %v8769_v3 = vpop.eup %8768  ;;  %8228 = vmatprep.subr.msk.bf16.mxu1 %vm10125_vm12, %v8226_v63  ;;  %v3014_v8 = vmul.f32 %v8767_v1, %v8763_v50 }
 0xc7d   : > { %v3013_v4 = vmul.f32 %v8769_v3, %v8765_v51 }
 0xc7f   : > { %8087 = vmatprep.mubr.msk.f32.mxu1 %vm2277_vm11, %v3013_v4 }
 0xc80   : > { %8088 = vmatmul.mubr.msk.f32.vlgmr.msra.gmra.mrb[40].mxu1 %vm2277_vm11, %v3014_v8 }
 0xc81   : > { %8094 = vmatprep.mubr.msk.f32.mxu1 %vm2277_vm11, %v3114_v9 }
 0xc84   : > { %8231 = vmatpush3.bf16.xpose.msk.msra.mxu1 %vm10125_vm12, %v8226_v63 }
 0xc8b   : > { %8095 = vmatmul.mubr.msk.f32.vlgmr.msra.gmra.mrb[42].mxu1 %vm2277_vm11, %v3116_v13 }
 0xd53   : > { %v10229_v16 = vpop.f32.mrb[40].mxu1 }
 0xd54   : > { %v10231_v17 = vpop.f32.mrb[41].mxu1 }
 0xd5e   : > { %v8096_v18 = vpop.f32.mrb[42].mxu1 }
 0xd5f   : > { %v3205_v19 = vmul.f32 0.25, %v8096_v18  ;;  %v3195_v20 = vpop.f32.mrb[43].mxu1 }
 0xd60   : > { %v3204_v22 = vmul.f32 0.25, %v3195_v20 }
 0xd61   : > { %v3209_v23 = vsel %vm2277_vm11, %v3205_v19, -inf }
 0xd62   : > { %3210 = vmax.xlane.f32.xlu0 %v3209_v23  ;;  %v3206_v24 = vsel %vm2277_vm11, %v3204_v22, -inf }
 0xd63   : > { %3207 = vmax.xlane.f32.xlu1 %v3206_v24 }
 0xdef   : > { %v3211_v25 = vpop.xlane.xlu0 %3210 }
 0xdf0   : > { %v3213_v26 = vsub.f32 %v3205_v19, %v3211_v25  ;;  %v3208_v27 = vpop.xlane.xlu1 %3207 }
 0xdf1   : > { %v3212_v28 = vsub.f32 %v3204_v22, %v3208_v27 }
 0xdf2   : > { %v3216_v29 = vmul.f32 1.442695, %v3213_v26 }
 0xdf3   : > { %v3214_v38 = vmul.f32 1.442695, %v3212_v28 }
 0xdf4   : > { %8770 = vpow2.f32 %v3216_v29 }
 0xdf5   : > { %8772 = vpow2.f32 %v3214_v38 }
 0xdfe   : > { %v8771_v39 = vpop.eup %8770 }
 0xdff   : > { %v8773_v40 = vpop.eup %8772  ;;  %v3221_v41 = vsel %vm2277_vm11, %v8771_v39, 0.0 }
 0xe00   : > { %3222 = vadd.xlane.f32.xlu1 %v3221_v41  ;;  %v3218_v42 = vsel %vm2277_vm11, %v8773_v40, 0.0 }
 0xe01   : > { %3219 = vadd.xlane.f32.xlu0 %v3218_v42 }
 0xe11   : > { %8503 = vrot.lane.b32.xlu1 %v10131_v36, %s9327_s3 }
 0xe15   : > { %3326 = vrot.lane.b32.xlu1 %v10119_v21, %s9327_s3 }
 0xe17   : > { %8498 = vrot.lane.b32.xlu0 %v10129_v34, %s9326_s30 }
 0xe1b   : > { %3328 = vrot.lane.b32.xlu0 %v10137_v37, %s9327_s3 }
 0xe8d   : > { %v3223_v43 = vpop.xlane.xlu1 %3222 }
 0xe8e   : > { %8774 = vrcp.f32 %v3223_v43  ;;  %v3220_v44 = vpop.xlane.xlu0 %3219 }
 0xe8f   : > { %8776 = vrcp.f32 %v3220_v44 }
 0xe91   : > { %v8504_v45 = vpop.permute.xlu1 %8503 }
 0xe92   : > { %v8499_v46 = vpop.permute.xlu0 %8498  ;;  %v8506_v47 = vunpack.i.h.bf16 %v8504_v45  ;;  %v8505_v48 = vunpack.i.l.bf16 %v8504_v45 }
 0xe93   : > { %v8501_v49 = vunpack.i.h.bf16 %v8499_v46  ;;  %v8500_v50 = vunpack.i.l.bf16 %v8499_v46 }
 0xe94   : > { %v8236_v52 = vpack.c.bf16 %v8506_v47, %v8505_v48 }
 0xe95   : > { %v8232_v51 = vpack.c.bf16 %v8501_v49, %v8500_v50  ;;  %v3327_v57 = vpop.permute.xlu1 %3326 }
 0xe96   : > { %v3329_v58 = vpop.permute.xlu0 %3328 }
 0xe97   : > { %8233 = vmatprep.subr.bf16.mxu0 %v8232_v51 }
 0xe98   : > { %v8775_v53 = vpop.eup %8774  ;;  %8235 = vmatpush3.bf16.msra.mxu0 %v8232_v51 }
 0xe99   : > { %v8777_v54 = vpop.eup %8776  ;;  %8238 = vmatprep.subr.msk.bf16.mxu0 %vm10125_vm12, %v8236_v52  ;;  %v3227_v56 = vmul.f32 %v8775_v53, %v8771_v39 }
 0xe9a   : > { %v3226_v55 = vmul.f32 %v8777_v54, %v8773_v40 }
 0xe9c   : > { %8101 = vmatprep.mubr.msk.f32.mxu0 %vm2277_vm11, %v3226_v55 }
 0xe9d   : > { %8102 = vmatmul.mubr.msk.f32.vlgmr.msra.gmra.mrb[42].mxu0 %vm2277_vm11, %v3227_v56 }
 0xe9e   : > { %8108 = vmatprep.mubr.msk.f32.mxu0 %vm2277_vm11, %v3327_v57 }
 0xea1   : > { %8241 = vmatpush3.bf16.xpose.msk.msra.mxu0 %vm10125_vm12, %v8236_v52 }
 0xea8   : > { %8109 = vmatmul.mubr.msk.f32.vlgmr.msra.gmra.mrb[44].mxu0 %vm2277_vm11, %v3329_v58 }
 0xf70   : > { %v10253_v59 = vpop.f32.mrb[42].mxu0 }
 0xf71   : > { %v10255_v60 = vpop.f32.mrb[43].mxu0 }
 0xf7b   : > { %v8110_v61 = vpop.f32.mrb[44].mxu0 }
 0xf7c   : > { %v3418_v62 = vmul.f32 0.25, %v8110_v61  ;;  %v3408_v63 = vpop.f32.mrb[45].mxu0 }
 0xf7d   : > { %v3417_v1 = vmul.f32 0.25, %v3408_v63 }
 0xf7e   : > { %v3422_v3 = vsel %vm2277_vm11, %v3418_v62, -inf }
 0xf7f   : > { %3423 = vmax.xlane.f32.xlu0 %v3422_v3  ;;  %v3419_v4 = vsel %vm2277_vm11, %v3417_v1, -inf }
 0xf80   : > { %3420 = vmax.xlane.f32.xlu1 %v3419_v4 }
0x100c   : > { %v3424_v8 = vpop.xlane.xlu0 %3423 }
0x100d   : > { %v3426_v9 = vsub.f32 %v3418_v62, %v3424_v8  ;;  %v3421_v13 = vpop.xlane.xlu1 %3420 }
0x100e   : > { %v3425_v18 = vsub.f32 %v3417_v1, %v3421_v13 }
0x100f   : > { %v3429_v19 = vmul.f32 1.442695, %v3426_v9 }
0x1010   : > { %v3427_v20 = vmul.f32 1.442695, %v3425_v18 }
0x1011   : > { %8778 = vpow2.f32 %v3429_v19 }
0x1012   : > { %8780 = vpow2.f32 %v3427_v20 }
0x101b   : > { %v8779_v22 = vpop.eup %8778 }
0x101c   : > { %v8781_v23 = vpop.eup %8780  ;;  %v3434_v24 = vsel %vm2277_vm11, %v8779_v22, 0.0 }
0x101d   : > { %3435 = vadd.xlane.f32.xlu1 %v3434_v24  ;;  %v3431_v25 = vsel %vm2277_vm11, %v8781_v23, 0.0 }
0x101e   : > { %3432 = vadd.xlane.f32.xlu0 %v3431_v25 }
0x102e   : > { %8513 = vrot.lane.b32.xlu1 %v10131_v36, %s9328_s25 }
0x1032   : > { %3539 = vrot.lane.b32.xlu1 %v10119_v21, %s9328_s25 }
0x1034   : > { %8508 = vrot.lane.b32.xlu0 %v10129_v34, %s9327_s3 }
0x1038   : > { %3541 = vrot.lane.b32.xlu0 %v10137_v37, %s9328_s25 }
0x10aa   : > { %v3436_v26 = vpop.xlane.xlu1 %3435 }
0x10ab   : > { %8782 = vrcp.f32 %v3436_v26  ;;  %v3433_v27 = vpop.xlane.xlu0 %3432 }
0x10ac   : > { %8784 = vrcp.f32 %v3433_v27 }
0x10ae   : > { %v8514_v28 = vpop.permute.xlu1 %8513 }
0x10af   : > { %v8509_v29 = vpop.permute.xlu0 %8508  ;;  %v8516_v38 = vunpack.i.h.bf16 %v8514_v28  ;;  %v8515_v39 = vunpack.i.l.bf16 %v8514_v28 }
0x10b0   : > { %v8511_v40 = vunpack.i.h.bf16 %v8509_v29  ;;  %v8510_v41 = vunpack.i.l.bf16 %v8509_v29 }
0x10b1   : > { %v8246_v43 = vpack.c.bf16 %v8516_v38, %v8515_v39 }
0x10b2   : > { %v8242_v42 = vpack.c.bf16 %v8511_v40, %v8510_v41  ;;  %v3540_v48 = vpop.permute.xlu1 %3539 }
0x10b3   : > { %v3542_v49 = vpop.permute.xlu0 %3541 }
0x10b4   : > { %8243 = vmatprep.subr.bf16.mxu1 %v8242_v42 }
0x10b5   : > { %v8783_v44 = vpop.eup %8782  ;;  %8245 = vmatpush3.bf16.msra.mxu1 %v8242_v42 }
0x10b6   : > { %v8785_v45 = vpop.eup %8784  ;;  %8248 = vmatprep.subr.msk.bf16.mxu1 %vm10125_vm12, %v8246_v43  ;;  %v3440_v47 = vmul.f32 %v8783_v44, %v8779_v22 }
0x10b7   : > { %v3439_v46 = vmul.f32 %v8785_v45, %v8781_v23 }
0x10b9   : > { %8115 = vmatprep.mubr.msk.f32.mxu1 %vm2277_vm11, %v3439_v46 }
0x10ba   : > { %8116 = vmatmul.mubr.msk.f32.vlgmr.msra.gmra.mrb[44].mxu1 %vm2277_vm11, %v3440_v47 }
0x10bb   : > { %8122 = vmatprep.mubr.msk.f32.mxu1 %vm2277_vm11, %v3540_v48 }
0x10be   : > { %8251 = vmatpush3.bf16.xpose.msk.msra.mxu1 %vm10125_vm12, %v8246_v43 }
0x10c5   : > { %8123 = vmatmul.mubr.msk.f32.vlgmr.msra.gmra.mrb[46].mxu1 %vm2277_vm11, %v3542_v49 }
0x118d   : > { %v10277_v50 = vpop.f32.mrb[44].mxu1 }
0x118e   : > { %v10279_v51 = vpop.f32.mrb[45].mxu1 }
0x1198   : > { %v8124_v52 = vpop.f32.mrb[46].mxu1 }
0x1199   : > { %v3631_v53 = vmul.f32 0.25, %v8124_v52  ;;  %v3621_v54 = vpop.f32.mrb[47].mxu1 }
0x119a   : > { %v3630_v55 = vmul.f32 0.25, %v3621_v54 }
0x119b   : > { %v3635_v56 = vsel %vm2277_vm11, %v3631_v53, -inf }
0x119c   : > { %3636 = vmax.xlane.f32.xlu0 %v3635_v56  ;;  %v3632_v57 = vsel %vm2277_vm11, %v3630_v55, -inf }
0x119d   : > { %3633 = vmax.xlane.f32.xlu1 %v3632_v57 }
0x1229   : > { %v3637_v58 = vpop.xlane.xlu0 %3636 }
0x122a   : > { %v3639_v61 = vsub.f32 %v3631_v53, %v3637_v58  ;;  %v3634_v62 = vpop.xlane.xlu1 %3633 }
0x122b   : > { %v3638_v63 = vsub.f32 %v3630_v55, %v3634_v62 }
0x122c   : > { %v3642_v1 = vmul.f32 1.442695, %v3639_v61 }
0x122d   : > { %v3640_v3 = vmul.f32 1.442695, %v3638_v63 }
0x122e   : > { %8786 = vpow2.f32 %v3642_v1 }
0x122f   : > { %8788 = vpow2.f32 %v3640_v3 }
0x1238   : > { %v8787_v4 = vpop.eup %8786 }
0x1239   : > { %v8789_v8 = vpop.eup %8788  ;;  %v3647_v9 = vsel %vm2277_vm11, %v8787_v4, 0.0 }
0x123a   : > { %3648 = vadd.xlane.f32.xlu1 %v3647_v9  ;;  %v3644_v13 = vsel %vm2277_vm11, %v8789_v8, 0.0 }
0x123b   : > { %3645 = vadd.xlane.f32.xlu0 %v3644_v13 }
0x124b   : > { %8523 = vrot.lane.b32.xlu1 %v10131_v36, %s9329_s23 }
0x124f   : > { %3752 = vrot.lane.b32.xlu1 %v10119_v21, %s9329_s23 }
0x1251   : > { %8518 = vrot.lane.b32.xlu0 %v10129_v34, %s9328_s25 }
0x1255   : > { %3754 = vrot.lane.b32.xlu0 %v10137_v37, %s9329_s23 }
0x12c7   : > { %v3649_v18 = vpop.xlane.xlu1 %3648 }
0x12c8   : > { %8790 = vrcp.f32 %v3649_v18  ;;  %v3646_v19 = vpop.xlane.xlu0 %3645 }
0x12c9   : > { %8792 = vrcp.f32 %v3646_v19 }
0x12cb   : > { %v8524_v20 = vpop.permute.xlu1 %8523 }
0x12cc   : > { %v8519_v22 = vpop.permute.xlu0 %8518  ;;  %v8526_v23 = vunpack.i.h.bf16 %v8524_v20  ;;  %v8525_v24 = vunpack.i.l.bf16 %v8524_v20  ;;  %v8594_v20 = vld [vmem:[#allocation9] sm:$0xff]  }
0x12cd   : > { %v8521_v25 = vunpack.i.h.bf16 %v8519_v22  ;;  %v8520_v26 = vunpack.i.l.bf16 %v8519_v22  ;;  %v8595_v22 = vld [vmem:[#allocation9 + $0x8] sm:$0xff]  }
0x12ce   : > { %v8256_v27 = vpack.c.bf16 %v8526_v23, %v8525_v24  ;;  %v8596_v23 = vld [vmem:[#allocation9 + $0x10] sm:$0xff]   ;;  %v8597_v24 = vld [vmem:[#allocation9 + $0x18] sm:$0xff]  }
0x12cf   : > { %v8252_v36 = vpack.c.bf16 %v8521_v25, %v8520_v26  ;;  %v3753_v38 = vpop.permute.xlu1 %3752  ;;  %v8598_v25 = vld [vmem:[#allocation9 + $0x20] sm:$0xff]   ;;  %v8599_v26 = vld [vmem:[#allocation9 + $0x28] sm:$0xff]  }
0x12d0   : > { %v3755_v39 = vpop.permute.xlu0 %3754 }
0x12d1   : > { %8253 = vmatprep.subr.bf16.mxu0 %v8252_v36 }
0x12d2   : > { %v8791_v21 = vpop.eup %8790  ;;  %8255 = vmatpush3.bf16.msra.mxu0 %v8252_v36  ;;  %v8600_v36 = vld [vmem:[#allocation9 + $0x30] sm:$0xff]  }
0x12d3   : > { %v8793_v28 = vpop.eup %8792  ;;  %8258 = vmatprep.subr.msk.bf16.mxu0 %vm10125_vm12, %v8256_v27  ;;  %v3653_v29 = vmul.f32 %v8791_v21, %v8787_v4 }
0x12d4   : > { %v3652_v37 = vmul.f32 %v8793_v28, %v8789_v8 }
0x12d6   : > { %8129 = vmatprep.mubr.msk.f32.mxu0 %vm2277_vm11, %v3652_v37 }
0x12d7   : > { %8130 = vmatmul.mubr.msk.f32.vlgmr.msra.gmra.mrb[46].mxu0 %vm2277_vm11, %v3653_v29 }
0x12d8   : > { %8136 = vmatprep.mubr.msk.f32.mxu0 %vm2277_vm11, %v3753_v38 }
0x12db   : > { %8261 = vmatpush3.bf16.xpose.msk.msra.mxu0 %vm10125_vm12, %v8256_v27  ;;  %v8601_v27 = vld [vmem:[#allocation9 + $0x38] sm:$0xff]  }
0x12e2   : > { %8137 = vmatmul.mubr.msk.f32.vlgmr.msra.gmra.mrb[48].mxu0 %vm2277_vm11, %v3755_v39 }
0x12e3   : > { %4370 = vmatprep.mubr.bf16.mxu0 %v9319_v0 }
0x13aa   : > { %v8131_v40 = vpop.f32.mrb[46].mxu0 }
0x13ab   : > { %v3732_v41 = vpop.f32.mrb[47].mxu0 }
0x13b5   : > { %v8138_v42 = vpop.f32.mrb[48].mxu0 }
0x13b6   : > { %v3844_v43 = vmul.f32 0.25, %v8138_v42  ;;  %v3834_v44 = vpop.f32.mrb[49].mxu0 }
0x13b7   : > { %v3843_v45 = vmul.f32 0.25, %v3834_v44 }
0x13b8   : > { %v3848_v46 = vsel %vm2277_vm11, %v3844_v43, -inf }
0x13b9   : > { %3849 = vmax.xlane.f32.xlu0 %v3848_v46  ;;  %v3845_v47 = vsel %vm2277_vm11, %v3843_v45, -inf }
0x13ba   : > { %3846 = vmax.xlane.f32.xlu1 %v3845_v47 }
0x1446   : > { %v3850_v48 = vpop.xlane.xlu0 %3849 }
0x1447   : > { %v3852_v32 = vsub.f32 %v3844_v43, %v3850_v48  ;;  %v3847_v49 = vpop.xlane.xlu1 %3846 }
0x1448   : > { %v3851_v52 = vsub.f32 %v3843_v45, %v3847_v49  ;;  %v4124_v49 = vld [vmem:[#allocation15] sm:$0xff] }
0x1449   : > { %v3855_v53 = vmul.f32 1.442695, %v3852_v32 }
0x144a   : > { %v3853_v54 = vmul.f32 1.442695, %v3851_v52  ;;  %v4126_v52 = vld [vmem:[#allocation15 + $0x40] sm:$0xff] }
0x144b   : > { %8794 = vpow2.f32 %v3855_v53  ;;  %v4125_v53 = vld [vmem:[#allocation15 + $0x8] sm:$0xff] }
0x144c   : > { %8796 = vpow2.f32 %v3853_v54  ;;  %v7296_v54 = vcombine.low %v4124_v49, %v4126_v52 }
0x1455   : > { %v8795_v55 = vpop.eup %8794 }
0x1456   : > { %v8797_v56 = vpop.eup %8796  ;;  %v3860_v57 = vsel %vm2277_vm11, %v8795_v55, 0.0 }
0x1457   : > { %3861 = vadd.xlane.f32.xlu1 %v3860_v57  ;;  %v3857_v58 = vsel %vm2277_vm11, %v8797_v56, 0.0  ;;  %v4128_v57 = vld [vmem:[#allocation15 + $0x80] sm:$0xff] }
0x1458   : > { %3858 = vadd.xlane.f32.xlu0 %v3857_v58  ;;  %v4130_v58 = vld [vmem:[#allocation15 + $0xc0] sm:$0xff] }
0x1459   : > { %v7300_v5 = vcombine.low %v4128_v57, %v4130_v58 }
0x1468   : > { %2678 = vrot.lane.b32.xlu1 %v10203_v31, %s9329_s23 }
0x146c   : > { %2680 = vrot.lane.b32.xlu1 %v10201_v30, %s9329_s23 }
0x146e   : > { %8528 = vrot.lane.b32.xlu0 %v10129_v34, %s9329_s23 }
0x1470   : > { %2893 = vrot.lane.b32.xlu1 %v10205_v33, %s9328_s25 }
0x1472   : > { %2891 = vrot.lane.b32.xlu0 %v10207_v35, %s9328_s25  ;;  %s10625_s25 = sld [smem:[#allocation55_spill]] }
0x1474   : > { %3106 = vrot.lane.b32.xlu1 %v10229_v16, %s9327_s3 }
0x1476   : > { %3104 = vrot.lane.b32.xlu0 %v10231_v17, %s9327_s3 }
0x1478   : > { %3319 = vrot.lane.b32.xlu1 %v10253_v59, %s9326_s30  ;;  %s10626_s23 = smov %s10625_s25 }
0x147a   : > { %3317 = vrot.lane.b32.xlu0 %v10255_v60, %s9326_s30 }
0x147c   : > { %3532 = vrot.lane.b32.xlu1 %v10277_v50, %s9325_s4 }
0x147e   : > { %3530 = vrot.lane.b32.xlu0 %v10279_v51, %s9325_s4 }
0x1480   : > { %3745 = vrot.lane.b32.xlu1 %v8131_v40, %s9324_s2 }
0x1482   : > { %3743 = vrot.lane.b32.xlu0 %v3732_v41, %s9324_s2  ;;  %v7285_v41 = vld [vmem:[#allocation11] ss:$0 sm:$0xff]  ;;  %s886_s2 = scalar_lea.vmem [#allocation26], %s885_s28 }
0x1483   : > { %s6920_s4 = sshll.u32 %s886_s2, 4  ;;  %s10479_s4 = int_to_ptr.vmem [resolvable:$true] %s6920_s4 }
0x1484   : > { %s9206_s0 = scalar_lea.vmem %s10479_s4, 16 }
0x1485   : > { %p9207_p5 = scmp.ne.s32.totalorder %s10479_s4, %s9206_s0 }
0x1487   : > { %p9208_p12 = pnand %p9207_p5, %p10627_p9 }
0x1489   : > { %p9209_p10 = pneg %p9208_p12 }
0x14e4   : > { %v3862_v34 = vpop.xlane.xlu1 %3861 }
0x14e5   : > { %8798 = vrcp.f32 %v3862_v34  ;;  %v3859_v30 = vpop.xlane.xlu0 %3858 }
0x14e6   : > { %8800 = vrcp.f32 %v3859_v30 }
0x14e8   : > { %v2679_v31 = vpop.permute.xlu1 %2678 }
0x14e9   : > { %2685 = vst.msk [vmem:[#allocation2] sm:$0xff] %vm2684_vm13, %v2679_v31  ;;  %v8529_v33 = vpop.permute.xlu0 %8528  ;;  %v7301_v31 = vcombine.high %v4128_v57, %v4130_v58  ;;  %v4152_v57 = vld [vmem:[#allocation15 + $0x380] sm:$0xff] }
0x14ea   : > { %v8531_v35 = vunpack.i.h.bf16 %v8529_v33  ;;  %v8530_v16 = vunpack.i.l.bf16 %v8529_v33  ;;  %v4129_v33 = vld [vmem:[#allocation15 + $0x88] sm:$0xff]  ;;  %v4154_v58 = vld [vmem:[#allocation15 + $0x3c0] sm:$0xff] }
0x14ec   : > { %v8262_v17 = vpack.c.bf16 %v8531_v35, %v8530_v16  ;;  %v2681_v59 = vpop.permute.xlu1 %2680  ;;  %v4131_v35 = vld [vmem:[#allocation15 + $0xc8] sm:$0xff] }
0x14ed   : > { %2686 = vst.msk [vmem:[#allocation2 + $0x8] sm:$0xff] %vm2684_vm13, %v2681_v59  ;;  %v2892_v60 = vpop.permute.xlu0 %2891  ;;  %v7303_v2 = vcombine.high %v4129_v33, %v4131_v35 }
0x14ee   : > { %2898 = vst.msk [vmem:[#allocation2] sm:$0xff] %vm2897_vm14, %v2892_v60  ;;  %8263 = vmatprep.subr.bf16.mxu1 %v8262_v17 }
0x14ef   : > { %v8799_v50 = vpop.eup %8798  ;;  %8265 = vmatpush3.bf16.msra.mxu1 %v8262_v17 }
0x14f0   : > { %v8801_v51 = vpop.eup %8800  ;;  %v2894_v61 = vpop.permute.xlu1 %2893  ;;  %8146 = vmatprep.subr.bf16.mxu1 %v9321_v10  ;;  %v3866_v1 = vmul.f32 %v8799_v50, %v8795_v55  ;;  %v7297_v55 = vcombine.high %v4124_v49, %v4126_v52  ;;  %v4149_v49 = vld [vmem:[#allocation15 + $0x308] sm:$0xff] }
0x14f1   : > { %2899 = vst.msk [vmem:[#allocation2 + $0x8] sm:$0xff] %vm2897_vm14, %v2894_v61  ;;  %v3105_v62 = vpop.permute.xlu0 %3104  ;;  %v3865_v63 = vmul.f32 %v8801_v51, %v8797_v56  ;;  %v4127_v56 = vld [vmem:[#allocation15 + $0x48] sm:$0xff] }
0x14f2   : > { %3111 = vst.msk [vmem:[#allocation2] sm:$0xff] %vm3110_vm15, %v3105_v62  ;;  %v7298_v34 = vcombine.low %v4125_v53, %v4127_v56  ;;  %v7299_v30 = vcombine.high %v4125_v53, %v4127_v56  ;;  %4338 = vmatprep.subr.bf16.mxu0 %v7297_v55  ;;  %v4132_v62 = vld [vmem:[#allocation15 + $0x100] sm:$0xff]  ;;  %v4151_v53 = vld [vmem:[#allocation15 + $0x348] sm:$0xff] }
0x14f3   : > { %8143 = vmatprep.mubr.msk.f32.mxu1 %vm2277_vm11, %v3865_v63  ;;  %4339 = vmatpush1.bf16.msra.mxu0 %v7296_v54  ;;  %v4134_v63 = vld [vmem:[#allocation15 + $0x140] sm:$0xff]  ;;  %v7322_v55 = vcombine.low %v4149_v49, %v4151_v53  ;;  %v7323_v56 = vcombine.high %v4149_v49, %v4151_v53 }
0x14f4   : > { %8144 = vmatmul.mubr.msk.f32.vlgmr.msra.gmra.mrb[48].mxu1 %vm2277_vm11, %v3866_v1  ;;  %v3107_v3 = vpop.permute.xlu1 %3106  ;;  %4340 = vmatprep.subr.bf16.mxu0 %v7301_v31  ;;  %v4133_v1 = vld [vmem:[#allocation15 + $0x108] sm:$0xff] }
0x14f5   : > { %3112 = vst.msk [vmem:[#allocation2 + $0x8] sm:$0xff] %vm3110_vm15, %v3107_v3  ;;  %v3318_v4 = vpop.permute.xlu0 %3317  ;;  %8162 = vmatprep.mubr.msk.bf16.mxu1 %vm9322_vm2, %v9321_v10  ;;  %8147 = vmatpush3.bf16.msra.mxu1 %v8594_v20  ;;  %v7305_v3 = vcombine.high %v4132_v62, %v4134_v63  ;;  %v4137_v20 = vld [vmem:[#allocation15 + $0x188] sm:$0xff] }
0x14f6   : > { %3324 = vst.msk [vmem:[#allocation2] sm:$0xff] %vm3323_vm0, %v3318_v4  ;;  %8148 = vmatprep.subr.bf16.mxu1 %v9321_v10  ;;  %v4135_v4 = vld [vmem:[#allocation15 + $0x148] sm:$0xff] }
0x14f7   : > { %4341 = vmatpush1.bf16.msra.mxu0 %v7300_v5  ;;  %v4155_v31 = vld [vmem:[#allocation15 + $0x3c8] sm:$0xff]  ;;  %v4500_v5 = vld [vmem:[#allocation15 + $0x10] sm:$0xff] }
0x14f8   : > { %v3320_v8 = vpop.permute.xlu1 %3319  ;;  %4342 = vmatprep.subr.bf16.mxu0 %v7305_v3 }
0x14f9   : > { %3325 = vst.msk [vmem:[#allocation2 + $0x8] sm:$0xff] %vm3323_vm0, %v3320_v8  ;;  %v3531_v9 = vpop.permute.xlu0 %3530  ;;  %8149 = vmatpush3.bf16.msra.mxu1 %v8595_v22  ;;  %v7304_v8 = vcombine.low %v4132_v62, %v4134_v63 }
0x14fa   : > { %3537 = vst.msk [vmem:[#allocation2] sm:$0xff] %vm3536_vm1, %v3531_v9  ;;  %8150 = vmatprep.subr.bf16.mxu1 %v9321_v10  ;;  %v7306_v9 = vcombine.low %v4133_v1, %v4135_v4 }
0x14fb   : > { %4343 = vmatpush1.bf16.msra.mxu0 %v7304_v8 }
0x14fc   : > { %v3533_v13 = vpop.permute.xlu1 %3532 }
0x14fd   : > { %3538 = vst.msk [vmem:[#allocation2 + $0x8] sm:$0xff] %vm3536_vm1, %v3533_v13  ;;  %v3744_v18 = vpop.permute.xlu0 %3743  ;;  %8151 = vmatpush3.bf16.msra.mxu1 %v8596_v23  ;;  %v7307_v13 = vcombine.high %v4133_v1, %v4135_v4  ;;  %v4139_v23 = vld [vmem:[#allocation15 + $0x1c8] sm:$0xff] }
0x14fe   : > { %3750 = vst.msk [vmem:[#allocation2] sm:$0xff] %vm3749_vm3, %v3744_v18  ;;  %8152 = vmatprep.subr.bf16.mxu1 %v9321_v10  ;;  %v4136_v18 = vld [vmem:[#allocation15 + $0x180] sm:$0xff] }
0x1500   : > { %v3746_v19 = vpop.permute.xlu1 %3745 }
0x1501   : > { %3751 = vst.msk [vmem:[#allocation2 + $0x8] sm:$0xff] %vm3749_vm3, %v3746_v19  ;;  %8153 = vmatpush3.bf16.msra.mxu1 %v8597_v24  ;;  %v4138_v19 = vld [vmem:[#allocation15 + $0x1c0] sm:$0xff] }
0x1502   : > { %8154 = vmatprep.subr.bf16.mxu1 %v9321_v10  ;;  %v7309_v22 = vcombine.high %v4136_v18, %v4138_v19  ;;  %v7308_v24 = vcombine.low %v4136_v18, %v4138_v19  ;;  %v7294_v18 = vld [vmem:[#allocation12] ss:$0 sm:$0xff] }
0x1504   : > { %4344 = vmatprep.subr.bf16.mxu0 %v7309_v22 }
0x1505   : > { %8155 = vmatpush3.bf16.msra.mxu1 %v8598_v25  ;;  %v7310_v25 = vcombine.low %v4137_v20, %v4139_v23  ;;  %4345 = vmatpush1.bf16.msra.mxu0 %v7308_v24 }
0x1506   : > { %8156 = vmatprep.subr.bf16.mxu1 %v9321_v10 }
0x1509   : > { %8157 = vmatpush3.bf16.msra.mxu1 %v8599_v26  ;;  %v7311_v26 = vcombine.high %v4137_v20, %v4139_v23  ;;  %v7295_v23 = vld [vmem:[#allocation14] ss:$0 sm:$0xff] }
0x150a   : > { %8158 = vmatprep.subr.bf16.mxu1 %v9321_v10 }
0x150d   : > { %8159 = vmatpush3.bf16.msra.mxu1 %v8600_v36  ;;  %v4140_v36 = vld [vmem:[#allocation15 + $0x200] sm:$0xff] }
0x150e   : > { %8160 = vmatprep.subr.bf16.mxu1 %v9321_v10 }
0x1511   : > { %8161 = vmatpush3.bf16.msra.mxu1 %v8601_v27  ;;  %v4142_v27 = vld [vmem:[#allocation15 + $0x240] sm:$0xff] }
0x1512   : > { %4381 = vmatprep.subr.bf16.mxu1 %v7299_v30  ;;  %v7325_v30 = vcombine.high %v4152_v57, %v4154_v58 }
0x15c7   : > { %v8145_v21 = vpop.f32.mrb[48].mxu1 }
0x15c8   : > { %3958 = vrot.lane.b32.xlu1 %v8145_v21, %s9323_s27  ;;  %v3945_v28 = vpop.f32.mrb[49].mxu1  ;;  %v4141_v21 = vld [vmem:[#allocation15 + $0x208] sm:$0xff] }
0x15c9   : > { %3956 = vrot.lane.b32.xlu0 %v3945_v28, %s9323_s27  ;;  %v7313_v28 = vcombine.high %v4140_v36, %v4142_v27  ;;  %s7563_s27 = sshll.u32 %s9472_s5, 4  ;;  %s9330_s5 = smov [#allocation26]  }
0x15ca   : > { %s10477_s29 = scalar_lea.hbm %s10625_s25, %s7563_s27  ;;  %s9210_s13 = sshll.u32 %s9330_s5, 4  ;;  %s9211_s13 = int_to_ptr.vmem [resolvable:$false] %s9210_s13 }
0x15cb   : > { %4346 = vmatprep.subr.bf16.mxu0 %v7313_v28  ;;  %s9212_s1 = scalar_lea.vmem %s9211_s13, 32  ;;  %p9213_p2 = scmp.lt.s32.totalorder %s10479_s4, %s9211_s13 }
0x15cc   : > { %p9214_p3 = scmp.lt.s32.totalorder %s9212_s1, %s9206_s0 }
0x15ce   : > { %p9215_p4 = por %p9214_p3, %p9213_p2 }
0x15d0   : > { %p9216_p7 = pnand %p9215_p4, %p9209_p10 }
0x163a   : > { %v3959_v37 = vpop.permute.xlu1 %3958 }
0x163b   : > { %3964 = vst.msk [vmem:[#allocation2 + $0x8] sm:$0xff] %vm3962_vm4, %v3959_v37  ;;  %v3957_v29 = vpop.permute.xlu0 %3956  ;;  %v4143_v37 = vld [vmem:[#allocation15 + $0x248] sm:$0xff] }
0x163c   : > { %3963 = vst.msk [vmem:[#allocation2] sm:$0xff] %vm3962_vm4, %v3957_v29  ;;  %v7312_v29 = vcombine.low %v4140_v36, %v4142_v27  ;;  %v4505_v36 = vld [vmem:[#allocation15 + $0x98] sm:$0xff] }
0x163d   : > { %v4507_v27 = vld [vmem:[#allocation15 + $0xd8] sm:$0xff] }
0x163e   : > { %4347 = vmatpush1.bf16.msra.mxu0 %v7312_v29  ;;  %v7335_v29 = vcombine.high %v4505_v36, %v4507_v27 }
0x1642   : > { %v3966_v38 = vld [vmem:[#allocation2 + $0x8] sm:$0xff] }
0x1643   : > { %v3965_v39 = vld [vmem:[#allocation2] sm:$0xff] }
0x1644   : > { %v3967_v40 = vpack.c.bf16 %v3966_v38, %v3965_v39  ;;  %v7314_v38 = vcombine.low %v4141_v21, %v4143_v37  ;;  %v7315_v39 = vcombine.high %v4141_v21, %v4143_v37 }
0x1646   : > { %8163 = vmatmul.mubr.bf16.vlgmr.msra.gmra.mrb[52].mxu1 %v3967_v40  ;;  %v4144_v40 = vld [vmem:[#allocation15 + $0x280] sm:$0xff] }
0x1647   : > { %4413 = vmatprep.mubr.bf16.mxu1 %v9319_v0  ;;  %4382 = vmatpush1.bf16.msra.mxu1 %v7298_v34  ;;  %v4153_v34 = vld [vmem:[#allocation15 + $0x388] sm:$0xff] }
0x1648   : > { %4383 = vmatprep.subr.bf16.mxu1 %v7303_v2  ;;  %v7327_v2 = vcombine.high %v4153_v34, %v4155_v31 }
0x1719   : > { %v4073_v42 = vpop.f32.mrb[52].mxu1 }
0x171a   : > { %v4074_v43 = vadd.f32 %v7285_v41, %v4073_v42  ;;  %v8164_v44 = vpop.f32.mrb[53].mxu1  ;;  %v4145_v42 = vld [vmem:[#allocation15 + $0x288] sm:$0xff] }
0x171b   : > { %v4076_v45 = vpop.f32.mrb[54].mxu1  ;;  %v4147_v44 = vld [vmem:[#allocation15 + $0x2c8] sm:$0xff] }
0x171c   : > { %v4077_v46 = vadd.f32 %v7285_v41, %v4076_v45  ;;  %v8165_v47 = vpop.f32.mrb[55].mxu1  ;;  %v4080_v48 = vadd.f32 %v4074_v43, %v2013_v6  ;;  %v7302_v6 = vcombine.low %v4129_v33, %v4131_v35  ;;  %v4146_v41 = vld [vmem:[#allocation15 + $0x2c0] sm:$0xff]  ;;  %v7324_v33 = vcombine.low %v4152_v57, %v4154_v58  ;;  %v4519_v57 = vld [vmem:[#allocation15 + $0x258] sm:$0xff] }
0x171d   : > { %v7317_v43 = vcombine.high %v4144_v40, %v4146_v41  ;;  %v7316_v45 = vcombine.low %v4144_v40, %v4146_v41  ;;  %v7319_v47 = vcombine.high %v4145_v42, %v4147_v44  ;;  %v7326_v35 = vcombine.low %v4153_v34, %v4155_v31  ;;  %v4509_v40 = vld [vmem:[#allocation15 + $0x118] sm:$0xff] }
0x171e   : > { %4082 = vadd.xlane.f32.xlu0 %v4080_v48  ;;  %v4081_v32 = vadd.f32 %v4077_v46, %v2014_v7  ;;  %4384 = vmatpush1.bf16.msra.mxu1 %v7302_v6  ;;  %v7318_v46 = vcombine.low %v4145_v42, %v4147_v44  ;;  %v4502_v6 = vld [vmem:[#allocation15 + $0x50] sm:$0xff]  ;;  %v7334_v42 = vcombine.low %v4505_v36, %v4507_v27 }
0x171f   : > { %4385 = vmatprep.subr.bf16.mxu1 %v7307_v13  ;;  %4348 = vmatprep.subr.bf16.mxu0 %v7317_v43  ;;  %v8603_v36 = vld [vmem:[#allocation18 + $0x1c0] sm:$0xff]  }
0x1720   : > { %4084 = vadd.xlane.f32.xlu1 %v4081_v32  ;;  %4349 = vmatpush1.bf16.msra.mxu0 %v7316_v45  ;;  %v4512_v45 = vld [vmem:[#allocation15 + $0x190] sm:$0xff] }
0x1721   : > { %v8604_v27 = vld [vmem:[#allocation18 + $0x100] sm:$0xff]  }
0x1722   : > { %4386 = vmatpush1.bf16.msra.mxu1 %v7306_v9 }
0x1723   : > { %4387 = vmatprep.subr.bf16.mxu1 %v7311_v26  ;;  %v4506_v26 = vld [vmem:[#allocation15 + $0xd0] sm:$0xff] }
0x1726   : > { %4388 = vmatpush1.bf16.msra.mxu1 %v7310_v25  ;;  %v4504_v25 = vld [vmem:[#allocation15 + $0x90] sm:$0xff] }
0x1727   : > { %4389 = vmatprep.subr.bf16.mxu1 %v7315_v39  ;;  %v4510_v39 = vld [vmem:[#allocation15 + $0x150] sm:$0xff]  ;;  %v7332_v41 = vcombine.low %v4504_v25, %v4506_v26 }
0x172a   : > { %4390 = vmatpush1.bf16.msra.mxu1 %v7314_v38  ;;  %v4508_v38 = vld [vmem:[#allocation15 + $0x110] sm:$0xff] }
0x172b   : > { %4391 = vmatprep.subr.bf16.mxu1 %v7319_v47  ;;  %v7337_v43 = vcombine.high %v4508_v38, %v4510_v39  ;;  %v4513_v47 = vld [vmem:[#allocation15 + $0x198] sm:$0xff] }
0x172e   : > { %4392 = vmatpush1.bf16.msra.mxu1 %v7318_v46  ;;  %v4514_v46 = vld [vmem:[#allocation15 + $0x1d0] sm:$0xff] }
0x172f   : > { %4393 = vmatprep.subr.bf16.mxu1 %v7323_v56  ;;  %v4517_v56 = vld [vmem:[#allocation15 + $0x218] sm:$0xff]  ;;  %v7340_v58 = vcombine.low %v4512_v45, %v4514_v46 }
0x1730   : > { %v7347_v31 = vcombine.high %v4517_v56, %v4519_v57 }
0x1732   : > { %4394 = vmatpush1.bf16.msra.mxu1 %v7322_v55  ;;  %v4518_v55 = vld [vmem:[#allocation15 + $0x250] sm:$0xff] }
0x1733   : > { %4395 = vmatprep.subr.bf16.mxu1 %v7327_v2  ;;  %v4521_v2 = vld [vmem:[#allocation15 + $0x298] sm:$0xff] }
0x1736   : > { %4396 = vmatpush1.bf16.msra.mxu1 %v7326_v35  ;;  %v4522_v35 = vld [vmem:[#allocation15 + $0x2d0] sm:$0xff] }
0x17ab   : > { %v4083_v7 = vpop.xlane.xlu0 %4082 }
0x17ac   : > { %v4087_v16 = vmul.f32 0.0078125, %v4083_v7  ;;  %v4501_v7 = vld [vmem:[#allocation15 + $0x18] sm:$0xff] }
0x17ad   : > { %v4085_v17 = vpop.xlane.xlu1 %4084 }
0x17ae   : > { %v10349_v59 = vsub.f32 %v4080_v48, %v4087_v16  ;;  %v4088_v60 = vmul.f32 0.0078125, %v4085_v17  ;;  %v4148_v48 = vld [vmem:[#allocation15 + $0x300] sm:$0xff]  ;;  %v7328_v16 = vcombine.low %v4500_v5, %v4502_v6  ;;  %v7329_v17 = vcombine.high %v4500_v5, %v4502_v6  ;;  %v4523_v5 = vld [vmem:[#allocation15 + $0x2d8] sm:$0xff] }
0x17b0   : > { %v10351_v50 = vsub.f32 %v4081_v32, %v4088_v60  ;;  %v4091_v51 = vmul.f32 %v10349_v59, %v10349_v59  ;;  %v4150_v32 = vld [vmem:[#allocation15 + $0x340] sm:$0xff]  ;;  %v4503_v60 = vld [vmem:[#allocation15 + $0x58] sm:$0xff] }
0x17b1   : > { %v7321_v52 = vcombine.high %v4148_v48, %v4150_v32  ;;  %v7320_v54 = vcombine.low %v4148_v48, %v4150_v32  ;;  %v4515_v48 = vld [vmem:[#allocation15 + $0x1d8] sm:$0xff]  ;;  %v7336_v32 = vcombine.low %v4508_v38, %v4510_v39 }
0x17b2   : > { %4093 = vadd.xlane.f32.xlu0 %v4091_v51  ;;  %v4092_v61 = vmul.f32 %v10351_v50, %v10351_v50  ;;  %v7330_v51 = vcombine.low %v4501_v7, %v4503_v60  ;;  %v7343_v53 = vcombine.high %v4513_v47, %v4515_v48  ;;  %v7342_v34 = vcombine.low %v4513_v47, %v4515_v48  ;;  %v8607_v38 = vld [vmem:[#allocation18 + $0x1c8] sm:$0xff]   ;;  %v8617_v47 = vld [vmem:[#allocation18 + $0x198] sm:$0xff]   ;;  %v8618_v48 = vld [vmem:[#allocation18 + $0x160] sm:$0xff]  }
0x17b3   : > { %4350 = vmatprep.subr.bf16.mxu0 %v7321_v52  ;;  %v7341_v52 = vcombine.high %v4512_v45, %v4514_v46  ;;  %v8608_v39 = vld [vmem:[#allocation18 + $0x108] sm:$0xff]   ;;  %v8615_v45 = vld [vmem:[#allocation18 + $0x1d8] sm:$0xff]  }
0x17b4   : > { %4351 = vmatpush1.bf16.msra.mxu0 %v7320_v54  ;;  %v4516_v54 = vld [vmem:[#allocation15 + $0x210] sm:$0xff]  ;;  %v8616_v46 = vld [vmem:[#allocation18 + $0x118] sm:$0xff]  }
0x17b5   : > { %4352 = vmatprep.subr.bf16.mxu0 %v7325_v30  ;;  %v7345_v30 = vcombine.high %v4516_v54, %v4518_v55  ;;  %v7344_v6 = vcombine.low %v4516_v54, %v4518_v55  ;;  %v8623_v54 = vld [vmem:[#allocation18 + $0x1e8] sm:$0xff]  }
0x17b6   : > { %4095 = vadd.xlane.f32.xlu0 %v4092_v61  ;;  %v7331_v61 = vcombine.high %v4501_v7, %v4503_v60  ;;  %v7346_v7 = vcombine.low %v4517_v56, %v4519_v57  ;;  %v4524_v60 = vld [vmem:[#allocation15 + $0x310] sm:$0xff]  ;;  %v8624_v55 = vld [vmem:[#allocation18 + $0x128] sm:$0xff]   ;;  %v8626_v57 = vld [vmem:[#allocation18 + $0x170] sm:$0xff]  }
0x17b7   : > { %v8625_v56 = vld [vmem:[#allocation18 + $0x1a8] sm:$0xff]  }
0x17b8   : > { %4353 = vmatpush1.bf16.msra.mxu0 %v7324_v33  ;;  %4757 = vmatprep.subr.bf16.mxu1 %v7331_v61  ;;  %v4520_v33 = vld [vmem:[#allocation15 + $0x290] sm:$0xff]  ;;  %v4525_v61 = vld [vmem:[#allocation15 + $0x318] sm:$0xff] }
0x17b9   : > { %4714 = vmatprep.subr.bf16.mxu0 %v7329_v17  ;;  %v7351_v17 = vcombine.high %v4521_v2, %v4523_v5 }
0x183f   : > { %v4094_v62 = vpop.xlane.xlu0 %4093 }
0x1840   : > { %v4097_v63 = vmul.f32 0.0078125, %v4094_v62  ;;  %v4527_v62 = vld [vmem:[#allocation15 + $0x358] sm:$0xff] }
0x1842   : > { %v4099_v1 = vadd.f32 1e-05, %v4097_v63  ;;  %v7348_v63 = vcombine.low %v4520_v33, %v4522_v35 }
0x1843   : > { %v4096_v3 = vpop.xlane.xlu0 %4095 }
0x1844   : > { %8802 = vrsqrt.f32 %v4099_v1  ;;  %v4098_v4 = vmul.f32 0.0078125, %v4096_v3  ;;  %v7350_v1 = vcombine.low %v4521_v2, %v4523_v5  ;;  %v8633_v2 = vld [vmem:[#allocation18 + $0x1b8] sm:$0xff]   ;;  %v8634_v5 = vld [vmem:[#allocation18 + $0x40] sm:$0xff]  }
0x1846   : > { %v4100_v8 = vadd.f32 1e-05, %v4098_v4  ;;  %v7355_v4 = vcombine.high %v4525_v61, %v4527_v62 }
0x1848   : > { %8804 = vrsqrt.f32 %v4100_v8  ;;  %v4528_v8 = vld [vmem:[#allocation15 + $0x390] sm:$0xff] }
0x184e   : > { %v8803_v9 = vpop.eup %8802 }
0x184f   : > { %v4103_v13 = vmul.f32 %v8803_v9, %v10349_v59  ;;  %v7333_v59 = vcombine.high %v4504_v25, %v4506_v26  ;;  %v4530_v9 = vld [vmem:[#allocation15 + $0x3d0] sm:$0xff] }
0x1850   : > { %v8602_v26 = vld [vmem:[#allocation18 + $0x140] sm:$0xff]  }
0x1851   : > { %v4112_v20 = vmul.f32 %v7294_v18, %v4103_v13  ;;  %v4529_v13 = vld [vmem:[#allocation15 + $0x398] sm:$0xff] }
0x1852   : > { %v8805_v19 = vpop.eup %8804 }
0x1853   : > { %v4104_v22 = vmul.f32 %v8805_v19, %v10351_v50  ;;  %v10359_v21 = vadd.f32 %v7295_v23, %v4112_v20  ;;  %v4511_v50 = vld [vmem:[#allocation15 + $0x158] sm:$0xff]  ;;  %v7354_v20 = vcombine.low %v4525_v61, %v4527_v62 }
0x1854   : > { %v7339_v44 = vcombine.high %v4509_v40, %v4511_v50  ;;  %v7338_v49 = vcombine.low %v4509_v40, %v4511_v50  ;;  %v8609_v40 = vld [vmem:[#allocation18 + $0x188] sm:$0xff]   ;;  %v8610_v50 = vld [vmem:[#allocation18 + $0x150] sm:$0xff]  }
0x1855   : > { %v4113_v24 = vmul.f32 %v7294_v18, %v4104_v22  ;;  %v4531_v18 = vld [vmem:[#allocation15 + $0x3d8] sm:$0xff]  ;;  %v7357_v22 = vcombine.high %v4528_v8, %v4530_v9 }
0x1856   : > { %v7358_v25 = vcombine.low %v4529_v13, %v4531_v18 }
0x1857   : > { %v10361_v28 = vadd.f32 %v7295_v23, %v4113_v24  ;;  %v7359_v23 = vcombine.high %v4529_v13, %v4531_v18  ;;  %v7356_v24 = vcombine.low %v4528_v8, %v4530_v9 }
0x1859   : > { %v10365_v37 = vpack.c.bf16 %v10361_v28, %v10359_v21 }
0x185b   : > { %4371 = vmatmul.mubr.bf16.vlgmr.msra.gmra.mrb[52].mxu0 %v10365_v37  ;;  %4414 = vmatmul.mubr.bf16.vlgmr.msra.gmra.mrb[56].mxu1 %v10365_v37 }
0x185c   : > { %4715 = vmatpush1.bf16.msra.mxu0 %v7328_v16  ;;  %4758 = vmatpush1.bf16.msra.mxu1 %v7330_v51  ;;  %v7349_v16 = vcombine.high %v4520_v33, %v4522_v35  ;;  %v4526_v51 = vld [vmem:[#allocation15 + $0x350] sm:$0xff]  ;;  %v8631_v33 = vld [vmem:[#allocation18 + $0x1f8] sm:$0xff]  }
0x185d   : > { %4716 = vmatprep.subr.bf16.mxu0 %v7333_v59  ;;  %4759 = vmatprep.subr.bf16.mxu1 %v7335_v29  ;;  %v7353_v3 = vcombine.high %v4524_v60, %v4526_v51  ;;  %v7352_v19 = vcombine.low %v4524_v60, %v4526_v51  ;;  %v8605_v59 = vld [vmem:[#allocation18 + $0x180] sm:$0xff]   ;;  %v8606_v29 = vld [vmem:[#allocation18 + $0x148] sm:$0xff]   ;;  %v8632_v35 = vld [vmem:[#allocation18 + $0x138] sm:$0xff]  }
0x185e   : > { %4746 = vmatprep.mubr.bf16.mxu0 %v9319_v0  ;;  %4789 = vmatprep.mubr.bf16.mxu1 %v9319_v0 }
0x1860   : > { %4717 = vmatpush1.bf16.msra.mxu0 %v7332_v41  ;;  %4760 = vmatpush1.bf16.msra.mxu1 %v7334_v42  ;;  %v8611_v41 = vld [vmem:[#allocation18 + $0x1d0] sm:$0xff]  }
0x1861   : > { %4718 = vmatprep.subr.bf16.mxu0 %v7337_v43  ;;  %4761 = vmatprep.subr.bf16.mxu1 %v7339_v44  ;;  %v8612_v42 = vld [vmem:[#allocation18 + $0x110] sm:$0xff]   ;;  %v8614_v44 = vld [vmem:[#allocation18 + $0x158] sm:$0xff]  }
0x1862   : > { %v8613_v43 = vld [vmem:[#allocation18 + $0x190] sm:$0xff]  }
0x1864   : > { %4719 = vmatpush1.bf16.msra.mxu0 %v7336_v32  ;;  %4762 = vmatpush1.bf16.msra.mxu1 %v7338_v49  ;;  %v8619_v32 = vld [vmem:[#allocation18 + $0x1e0] sm:$0xff]  }
0x1865   : > { %4720 = vmatprep.subr.bf16.mxu0 %v7341_v52  ;;  %4763 = vmatprep.subr.bf16.mxu1 %v7343_v53  ;;  %v8620_v49 = vld [vmem:[#allocation18 + $0x120] sm:$0xff]   ;;  %v8622_v53 = vld [vmem:[#allocation18 + $0x168] sm:$0xff]  }
0x1866   : > { %v8621_v52 = vld [vmem:[#allocation18 + $0x1a0] sm:$0xff]  }
0x1868   : > { %4721 = vmatpush1.bf16.msra.mxu0 %v7340_v58  ;;  %4764 = vmatpush1.bf16.msra.mxu1 %v7342_v34  ;;  %v8627_v58 = vld [vmem:[#allocation18 + $0x1f0] sm:$0xff]  }
0x1869   : > { %4722 = vmatprep.subr.bf16.mxu0 %v7345_v30  ;;  %4765 = vmatprep.subr.bf16.mxu1 %v7347_v31  ;;  %v8628_v34 = vld [vmem:[#allocation18 + $0x130] sm:$0xff]   ;;  %v8630_v31 = vld [vmem:[#allocation18 + $0x178] sm:$0xff]  }
0x186a   : > { %v8629_v30 = vld [vmem:[#allocation18 + $0x1b0] sm:$0xff]  }
0x186c   : > { %4723 = vmatpush1.bf16.msra.mxu0 %v7344_v6  ;;  %4766 = vmatpush1.bf16.msra.mxu1 %v7346_v7  ;;  %v8635_v6 = vld [vmem:[#allocation18 + $0xc0] sm:$0xff]   ;;  %v4156_v7 = vld [vmem:[#allocation17] sm:$0xf] }
0x186d   : > { %4724 = vmatprep.subr.bf16.mxu0 %v7349_v16  ;;  %4767 = vmatprep.subr.bf16.mxu1 %v7351_v17  ;;  %v10374_v16 = vsub.s32 3, %v10105_v11  ;;  %v4161_v17 = vrot.slane %v4156_v7, %v10108_v12  ;;  %v4169_v60 = vrot.slane %v4156_v7, %v10111_v14  ;;  %v4165_v51 = vrot.slane %v4156_v7, %v10114_v15 }
0x186f   : > { %v4173_v61 = vrot.slane %v4156_v7, %v10374_v16 }
0x1870   : > { %4725 = vmatpush1.bf16.msra.mxu0 %v7348_v63  ;;  %4768 = vmatpush1.bf16.msra.mxu1 %v7350_v1 }
0x1871   : > { %4726 = vmatprep.subr.bf16.mxu0 %v7353_v3  ;;  %4769 = vmatprep.subr.bf16.mxu1 %v7355_v4 }
0x1874   : > { %4727 = vmatpush1.bf16.msra.mxu0 %v7352_v19  ;;  %4770 = vmatpush1.bf16.msra.mxu1 %v7354_v20 }
0x1875   : > { %4728 = vmatprep.subr.bf16.mxu0 %v7357_v22  ;;  %4771 = vmatprep.subr.bf16.mxu1 %v7359_v23 }
0x1878   : > { %4729 = vmatpush1.bf16.msra.mxu0 %v7356_v24  ;;  %4772 = vmatpush1.bf16.msra.mxu1 %v7358_v25 }
0x1879   : > { %7699 = vmatprep.subr.bf16.mxu0 %v8602_v26  ;;  %7721 = vmatprep.subr.bf16.mxu1 %v8603_v36 }
0x187b   : > { %4747 = vmatmul.mubr.bf16.vlgmr.msra.gmra.mrb[56].mxu0 %v10365_v37  ;;  %4790 = vmatmul.mubr.bf16.vlgmr.msra.gmra.mrb[60].mxu1 %v10365_v37 }
0x187c   : > { %7700 = vmatpush3.bf16.msra.mxu0 %v8604_v27  ;;  %7722 = vmatpush3.bf16.msra.mxu1 %v8605_v59 }
0x187d   : > { %7701 = vmatprep.subr.bf16.mxu0 %v8606_v29  ;;  %7723 = vmatprep.subr.bf16.mxu1 %v8607_v38 }
0x1880   : > { %7702 = vmatpush3.bf16.msra.mxu0 %v8608_v39  ;;  %7724 = vmatpush3.bf16.msra.mxu1 %v8609_v40 }
0x1881   : > { %7703 = vmatprep.subr.bf16.mxu0 %v8610_v50  ;;  %7725 = vmatprep.subr.bf16.mxu1 %v8611_v41 }
0x1884   : > { %7704 = vmatpush3.bf16.msra.mxu0 %v8612_v42  ;;  %7726 = vmatpush3.bf16.msra.mxu1 %v8613_v43 }
0x1885   : > { %7705 = vmatprep.subr.bf16.mxu0 %v8614_v44  ;;  %7727 = vmatprep.subr.bf16.mxu1 %v8615_v45  ;;  %v4532_v44 = vld [vmem:[#allocation17 + $0x4] sm:$0xf] }
0x1886   : > { %v4537_v45 = vrot.slane %v4532_v44, %v10108_v12 }
0x1888   : > { %7706 = vmatpush3.bf16.msra.mxu0 %v8616_v46  ;;  %7728 = vmatpush3.bf16.msra.mxu1 %v8617_v47  ;;  %v4545_v46 = vrot.slane %v4532_v44, %v10111_v14  ;;  %v4541_v47 = vrot.slane %v4532_v44, %v10114_v15 }
0x1889   : > { %7707 = vmatprep.subr.bf16.mxu0 %v8618_v48  ;;  %7729 = vmatprep.subr.bf16.mxu1 %v8619_v32  ;;  %v4549_v48 = vrot.slane %v4532_v44, %v10374_v16  ;;  %v8656_v44 = vld [vmem:[#allocation18 + $0x28] sm:$0xff]  }
0x188c   : > { %7708 = vmatpush3.bf16.msra.mxu0 %v8620_v49  ;;  %7730 = vmatpush3.bf16.msra.mxu1 %v8621_v52 }
0x188d   : > { %7709 = vmatprep.subr.bf16.mxu0 %v8622_v53  ;;  %7731 = vmatprep.subr.bf16.mxu1 %v8623_v54 }
0x1890   : > { %7710 = vmatpush3.bf16.msra.mxu0 %v8624_v55  ;;  %7732 = vmatpush3.bf16.msra.mxu1 %v8625_v56 }
0x1891   : > { %7711 = vmatprep.subr.bf16.mxu0 %v8626_v57  ;;  %7733 = vmatprep.subr.bf16.mxu1 %v8627_v58 }
0x1894   : > { %7712 = vmatpush3.bf16.msra.mxu0 %v8628_v34  ;;  %7734 = vmatpush3.bf16.msra.mxu1 %v8629_v30 }
0x1895   : > { %7713 = vmatprep.subr.bf16.mxu0 %v8630_v31  ;;  %7735 = vmatprep.subr.bf16.mxu1 %v8631_v33 }
0x1898   : > { %7714 = vmatpush3.bf16.msra.mxu0 %v8632_v35  ;;  %7736 = vmatpush3.bf16.msra.mxu1 %v8633_v2 }
0x1899   : > { %7743 = vmatprep.subr.bf16.mxu0 %v8634_v5  ;;  %7765 = vmatprep.subr.bf16.mxu1 %v8635_v6 }
0x192e   : > { %v4372_v62 = vpop.f32.mrb[52].mxu0  ;;  %v4415_v63 = vpop.f32.mrb[56].mxu1 }
0x192f   : > { %v4373_v1 = vadd.f32 %v4372_v62, %v4161_v17  ;;  %v4416_v3 = vadd.f32 %v4415_v63, %v4169_v60  ;;  %v4374_v4 = vpop.f32.mrb[53].mxu0  ;;  %v4417_v8 = vpop.f32.mrb[57].mxu1 }
0x1930   : > { %v4375_v9 = vadd.f32 %v4374_v4, %v4165_v51  ;;  %v4418_v13 = vadd.f32 %v4417_v8, %v4173_v61  ;;  %v4376_v18 = vpop.f32.mrb[54].mxu0  ;;  %v4419_v19 = vpop.f32.mrb[58].mxu1 }
0x1931   : > { %v4377_v11 = vadd.f32 %v4376_v18, %v4161_v17  ;;  %v4420_v20 = vadd.f32 %v4419_v19, %v4169_v60  ;;  %v4378_v22 = vpop.f32.mrb[55].mxu0  ;;  %v4421_v23 = vpop.f32.mrb[59].mxu1  ;;  %v4424_v26 = vmax.f32 %v4373_v1, 0.0  ;;  %v4426_v36 = vmax.f32 %v4416_v3, 0.0  ;;  %v8638_v18 = vld [vmem:[#allocation18 + $0x48] sm:$0xff]  }
0x1932   : > { %v4379_v24 = vadd.f32 %v4378_v22, %v4165_v51  ;;  %v4422_v25 = vadd.f32 %v4421_v23, %v4173_v61  ;;  %v4425_v29 = vmax.f32 %v4375_v9, 0.0  ;;  %v4427_v38 = vmax.f32 %v4418_v13, 0.0  ;;  %v8636_v9 = vld [vmem:[#allocation18] sm:$0xff]   ;;  %v8639_v19 = vld [vmem:[#allocation18 + $0xc8] sm:$0xff]   ;;  %v8642_v22 = vld [vmem:[#allocation18 + $0x50] sm:$0xff]  }
0x1933   : > { %v4428_v27 = vmax.f32 %v4377_v11, 0.0  ;;  %v4430_v59 = vmax.f32 %v4420_v20, 0.0  ;;  %v8637_v13 = vld [vmem:[#allocation18 + $0x80] sm:$0xff]   ;;  %v8640_v11 = vld [vmem:[#allocation18 + $0x8] sm:$0xff]   ;;  %v8643_v23 = vld [vmem:[#allocation18 + $0xd0] sm:$0xff]  }
0x1934   : > { %v4429_v39 = vmax.f32 %v4379_v24, 0.0  ;;  %v4431_v40 = vmax.f32 %v4422_v25, 0.0  ;;  %v8641_v20 = vld [vmem:[#allocation18 + $0x88] sm:$0xff]   ;;  %v8644_v24 = vld [vmem:[#allocation18 + $0x10] sm:$0xff]  }
0x1935   : > { %v10380_v50 = vpack.c.bf16 %v4428_v27, %v4424_v26  ;;  %v10382_v41 = vpack.c.bf16 %v4430_v59, %v4426_v36  ;;  %v8645_v25 = vld [vmem:[#allocation18 + $0x90] sm:$0xff]   ;;  %v8646_v26 = vld [vmem:[#allocation18 + $0x58] sm:$0xff]  }
0x1936   : > { %v4433_v42 = vpack.c.bf16 %v4429_v39, %v4425_v29  ;;  %v4435_v43 = vpack.c.bf16 %v4431_v40, %v4427_v38  ;;  %v8647_v36 = vld [vmem:[#allocation18 + $0xd8] sm:$0xff]   ;;  %v8650_v29 = vld [vmem:[#allocation18 + $0x60] sm:$0xff]  }
0x1937   : > { %v8648_v27 = vld [vmem:[#allocation18 + $0x18] sm:$0xff]   ;;  %v8651_v38 = vld [vmem:[#allocation18 + $0xe0] sm:$0xff]  }
0x1938   : > { %v8649_v59 = vld [vmem:[#allocation18 + $0x98] sm:$0xff]   ;;  %v8652_v39 = vld [vmem:[#allocation18 + $0x20] sm:$0xff]  }
0x1939   : > { %v8653_v40 = vld [vmem:[#allocation18 + $0xa0] sm:$0xff]  }
0x194e   : > { %v4748_v32 = vpop.f32.mrb[56].mxu0  ;;  %v4791_v49 = vpop.f32.mrb[60].mxu1 }
0x194f   : > { %v4749_v52 = vadd.f32 %v4748_v32, %v4537_v45  ;;  %v4792_v53 = vadd.f32 %v4791_v49, %v4545_v46  ;;  %v4750_v54 = vpop.f32.mrb[57].mxu0  ;;  %v4793_v55 = vpop.f32.mrb[61].mxu1  ;;  %v8661_v32 = vld [vmem:[#allocation18 + $0xb0] sm:$0xff]   ;;  %v8662_v49 = vld [vmem:[#allocation18 + $0x78] sm:$0xff]  }
0x1950   : > { %v4751_v56 = vadd.f32 %v4750_v54, %v4541_v47  ;;  %v4794_v57 = vadd.f32 %v4793_v55, %v4549_v48  ;;  %v4752_v58 = vpop.f32.mrb[58].mxu0  ;;  %v4795_v34 = vpop.f32.mrb[62].mxu1  ;;  %v5426_v54 = vld [vmem:[#allocation15 + $0x60] sm:$0xff]  ;;  %v5425_v55 = vld [vmem:[#allocation15 + $0x28] sm:$0xff] }
0x1951   : > { %v4753_v30 = vadd.f32 %v4752_v58, %v4537_v45  ;;  %v4796_v31 = vadd.f32 %v4795_v34, %v4545_v46  ;;  %v4754_v33 = vpop.f32.mrb[59].mxu0  ;;  %v4797_v35 = vpop.f32.mrb[63].mxu1  ;;  %v4800_v6 = vmax.f32 %v4749_v52, 0.0  ;;  %v4802_v7 = vmax.f32 %v4792_v53, 0.0  ;;  %v8657_v45 = vld [vmem:[#allocation18 + $0xa8] sm:$0xff]   ;;  %v8658_v46 = vld [vmem:[#allocation18 + $0x70] sm:$0xff]  }
0x1952   : > { %v4755_v2 = vadd.f32 %v4754_v33, %v4541_v47  ;;  %v4798_v5 = vadd.f32 %v4797_v35, %v4549_v48  ;;  %v4801_v51 = vmax.f32 %v4751_v56, 0.0  ;;  %v4803_v61 = vmax.f32 %v4794_v57, 0.0  ;;  %v8659_v47 = vld [vmem:[#allocation18 + $0xf0] sm:$0xff]   ;;  %v8663_v52 = vld [vmem:[#allocation18 + $0xf8] sm:$0xff]  }
0x1953   : > { %v4804_v17 = vmax.f32 %v4753_v30, 0.0  ;;  %v4806_v60 = vmax.f32 %v4796_v31, 0.0  ;;  %v8660_v48 = vld [vmem:[#allocation18 + $0x30] sm:$0xff]   ;;  %v5427_v56 = vld [vmem:[#allocation15 + $0x68] sm:$0xff] }
0x1954   : > { %v4805_v62 = vmax.f32 %v4755_v2, 0.0  ;;  %v4807_v63 = vmax.f32 %v4798_v5, 0.0  ;;  %v5424_v53 = vld [vmem:[#allocation15 + $0x20] sm:$0xff]  ;;  %v8664_v57 = vld [vmem:[#allocation18 + $0x38] sm:$0xff]   ;;  %v7427_v30 = vcombine.high %v5425_v55, %v5427_v56 }
0x1955   : > { %v4808_v1 = vpack.c.bf16 %v4804_v17, %v4800_v6  ;;  %v4810_v3 = vpack.c.bf16 %v4806_v60, %v4802_v7  ;;  %v8665_v58 = vld [vmem:[#allocation18 + $0xb8] sm:$0xff]   ;;  %v7425_v34 = vcombine.high %v5424_v53, %v5426_v54  ;;  %v5428_v31 = vld [vmem:[#allocation15 + $0xa0] sm:$0xff]  ;;  %v7424_v5 = vcombine.low %v5424_v53, %v5426_v54 }
0x1956   : > { %v4809_v4 = vpack.c.bf16 %v4805_v62, %v4801_v51  ;;  %v4811_v8 = vpack.c.bf16 %v4807_v63, %v4803_v61  ;;  %v5430_v33 = vld [vmem:[#allocation15 + $0xe0] sm:$0xff]  ;;  %v5429_v35 = vld [vmem:[#allocation15 + $0xa8] sm:$0xff]  ;;  %v7426_v6 = vcombine.low %v5425_v55, %v5427_v56 }
0x1957   : > { %v5431_v2 = vld [vmem:[#allocation15 + $0xe8] sm:$0xff]  ;;  %v7429_v7 = vcombine.high %v5428_v31, %v5430_v33  ;;  %v5432_v60 = vld [vmem:[#allocation15 + $0x120] sm:$0xff]  ;;  %v7428_v63 = vcombine.low %v5428_v31, %v5430_v33 }
0x1958   : > { %5100 = vmatprep.mubr.bf16.mxu0 %v4809_v4  ;;  %5141 = vmatprep.mubr.bf16.mxu1 %v4811_v8  ;;  %v7431_v17 = vcombine.high %v5429_v35, %v5431_v2  ;;  %v5434_v51 = vld [vmem:[#allocation15 + $0x160] sm:$0xff]  ;;  %v5433_v61 = vld [vmem:[#allocation15 + $0x128] sm:$0xff] }
0x1959   : > { %5101 = vmatmul.mubr.bf16.vlgmr.msra.gmra.mrb[60].mxu0 %v4808_v1  ;;  %5142 = vmatmul.mubr.bf16.vlgmr.msra.gmra.mrb[64].mxu1 %v4810_v3  ;;  %v5435_v62 = vld [vmem:[#allocation15 + $0x168] sm:$0xff]  ;;  %v7430_v1 = vcombine.low %v5429_v35, %v5431_v2  ;;  %v7433_v3 = vcombine.high %v5432_v60, %v5434_v51  ;;  %v5436_v8 = vld [vmem:[#allocation15 + $0x1a0] sm:$0xff]  ;;  %v8666_v2 = vld [vmem:[#allocation18 + $0x240] sm:$0xff]  }
0x195a   : > { %7744 = vmatpush3.bf16.msra.mxu0 %v8636_v9  ;;  %7766 = vmatpush3.bf16.msra.mxu1 %v8637_v13  ;;  %v7435_v4 = vcombine.high %v5433_v61, %v5435_v62  ;;  %v5438_v9 = vld [vmem:[#allocation15 + $0x1e0] sm:$0xff]  ;;  %v5437_v13 = vld [vmem:[#allocation15 + $0x1a8] sm:$0xff] }
0x195b   : > { %5374 = vmatprep.mubr.bf16.mxu0 %v4433_v42  ;;  %5415 = vmatprep.mubr.bf16.mxu1 %v4435_v43  ;;  %v8654_v42 = vld [vmem:[#allocation18 + $0x68] sm:$0xff]   ;;  %v5452_v54 = vld [vmem:[#allocation15 + $0x3a0] sm:$0xff]  ;;  %v5453_v56 = vld [vmem:[#allocation15 + $0x3a8] sm:$0xff] }
0x195c   : > { %7745 = vmatprep.subr.bf16.mxu0 %v8638_v18  ;;  %7767 = vmatprep.subr.bf16.mxu1 %v8639_v19  ;;  %v8655_v43 = vld [vmem:[#allocation18 + $0xe8] sm:$0xff]   ;;  %v5439_v18 = vld [vmem:[#allocation15 + $0x1e8] sm:$0xff]  ;;  %v7437_v19 = vcombine.high %v5436_v8, %v5438_v9  ;;  %v5454_v55 = vld [vmem:[#allocation15 + $0x3e0] sm:$0xff] }
0x195d   : > { %v7452_v33 = vcombine.low %v5452_v54, %v5454_v55 }
0x195e   : > { %7746 = vmatpush3.bf16.msra.mxu0 %v8640_v11  ;;  %7768 = vmatpush3.bf16.msra.mxu1 %v8641_v20  ;;  %v7439_v11 = vcombine.high %v5437_v13, %v5439_v18  ;;  %v5440_v20 = vld [vmem:[#allocation15 + $0x220] sm:$0xff] }
0x195f   : > { %7747 = vmatprep.subr.bf16.mxu0 %v8642_v22  ;;  %7769 = vmatprep.subr.bf16.mxu1 %v8643_v23  ;;  %v5442_v22 = vld [vmem:[#allocation15 + $0x260] sm:$0xff]  ;;  %v5441_v23 = vld [vmem:[#allocation15 + $0x228] sm:$0xff] }
0x1962   : > { %7748 = vmatpush3.bf16.msra.mxu0 %v8644_v24  ;;  %7770 = vmatpush3.bf16.msra.mxu1 %v8645_v25  ;;  %v5443_v24 = vld [vmem:[#allocation15 + $0x268] sm:$0xff]  ;;  %v7436_v25 = vcombine.low %v5436_v8, %v5438_v9 }
0x1963   : > { %7749 = vmatprep.subr.bf16.mxu0 %v8646_v26  ;;  %7771 = vmatprep.subr.bf16.mxu1 %v8647_v36  ;;  %v7438_v26 = vcombine.low %v5437_v13, %v5439_v18  ;;  %v7441_v36 = vcombine.high %v5440_v20, %v5442_v22  ;;  %v8679_v8 = vld [vmem:[#allocation18 + $0x2d8] sm:$0xff]   ;;  %v8682_v18 = vld [vmem:[#allocation18 + $0x260] sm:$0xff]  }
0x1964   : > { %v8680_v9 = vld [vmem:[#allocation18 + $0x218] sm:$0xff]  }
0x1965   : > { %v8681_v13 = vld [vmem:[#allocation18 + $0x298] sm:$0xff]  }
0x1966   : > { %7750 = vmatpush3.bf16.msra.mxu0 %v8648_v27  ;;  %7772 = vmatpush3.bf16.msra.mxu1 %v8649_v59  ;;  %v7443_v27 = vcombine.high %v5441_v23, %v5443_v24  ;;  %v5444_v59 = vld [vmem:[#allocation15 + $0x2a0] sm:$0xff] }
0x1967   : > { %7751 = vmatprep.subr.bf16.mxu0 %v8650_v29  ;;  %7773 = vmatprep.subr.bf16.mxu1 %v8651_v38  ;;  %v5446_v29 = vld [vmem:[#allocation15 + $0x2e0] sm:$0xff]  ;;  %v5445_v38 = vld [vmem:[#allocation15 + $0x2a8] sm:$0xff] }
0x196a   : > { %7752 = vmatpush3.bf16.msra.mxu0 %v8652_v39  ;;  %7774 = vmatpush3.bf16.msra.mxu1 %v8653_v40  ;;  %v5447_v39 = vld [vmem:[#allocation15 + $0x2e8] sm:$0xff]  ;;  %v7440_v40 = vcombine.low %v5440_v20, %v5442_v22  ;;  %v8687_v20 = vld [vmem:[#allocation18 + $0x2e8] sm:$0xff]  }
0x196b   : > { %7753 = vmatprep.subr.bf16.mxu0 %v8654_v42  ;;  %7775 = vmatprep.subr.bf16.mxu1 %v8655_v43  ;;  %v7442_v42 = vcombine.low %v5441_v23, %v5443_v24  ;;  %v7445_v43 = vcombine.high %v5444_v59, %v5446_v29  ;;  %v8688_v22 = vld [vmem:[#allocation18 + $0x228] sm:$0xff]   ;;  %v8690_v24 = vld [vmem:[#allocation18 + $0x270] sm:$0xff]  }
0x196c   : > { %v8689_v23 = vld [vmem:[#allocation18 + $0x2a8] sm:$0xff]  }
0x196e   : > { %7754 = vmatpush3.bf16.msra.mxu0 %v8656_v44  ;;  %7776 = vmatpush3.bf16.msra.mxu1 %v8657_v45  ;;  %v7447_v44 = vcombine.high %v5445_v38, %v5447_v39  ;;  %v5448_v45 = vld [vmem:[#allocation15 + $0x320] sm:$0xff] }
0x196f   : > { %7755 = vmatprep.subr.bf16.mxu0 %v8658_v46  ;;  %7777 = vmatprep.subr.bf16.mxu1 %v8659_v47  ;;  %v5450_v46 = vld [vmem:[#allocation15 + $0x360] sm:$0xff]  ;;  %v5449_v47 = vld [vmem:[#allocation15 + $0x328] sm:$0xff] }
0x1972   : > { %7756 = vmatpush3.bf16.msra.mxu0 %v8660_v48  ;;  %7778 = vmatpush3.bf16.msra.mxu1 %v8661_v32  ;;  %v5451_v48 = vld [vmem:[#allocation15 + $0x368] sm:$0xff]  ;;  %v7444_v32 = vcombine.low %v5444_v59, %v5446_v29 }
0x1973   : > { %7757 = vmatprep.subr.bf16.mxu0 %v8662_v49  ;;  %7779 = vmatprep.subr.bf16.mxu1 %v8663_v52  ;;  %v7446_v49 = vcombine.low %v5445_v38, %v5447_v39  ;;  %v7449_v52 = vcombine.high %v5448_v45, %v5450_v46  ;;  %v7451_v53 = vcombine.high %v5449_v47, %v5451_v48  ;;  %v8695_v59 = vld [vmem:[#allocation18 + $0x2f8] sm:$0xff]   ;;  %v10394_v39 = vld [vmem:[#allocation15 + $0x30] sm:$0xff] }
0x1974   : > { %v8696_v29 = vld [vmem:[#allocation18 + $0x238] sm:$0xff]  }
0x1975   : > { %v8697_v38 = vld [vmem:[#allocation18 + $0x2b8] sm:$0xff]  }
0x1976   : > { %7758 = vmatpush3.bf16.msra.mxu0 %v8664_v57  ;;  %7780 = vmatpush3.bf16.msra.mxu1 %v8665_v58  ;;  %v5455_v57 = vld [vmem:[#allocation15 + $0x3e8] sm:$0xff]  ;;  %v7448_v58 = vcombine.low %v5448_v45, %v5450_v46 }
0x1977   : > { %5638 = vmatprep.subr.bf16.mxu0 %v7425_v34  ;;  %5681 = vmatprep.subr.bf16.mxu1 %v7427_v30  ;;  %v7450_v34 = vcombine.low %v5449_v47, %v5451_v48  ;;  %v7453_v30 = vcombine.high %v5452_v54, %v5454_v55  ;;  %v7455_v31 = vcombine.high %v5453_v56, %v5455_v57 }
0x1978   : > { %v7454_v35 = vcombine.low %v5453_v56, %v5455_v57 }
0x1979   : > { %5375 = vmatmul.mubr.bf16.vlgmr.msra.gmra.mrb[64].mxu0 %v10380_v50  ;;  %5416 = vmatmul.mubr.bf16.vlgmr.msra.gmra.mrb[68].mxu1 %v10382_v41  ;;  %v7432_v50 = vcombine.low %v5432_v60, %v5434_v51  ;;  %v7434_v41 = vcombine.low %v5433_v61, %v5435_v62  ;;  %v8671_v60 = vld [vmem:[#allocation18 + $0x2c8] sm:$0xff]   ;;  %v8674_v62 = vld [vmem:[#allocation18 + $0x250] sm:$0xff]  }
0x197a   : > { %5639 = vmatpush1.bf16.msra.mxu0 %v7424_v5  ;;  %5682 = vmatpush1.bf16.msra.mxu1 %v7426_v6  ;;  %v8667_v5 = vld [vmem:[#allocation18 + $0x2c0] sm:$0xff]   ;;  %v8672_v51 = vld [vmem:[#allocation18 + $0x208] sm:$0xff]  }
0x197b   : > { %5640 = vmatprep.subr.bf16.mxu0 %v7429_v7  ;;  %5683 = vmatprep.subr.bf16.mxu1 %v7431_v17  ;;  %v8668_v6 = vld [vmem:[#allocation18 + $0x200] sm:$0xff]   ;;  %v8670_v17 = vld [vmem:[#allocation18 + $0x248] sm:$0xff]  }
0x197c   : > { %5670 = vmatprep.mubr.bf16.mxu0 %v9319_v0  ;;  %5713 = vmatprep.mubr.bf16.mxu1 %v9319_v0  ;;  %v8669_v7 = vld [vmem:[#allocation18 + $0x280] sm:$0xff]   ;;  %v8673_v61 = vld [vmem:[#allocation18 + $0x288] sm:$0xff]  }
0x197e   : > { %5641 = vmatpush1.bf16.msra.mxu0 %v7428_v63  ;;  %5684 = vmatpush1.bf16.msra.mxu1 %v7430_v1  ;;  %v8675_v63 = vld [vmem:[#allocation18 + $0x2d0] sm:$0xff]  }
0x197f   : > { %5642 = vmatprep.subr.bf16.mxu0 %v7433_v3  ;;  %5685 = vmatprep.subr.bf16.mxu1 %v7435_v4  ;;  %v8676_v1 = vld [vmem:[#allocation18 + $0x210] sm:$0xff]   ;;  %v8678_v4 = vld [vmem:[#allocation18 + $0x258] sm:$0xff]  }
0x1980   : > { %v8677_v3 = vld [vmem:[#allocation18 + $0x290] sm:$0xff]  }
0x1982   : > { %5643 = vmatpush1.bf16.msra.mxu0 %v7432_v50  ;;  %5686 = vmatpush1.bf16.msra.mxu1 %v7434_v41  ;;  %v8683_v50 = vld [vmem:[#allocation18 + $0x2e0] sm:$0xff]  }
0x1983   : > { %5644 = vmatprep.subr.bf16.mxu0 %v7437_v19  ;;  %5687 = vmatprep.subr.bf16.mxu1 %v7439_v11  ;;  %v8684_v41 = vld [vmem:[#allocation18 + $0x220] sm:$0xff]   ;;  %v8686_v11 = vld [vmem:[#allocation18 + $0x268] sm:$0xff]  }
0x1984   : > { %v8685_v19 = vld [vmem:[#allocation18 + $0x2a0] sm:$0xff]  }
0x1986   : > { %5645 = vmatpush1.bf16.msra.mxu0 %v7436_v25  ;;  %5688 = vmatpush1.bf16.msra.mxu1 %v7438_v26  ;;  %v8691_v25 = vld [vmem:[#allocation18 + $0x2f0] sm:$0xff]  }
0x1987   : > { %5646 = vmatprep.subr.bf16.mxu0 %v7441_v36  ;;  %5689 = vmatprep.subr.bf16.mxu1 %v7443_v27  ;;  %v8692_v26 = vld [vmem:[#allocation18 + $0x230] sm:$0xff]   ;;  %v8694_v27 = vld [vmem:[#allocation18 + $0x278] sm:$0xff]  }
0x1988   : > { %v8693_v36 = vld [vmem:[#allocation18 + $0x2b0] sm:$0xff]  }
0x198a   : > { %5647 = vmatpush1.bf16.msra.mxu0 %v7440_v40  ;;  %5690 = vmatpush1.bf16.msra.mxu1 %v7442_v42  ;;  %v10396_v40 = vld [vmem:[#allocation15 + $0x70] sm:$0xff]  ;;  %v10398_v42 = vld [vmem:[#allocation15 + $0x38] sm:$0xff] }
0x198b   : > { %5648 = vmatprep.subr.bf16.mxu0 %v7445_v43  ;;  %5691 = vmatprep.subr.bf16.mxu1 %v7447_v44  ;;  %v7489_v43 = vcombine.high %v10394_v39, %v10396_v40  ;;  %v10402_v44 = vld [vmem:[#allocation15 + $0x78] sm:$0xff]  ;;  %v7488_v45 = vcombine.low %v10394_v39, %v10396_v40 }
0x198c   : > { %v7490_v46 = vcombine.low %v10398_v42, %v10402_v44  ;;  %v7491_v47 = vcombine.high %v10398_v42, %v10402_v44 }
0x198e   : > { %5649 = vmatpush1.bf16.msra.mxu0 %v7444_v32  ;;  %5692 = vmatpush1.bf16.msra.mxu1 %v7446_v49 }
0x198f   : > { %5650 = vmatprep.subr.bf16.mxu0 %v7449_v52  ;;  %5693 = vmatprep.subr.bf16.mxu1 %v7451_v53 }
0x1992   : > { %5651 = vmatpush1.bf16.msra.mxu0 %v7448_v58  ;;  %5694 = vmatpush1.bf16.msra.mxu1 %v7450_v34 }
0x1993   : > { %5652 = vmatprep.subr.bf16.mxu0 %v7453_v30  ;;  %5695 = vmatprep.subr.bf16.mxu1 %v7455_v31 }
0x1996   : > { %5653 = vmatpush1.bf16.msra.mxu0 %v7452_v33  ;;  %5696 = vmatpush1.bf16.msra.mxu1 %v7454_v35 }
0x1997   : > { %7787 = vmatprep.subr.bf16.mxu0 %v8666_v2  ;;  %7809 = vmatprep.subr.bf16.mxu1 %v8667_v5 }
0x1999   : > { %5671 = vmatmul.mubr.bf16.vlgmr.msra.gmra.mrb[68].mxu0 %v10365_v37  ;;  %5714 = vmatmul.mubr.bf16.vlgmr.msra.gmra.mrb[72].mxu1 %v10365_v37 }
0x199a   : > { %7788 = vmatpush3.bf16.msra.mxu0 %v8668_v6  ;;  %7810 = vmatpush3.bf16.msra.mxu1 %v8669_v7 }
0x199b   : > { %7789 = vmatprep.subr.bf16.mxu0 %v8670_v17  ;;  %7811 = vmatprep.subr.bf16.mxu1 %v8671_v60 }
0x199e   : > { %7790 = vmatpush3.bf16.msra.mxu0 %v8672_v51  ;;  %7812 = vmatpush3.bf16.msra.mxu1 %v8673_v61 }
0x199f   : > { %7791 = vmatprep.subr.bf16.mxu0 %v8674_v62  ;;  %7813 = vmatprep.subr.bf16.mxu1 %v8675_v63 }
0x19a2   : > { %7792 = vmatpush3.bf16.msra.mxu0 %v8676_v1  ;;  %7814 = vmatpush3.bf16.msra.mxu1 %v8677_v3 }
0x19a3   : > { %7793 = vmatprep.subr.bf16.mxu0 %v8678_v4  ;;  %7815 = vmatprep.subr.bf16.mxu1 %v8679_v8 }
0x19a6   : > { %7794 = vmatpush3.bf16.msra.mxu0 %v8680_v9  ;;  %7816 = vmatpush3.bf16.msra.mxu1 %v8681_v13  ;;  %v5456_v13 = vld [vmem:[#allocation17 + $0x8] sm:$0xf] }
0x19a7   : > { %7795 = vmatprep.subr.bf16.mxu0 %v8682_v18  ;;  %7817 = vmatprep.subr.bf16.mxu1 %v8683_v50  ;;  %v5461_v18 = vrot.slane %v5456_v13, %v10108_v12  ;;  %v5469_v50 = vrot.slane %v5456_v13, %v10111_v14 }
0x19aa   : > { %7796 = vmatpush3.bf16.msra.mxu0 %v8684_v41  ;;  %7818 = vmatpush3.bf16.msra.mxu1 %v8685_v19  ;;  %v5465_v41 = vrot.slane %v5456_v13, %v10114_v15  ;;  %v5473_v19 = vrot.slane %v5456_v13, %v10374_v16  ;;  %v6088_v13 = vld [vmem:[#allocation15 + $0x1b0] sm:$0xff] }
0x19ab   : > { %7797 = vmatprep.subr.bf16.mxu0 %v8686_v11  ;;  %7819 = vmatprep.subr.bf16.mxu1 %v8687_v20 }
0x19ae   : > { %7798 = vmatpush3.bf16.msra.mxu0 %v8688_v22  ;;  %7820 = vmatpush3.bf16.msra.mxu1 %v8689_v23 }
0x19af   : > { %7799 = vmatprep.subr.bf16.mxu0 %v8690_v24  ;;  %7821 = vmatprep.subr.bf16.mxu1 %v8691_v25 }
0x19b2   : > { %7800 = vmatpush3.bf16.msra.mxu0 %v8692_v26  ;;  %7822 = vmatpush3.bf16.msra.mxu1 %v8693_v36 }
0x19b3   : > { %7801 = vmatprep.subr.bf16.mxu0 %v8694_v27  ;;  %7823 = vmatprep.subr.bf16.mxu1 %v8695_v59 }
0x19b6   : > { %7802 = vmatpush3.bf16.msra.mxu0 %v8696_v29  ;;  %7824 = vmatpush3.bf16.msra.mxu1 %v8697_v38 }
0x19b7   : > { %6290 = vmatprep.subr.bf16.mxu0 %v7489_v43  ;;  %6333 = vmatprep.subr.bf16.mxu1 %v7491_v47 }
0x1a2c   : > { %v7715_v48 = vpop.f32.mrb[60].mxu0  ;;  %v7737_v32 = vpop.f32.mrb[64].mxu1 }
0x1a2d   : > { %v7716_v49 = vpop.f32.mrb[61].mxu0  ;;  %v7738_v52 = vpop.f32.mrb[65].mxu1 }
0x1a2e   : > { %v7717_v53 = vadd.f32 %v7716_v49, %v7715_v48  ;;  %v7739_v54 = vadd.f32 %v7738_v52, %v7737_v32  ;;  %v7718_v55 = vpop.f32.mrb[62].mxu0  ;;  %v7740_v56 = vpop.f32.mrb[66].mxu1 }
0x1a2f   : > { %v7719_v57 = vpop.f32.mrb[63].mxu0  ;;  %v7741_v58 = vpop.f32.mrb[67].mxu1 }
0x1a30   : > { %v5144_v34 = vadd.f32 %v7739_v54, %v7717_v53  ;;  %v7720_v30 = vadd.f32 %v7719_v57, %v7718_v55  ;;  %v7742_v31 = vadd.f32 %v7741_v58, %v7740_v56  ;;  %v6080_v55 = vld [vmem:[#allocation15 + $0xb0] sm:$0xff] }
0x1a31   : > { %v6082_v56 = vld [vmem:[#allocation15 + $0xf0] sm:$0xff] }
0x1a32   : > { %v5147_v33 = vadd.f32 %v7742_v31, %v7720_v30  ;;  %v6081_v31 = vld [vmem:[#allocation15 + $0xb8] sm:$0xff] }
0x1a4c   : > { %v7759_v35 = vpop.f32.mrb[64].mxu0  ;;  %v7781_v2 = vpop.f32.mrb[68].mxu1 }
0x1a4d   : > { %v7760_v5 = vpop.f32.mrb[65].mxu0  ;;  %v7782_v6 = vpop.f32.mrb[69].mxu1 }
0x1a4e   : > { %v7761_v7 = vadd.f32 %v7760_v5, %v7759_v35  ;;  %v7783_v17 = vadd.f32 %v7782_v6, %v7781_v2  ;;  %v7762_v60 = vpop.f32.mrb[66].mxu0  ;;  %v7784_v51 = vpop.f32.mrb[70].mxu1 }
0x1a4f   : > { %v7763_v61 = vpop.f32.mrb[67].mxu0  ;;  %v7785_v62 = vpop.f32.mrb[71].mxu1 }
0x1a50   : > { %v5377_v63 = vadd.f32 %v7761_v7, %v5144_v34  ;;  %v7764_v1 = vadd.f32 %v7763_v61, %v7762_v60  ;;  %v7786_v3 = vadd.f32 %v7785_v62, %v7784_v51  ;;  %v7493_v7 = vcombine.high %v6080_v55, %v6082_v56  ;;  %v6084_v60 = vld [vmem:[#allocation15 + $0x130] sm:$0xff]  ;;  %v6085_v61 = vld [vmem:[#allocation15 + $0x138] sm:$0xff] }
0x1a51   : > { %v6086_v51 = vld [vmem:[#allocation15 + $0x170] sm:$0xff]  ;;  %v6087_v62 = vld [vmem:[#allocation15 + $0x178] sm:$0xff] }
0x1a52   : > { %v10410_v4 = vadd.f32 %v7783_v17, %v5377_v63  ;;  %v5380_v8 = vadd.f32 %v7764_v1, %v5147_v33  ;;  %v6083_v33 = vld [vmem:[#allocation15 + $0xf8] sm:$0xff]  ;;  %v7492_v63 = vcombine.low %v6080_v55, %v6082_v56  ;;  %v7496_v39 = vcombine.low %v6084_v60, %v6086_v51  ;;  %v6104_v55 = vld [vmem:[#allocation15 + $0x3b0] sm:$0xff] }
0x1a53   : > { %v7495_v17 = vcombine.high %v6081_v31, %v6083_v33  ;;  %v7494_v1 = vcombine.low %v6081_v31, %v6083_v33  ;;  %v7498_v40 = vcombine.low %v6085_v61, %v6087_v62  ;;  %v6106_v56 = vld [vmem:[#allocation15 + $0x3f0] sm:$0xff] }
0x1a54   : > { %v10412_v9 = vadd.f32 %v7786_v3, %v5380_v8  ;;  %v7497_v3 = vcombine.high %v6084_v60, %v6086_v51  ;;  %v7499_v8 = vcombine.high %v6085_v61, %v6087_v62  ;;  %v7517_v31 = vcombine.high %v6104_v55, %v6106_v56  ;;  %v8702_v60 = vld [vmem:[#allocation18 + $0x348] sm:$0xff]  }
0x1a55   : > { %v8703_v51 = vld [vmem:[#allocation18 + $0x3c8] sm:$0xff]  }
0x1a56   : > { %v8704_v61 = vld [vmem:[#allocation18 + $0x308] sm:$0xff]  }
0x1a57   : > { %v8705_v62 = vld [vmem:[#allocation18 + $0x388] sm:$0xff]  }
0x1a6c   : > { %v5672_v11 = vpop.f32.mrb[68].mxu0  ;;  %v5715_v20 = vpop.f32.mrb[72].mxu1 }
0x1a6d   : > { %v5673_v22 = vadd.f32 %v5672_v11, %v5461_v18  ;;  %v5716_v23 = vadd.f32 %v5715_v20, %v5469_v50  ;;  %v5674_v24 = vpop.f32.mrb[69].mxu0  ;;  %v5717_v25 = vpop.f32.mrb[73].mxu1  ;;  %v6095_v11 = vld [vmem:[#allocation15 + $0x278] sm:$0xff] }
0x1a6e   : > { %v5675_v26 = vadd.f32 %v5674_v24, %v5465_v41  ;;  %v5718_v36 = vadd.f32 %v5717_v25, %v5473_v19  ;;  %v5676_v27 = vpop.f32.mrb[70].mxu0  ;;  %v5719_v59 = vpop.f32.mrb[74].mxu1  ;;  %v6096_v24 = vld [vmem:[#allocation15 + $0x2b0] sm:$0xff] }
0x1a6f   : > { %v5677_v29 = vadd.f32 %v5676_v27, %v5461_v18  ;;  %v5720_v38 = vadd.f32 %v5719_v59, %v5469_v50  ;;  %v5678_v43 = vpop.f32.mrb[71].mxu0  ;;  %v5721_v47 = vpop.f32.mrb[75].mxu1  ;;  %v5724_v49 = vmax.f32 %v5673_v22, 0.0  ;;  %v5726_v52 = vmax.f32 %v5716_v23, 0.0  ;;  %v6090_v18 = vld [vmem:[#allocation15 + $0x1f0] sm:$0xff]  ;;  %v6089_v50 = vld [vmem:[#allocation15 + $0x1b8] sm:$0xff] }
0x1a70   : > { %v5679_v48 = vadd.f32 %v5678_v43, %v5465_v41  ;;  %v5722_v32 = vadd.f32 %v5721_v47, %v5473_v19  ;;  %v5725_v57 = vmax.f32 %v5675_v26, 0.0  ;;  %v5727_v58 = vmax.f32 %v5718_v36, 0.0  ;;  %v6091_v41 = vld [vmem:[#allocation15 + $0x1f8] sm:$0xff]  ;;  %v6098_v25 = vld [vmem:[#allocation15 + $0x2f0] sm:$0xff] }
0x1a71   : > { %v5728_v53 = vmax.f32 %v5677_v29, 0.0  ;;  %v5730_v54 = vmax.f32 %v5720_v38, 0.0  ;;  %v7501_v42 = vcombine.high %v6088_v13, %v6090_v18  ;;  %v7503_v44 = vcombine.high %v6089_v50, %v6091_v41  ;;  %v6093_v19 = vld [vmem:[#allocation15 + $0x238] sm:$0xff]  ;;  %v6100_v43 = vld [vmem:[#allocation15 + $0x330] sm:$0xff] }
0x1a72   : > { %v5729_v34 = vmax.f32 %v5679_v48, 0.0  ;;  %v5731_v30 = vmax.f32 %v5722_v32, 0.0  ;;  %v7500_v20 = vcombine.low %v6088_v13, %v6090_v18  ;;  %v7502_v22 = vcombine.low %v6089_v50, %v6091_v41  ;;  %v6097_v26 = vld [vmem:[#allocation15 + $0x2b8] sm:$0xff]  ;;  %v6102_v47 = vld [vmem:[#allocation15 + $0x370] sm:$0xff]  ;;  %v8711_v13 = vld [vmem:[#allocation18 + $0x3d8] sm:$0xff]  }
0x1a73   : > { %v5732_v35 = vpack.c.bf16 %v5728_v53, %v5724_v49  ;;  %v5734_v2 = vpack.c.bf16 %v5730_v54, %v5726_v52  ;;  %v6099_v36 = vld [vmem:[#allocation15 + $0x2f8] sm:$0xff]  ;;  %v7506_v59 = vcombine.low %v6093_v19, %v6095_v11  ;;  %v7509_v29 = vcombine.high %v6096_v24, %v6098_v25  ;;  %v8712_v18 = vld [vmem:[#allocation18 + $0x318] sm:$0xff]   ;;  %v8714_v41 = vld [vmem:[#allocation18 + $0x360] sm:$0xff]  }
0x1a74   : > { %v5733_v5 = vpack.c.bf16 %v5729_v34, %v5725_v57  ;;  %v5735_v6 = vpack.c.bf16 %v5731_v30, %v5727_v58  ;;  %v7511_v38 = vcombine.high %v6097_v26, %v6099_v36  ;;  %v6101_v48 = vld [vmem:[#allocation15 + $0x338] sm:$0xff]  ;;  %v7508_v49 = vcombine.low %v6096_v24, %v6098_v25  ;;  %v8713_v50 = vld [vmem:[#allocation18 + $0x398] sm:$0xff]  }
0x1a75   : > { %v6103_v32 = vld [vmem:[#allocation15 + $0x378] sm:$0xff]  ;;  %v7510_v52 = vcombine.low %v6097_v26, %v6099_v36  ;;  %v7513_v53 = vcombine.high %v6100_v43, %v6102_v47  ;;  %v7512_v34 = vcombine.low %v6100_v43, %v6102_v47  ;;  %v8727_v24 = vld [vmem:[#allocation18 + $0x3f8] sm:$0xff]  }
0x1a76   : > { %6024 = vmatprep.mubr.bf16.mxu0 %v5733_v5  ;;  %6065 = vmatprep.mubr.bf16.mxu1 %v5735_v6  ;;  %v7515_v54 = vcombine.high %v6101_v48, %v6103_v32  ;;  %v6105_v57 = vld [vmem:[#allocation15 + $0x3b8] sm:$0xff]  ;;  %v7514_v30 = vcombine.low %v6101_v48, %v6103_v32  ;;  %v8698_v5 = vld [vmem:[#allocation18 + $0x340] sm:$0xff]   ;;  %v8728_v25 = vld [vmem:[#allocation18 + $0x338] sm:$0xff]  }
0x1a77   : > { %6025 = vmatmul.mubr.bf16.vlgmr.msra.gmra.mrb[72].mxu0 %v5732_v35  ;;  %6066 = vmatmul.mubr.bf16.vlgmr.msra.gmra.mrb[76].mxu1 %v5734_v2  ;;  %v6107_v58 = vld [vmem:[#allocation15 + $0x3f8] sm:$0xff]  ;;  %v7516_v35 = vcombine.low %v6104_v55, %v6106_v56  ;;  %v8699_v6 = vld [vmem:[#allocation18 + $0x3c0] sm:$0xff]   ;;  %v8729_v26 = vld [vmem:[#allocation18 + $0x3b8] sm:$0xff]  }
0x1a78   : > { %6291 = vmatpush1.bf16.msra.mxu0 %v7488_v45  ;;  %6334 = vmatpush1.bf16.msra.mxu1 %v7490_v46  ;;  %v6092_v45 = vld [vmem:[#allocation15 + $0x230] sm:$0xff]  ;;  %v7519_v33 = vcombine.high %v6105_v57, %v6107_v58  ;;  %v7518_v2 = vcombine.low %v6105_v57, %v6107_v58  ;;  %v6108_v58 = vld [vmem:[#allocation17 + $0xc] sm:$0xf] }
0x1a79   : > { %6292 = vmatprep.subr.bf16.mxu0 %v7493_v7  ;;  %6335 = vmatprep.subr.bf16.mxu1 %v7495_v17  ;;  %v6094_v46 = vld [vmem:[#allocation15 + $0x270] sm:$0xff] }
0x1a7a   : > { %6322 = vmatprep.mubr.bf16.mxu0 %v9319_v0  ;;  %6365 = vmatprep.mubr.bf16.mxu1 %v9319_v0  ;;  %v7505_v23 = vcombine.high %v6092_v45, %v6094_v46  ;;  %v7507_v0 = vcombine.high %v6093_v19, %v6095_v11  ;;  %v7504_v27 = vcombine.low %v6092_v45, %v6094_v46  ;;  %v8700_v7 = vld [vmem:[#allocation18 + $0x300] sm:$0xff]   ;;  %v8719_v45 = vld [vmem:[#allocation18 + $0x3e8] sm:$0xff]   ;;  %v8722_v11 = vld [vmem:[#allocation18 + $0x370] sm:$0xff]  }
0x1a7b   : > { %v8701_v17 = vld [vmem:[#allocation18 + $0x380] sm:$0xff]   ;;  %v8720_v46 = vld [vmem:[#allocation18 + $0x328] sm:$0xff]  }
0x1a7c   : > { %6293 = vmatpush1.bf16.msra.mxu0 %v7492_v63  ;;  %6336 = vmatpush1.bf16.msra.mxu1 %v7494_v1  ;;  %v8706_v63 = vld [vmem:[#allocation18 + $0x350] sm:$0xff]   ;;  %v8721_v19 = vld [vmem:[#allocation18 + $0x3a8] sm:$0xff]  }
0x1a7d   : > { %6294 = vmatprep.subr.bf16.mxu0 %v7497_v3  ;;  %6337 = vmatprep.subr.bf16.mxu1 %v7499_v8  ;;  %v8707_v1 = vld [vmem:[#allocation18 + $0x3d0] sm:$0xff]   ;;  %v8710_v8 = vld [vmem:[#allocation18 + $0x358] sm:$0xff]  }
0x1a7e   : > { %v8708_v3 = vld [vmem:[#allocation18 + $0x310] sm:$0xff]  }
0x1a80   : > { %6295 = vmatpush1.bf16.msra.mxu0 %v7496_v39  ;;  %6338 = vmatpush1.bf16.msra.mxu1 %v7498_v40  ;;  %v8715_v39 = vld [vmem:[#allocation18 + $0x3e0] sm:$0xff]  }
0x1a81   : > { %6296 = vmatprep.subr.bf16.mxu0 %v7501_v42  ;;  %6339 = vmatprep.subr.bf16.mxu1 %v7503_v44  ;;  %v8716_v40 = vld [vmem:[#allocation18 + $0x320] sm:$0xff]   ;;  %v8718_v44 = vld [vmem:[#allocation18 + $0x368] sm:$0xff]  }
0x1a82   : > { %v8717_v42 = vld [vmem:[#allocation18 + $0x3a0] sm:$0xff]  }
0x1a84   : > { %6297 = vmatpush1.bf16.msra.mxu0 %v7500_v20  ;;  %6340 = vmatpush1.bf16.msra.mxu1 %v7502_v22  ;;  %v8723_v20 = vld [vmem:[#allocation18 + $0x3f0] sm:$0xff]  }
0x1a85   : > { %6298 = vmatprep.subr.bf16.mxu0 %v7505_v23  ;;  %6341 = vmatprep.subr.bf16.mxu1 %v7507_v0  ;;  %v8724_v22 = vld [vmem:[#allocation18 + $0x330] sm:$0xff]   ;;  %v8726_v0 = vld [vmem:[#allocation18 + $0x378] sm:$0xff]  }
0x1a86   : > { %v8725_v23 = vld [vmem:[#allocation18 + $0x3b0] sm:$0xff]  }
0x1a88   : > { %6299 = vmatpush1.bf16.msra.mxu0 %v7504_v27  ;;  %6342 = vmatpush1.bf16.msra.mxu1 %v7506_v59 }
0x1a89   : > { %6300 = vmatprep.subr.bf16.mxu0 %v7509_v29  ;;  %6343 = vmatprep.subr.bf16.mxu1 %v7511_v38 }
0x1a8c   : > { %6301 = vmatpush1.bf16.msra.mxu0 %v7508_v49  ;;  %6344 = vmatpush1.bf16.msra.mxu1 %v7510_v52 }
0x1a8d   : > { %6302 = vmatprep.subr.bf16.mxu0 %v7513_v53  ;;  %6345 = vmatprep.subr.bf16.mxu1 %v7515_v54 }
0x1a90   : > { %6303 = vmatpush1.bf16.msra.mxu0 %v7512_v34  ;;  %6346 = vmatpush1.bf16.msra.mxu1 %v7514_v30  ;;  %v6113_v34 = vrot.slane %v6108_v58, %v10108_v12  ;;  %v6121_v30 = vrot.slane %v6108_v58, %v10111_v14 }
0x1a91   : > { %6304 = vmatprep.subr.bf16.mxu0 %v7517_v31  ;;  %6347 = vmatprep.subr.bf16.mxu1 %v7519_v33  ;;  %v6117_v31 = vrot.slane %v6108_v58, %v10114_v15  ;;  %v6125_v33 = vrot.slane %v6108_v58, %v10374_v16 }
0x1a94   : > { %6305 = vmatpush1.bf16.msra.mxu0 %v7516_v35  ;;  %6348 = vmatpush1.bf16.msra.mxu1 %v7518_v2 }
0x1a95   : > { %7831 = vmatprep.subr.bf16.mxu0 %v8698_v5  ;;  %7853 = vmatprep.subr.bf16.mxu1 %v8699_v6 }
0x1a97   : > { %6323 = vmatmul.mubr.bf16.vlgmr.msra.gmra.mrb[76].mxu0 %v10365_v37  ;;  %6366 = vmatmul.mubr.bf16.vlgmr.msra.gmra.mrb[80].mxu1 %v10365_v37  ;;  %v8709_v37 = vld [vmem:[#allocation18 + $0x390] sm:$0xff]  }
0x1a98   : > { %7832 = vmatpush3.bf16.msra.mxu0 %v8700_v7  ;;  %7854 = vmatpush3.bf16.msra.mxu1 %v8701_v17 }
0x1a99   : > { %7833 = vmatprep.subr.bf16.mxu0 %v8702_v60  ;;  %7855 = vmatprep.subr.bf16.mxu1 %v8703_v51 }
0x1a9c   : > { %7834 = vmatpush3.bf16.msra.mxu0 %v8704_v61  ;;  %7856 = vmatpush3.bf16.msra.mxu1 %v8705_v62 }
0x1a9d   : > { %7835 = vmatprep.subr.bf16.mxu0 %v8706_v63  ;;  %7857 = vmatprep.subr.bf16.mxu1 %v8707_v1 }
0x1aa0   : > { %7836 = vmatpush3.bf16.msra.mxu0 %v8708_v3  ;;  %7858 = vmatpush3.bf16.msra.mxu1 %v8709_v37 }
0x1aa1   : > { %7837 = vmatprep.subr.bf16.mxu0 %v8710_v8  ;;  %7859 = vmatprep.subr.bf16.mxu1 %v8711_v13 }
0x1aa4   : > { %7838 = vmatpush3.bf16.msra.mxu0 %v8712_v18  ;;  %7860 = vmatpush3.bf16.msra.mxu1 %v8713_v50 }
0x1aa5   : > { %7839 = vmatprep.subr.bf16.mxu0 %v8714_v41  ;;  %7861 = vmatprep.subr.bf16.mxu1 %v8715_v39 }
0x1aa8   : > { %7840 = vmatpush3.bf16.msra.mxu0 %v8716_v40  ;;  %7862 = vmatpush3.bf16.msra.mxu1 %v8717_v42 }
0x1aa9   : > { %7841 = vmatprep.subr.bf16.mxu0 %v8718_v44  ;;  %7863 = vmatprep.subr.bf16.mxu1 %v8719_v45 }
0x1aac   : > { %7842 = vmatpush3.bf16.msra.mxu0 %v8720_v46  ;;  %7864 = vmatpush3.bf16.msra.mxu1 %v8721_v19 }
0x1aad   : > { %7843 = vmatprep.subr.bf16.mxu0 %v8722_v11  ;;  %7865 = vmatprep.subr.bf16.mxu1 %v8723_v20 }
0x1ab0   : > { %7844 = vmatpush3.bf16.msra.mxu0 %v8724_v22  ;;  %7866 = vmatpush3.bf16.msra.mxu1 %v8725_v23 }
0x1ab1   : > { %7845 = vmatprep.subr.bf16.mxu0 %v8726_v0  ;;  %7867 = vmatprep.subr.bf16.mxu1 %v8727_v24 }
0x1ab4   : > { %7846 = vmatpush3.bf16.msra.mxu0 %v8728_v25  ;;  %7868 = vmatpush3.bf16.msra.mxu1 %v8729_v26 }
0x1ab5   : > { %8166 = vmatprep.subr.bf16.mxu0 %v9321_v10 }
0x1b4a   : > { %v7803_v36 = vpop.f32.mrb[72].mxu0  ;;  %v7825_v27 = vpop.f32.mrb[76].mxu1 }
0x1b4b   : > { %v7804_v59 = vpop.f32.mrb[73].mxu0  ;;  %v7826_v29 = vpop.f32.mrb[77].mxu1 }
0x1b4c   : > { %v7805_v38 = vadd.f32 %v7804_v59, %v7803_v36  ;;  %v7827_v43 = vadd.f32 %v7826_v29, %v7825_v27  ;;  %v7806_v47 = vpop.f32.mrb[74].mxu0  ;;  %v7828_v48 = vpop.f32.mrb[78].mxu1  ;;  %v7552_v27 = vld [vmem:[#allocation20] ss:$0 sm:$0xff] }
0x1b4d   : > { %v7807_v32 = vpop.f32.mrb[75].mxu0  ;;  %v7829_v49 = vpop.f32.mrb[79].mxu1 }
0x1b4e   : > { %v6068_v52 = vadd.f32 %v7827_v43, %v7805_v38  ;;  %v7808_v53 = vadd.f32 %v7807_v32, %v7806_v47  ;;  %v7830_v54 = vadd.f32 %v7829_v49, %v7828_v48 }
0x1b50   : > { %v6074_v55 = vadd.f32 %v6068_v52, %v10410_v4  ;;  %v6071_v56 = vadd.f32 %v7830_v54, %v7808_v53 }
0x1b52   : > { %v6075_v57 = vadd.f32 %v6071_v56, %v10412_v9 }
0x1b6a   : > { %v6324_v35 = vpop.f32.mrb[76].mxu0  ;;  %v6367_v2 = vpop.f32.mrb[80].mxu1 }
0x1b6b   : > { %v6325_v5 = vadd.f32 %v6324_v35, %v6113_v34  ;;  %v6368_v6 = vadd.f32 %v6367_v2, %v6121_v30  ;;  %v6326_v7 = vpop.f32.mrb[77].mxu0  ;;  %v6369_v17 = vpop.f32.mrb[81].mxu1  ;;  %v8736_v35 = vld [vmem:[%s10541_s21 + $0x30] sm:$0xff]   ;;  %v8737_v2 = vld [vmem:[%s10541_s21 + $0x38] sm:$0xff]  }
0x1b6c   : > { %v6327_v60 = vadd.f32 %v6326_v7, %v6117_v31  ;;  %v6370_v4 = vadd.f32 %v6369_v17, %v6125_v33  ;;  %v6328_v51 = vpop.f32.mrb[78].mxu0  ;;  %v6371_v61 = vpop.f32.mrb[82].mxu1 }
0x1b6d   : > { %v6329_v9 = vadd.f32 %v6328_v51, %v6113_v34  ;;  %v6372_v62 = vadd.f32 %v6371_v61, %v6121_v30  ;;  %v6330_v63 = vpop.f32.mrb[79].mxu0  ;;  %v6373_v12 = vpop.f32.mrb[83].mxu1  ;;  %v6376_v3 = vmax.f32 %v6325_v5, 0.0  ;;  %v6378_v15 = vmax.f32 %v6368_v6, 0.0  ;;  %v7553_v61 = vld [vmem:[#allocation21] ss:$0 sm:$0xff] }
0x1b6e   : > { %v6331_v1 = vadd.f32 %v6330_v63, %v6117_v31  ;;  %v6374_v14 = vadd.f32 %v6373_v12, %v6125_v33  ;;  %v6377_v8 = vmax.f32 %v6327_v60, 0.0  ;;  %v6379_v13 = vmax.f32 %v6370_v4, 0.0  ;;  %v8734_v31 = vld [vmem:[%s10541_s21 + $0x20] sm:$0xff]   ;;  %v8735_v33 = vld [vmem:[%s10541_s21 + $0x28] sm:$0xff]   ;;  %v7554_v63 = vld [vmem:[#allocation23] ss:$0 sm:$0xff] }
0x1b6f   : > { %v6380_v37 = vmax.f32 %v6329_v9, 0.0  ;;  %v6382_v16 = vmax.f32 %v6372_v62, 0.0 }
0x1b70   : > { %v6381_v18 = vmax.f32 %v6331_v1, 0.0  ;;  %v6383_v50 = vmax.f32 %v6374_v14, 0.0 }
0x1b71   : > { %v6384_v41 = vpack.c.bf16 %v6380_v37, %v6376_v3  ;;  %v6386_v39 = vpack.c.bf16 %v6382_v16, %v6378_v15 }
0x1b72   : > { %v6385_v40 = vpack.c.bf16 %v6381_v18, %v6377_v8  ;;  %v6387_v42 = vpack.c.bf16 %v6383_v50, %v6379_v13 }
0x1b74   : > { %6676 = vmatprep.mubr.bf16.mxu0 %v6385_v40  ;;  %6717 = vmatprep.mubr.bf16.mxu1 %v6387_v42  ;;  %v6805_v42 = vld [vmem:[#allocation24] sm:$0x1] }
0x1b75   : > { %6677 = vmatmul.mubr.bf16.vlgmr.msra.gmra.mrb[80].mxu0 %v6384_v41  ;;  %6718 = vmatmul.mubr.bf16.vlgmr.msra.gmra.mrb[84].mxu1 %v6386_v39 }
0x1b76   : > { %8182 = vmatprep.mubr.msk.bf16.mxu0 %vm9322_vm2, %v9321_v10  ;;  %vm6894_vm2 = vcmask 516096  }
0x1c48   : > { %v7847_v44 = vpop.f32.mrb[80].mxu0  ;;  %v7869_v45 = vpop.f32.mrb[84].mxu1 }
0x1c49   : > { %v7848_v46 = vpop.f32.mrb[81].mxu0  ;;  %v7870_v19 = vpop.f32.mrb[85].mxu1 }
0x1c4a   : > { %v7849_v11 = vadd.f32 %v7848_v46, %v7847_v44  ;;  %v7871_v20 = vadd.f32 %v7870_v19, %v7869_v45  ;;  %v7850_v22 = vpop.f32.mrb[82].mxu0  ;;  %v7872_v23 = vpop.f32.mrb[86].mxu1 }
0x1c4b   : > { %v7851_v0 = vpop.f32.mrb[83].mxu0  ;;  %v7873_v24 = vpop.f32.mrb[87].mxu1 }
0x1c4c   : > { %v6720_v25 = vadd.f32 %v7871_v20, %v7849_v11  ;;  %v7852_v26 = vadd.f32 %v7851_v0, %v7850_v22  ;;  %v7874_v36 = vadd.f32 %v7873_v24, %v7872_v23 }
0x1c4e   : > { %v6726_v59 = vadd.f32 %v6720_v25, %v6074_v55  ;;  %v6723_v29 = vadd.f32 %v7874_v36, %v7852_v26  ;;  %v8730_v55 = vld [vmem:[%s10541_s21] sm:$0xff]  }
0x1c4f   : > { %8167 = vmatpush3.bf16.msra.mxu0 %v8730_v55 }
0x1c50   : > { %v6727_v38 = vadd.f32 %v6723_v29, %v6075_v57  ;;  %v6735_v43 = vadd.f32 %v7552_v27, %v6726_v59  ;;  %8168 = vmatprep.subr.bf16.mxu0 %v9321_v10  ;;  %v8733_v57 = vld [vmem:[%s10541_s21 + $0x18] sm:$0xff]  }
0x1c52   : > { %v6737_v47 = vadd.f32 %v6735_v43, %v10359_v21  ;;  %v6736_v48 = vadd.f32 %v7552_v27, %v6727_v38  ;;  %v8731_v21 = vld [vmem:[%s10541_s21 + $0x8] sm:$0xff]  }
0x1c53   : > { %8169 = vmatpush3.bf16.msra.mxu0 %v8731_v21 }
0x1c54   : > { %6739 = vadd.xlane.f32.xlu1 %v6737_v47  ;;  %v6738_v32 = vadd.f32 %v6736_v48, %v10361_v28  ;;  %8170 = vmatprep.subr.bf16.mxu0 %v9321_v10  ;;  %v8732_v28 = vld [vmem:[%s10541_s21 + $0x10] sm:$0xff]  }
0x1c56   : > { %6741 = vadd.xlane.f32.xlu0 %v6738_v32 }
0x1c57   : > { %8171 = vmatpush3.bf16.msra.mxu0 %v8732_v28 }
0x1c58   : > { %8172 = vmatprep.subr.bf16.mxu0 %v9321_v10 }
0x1c5b   : > { %8173 = vmatpush3.bf16.msra.mxu0 %v8733_v57 }
0x1c5c   : > { %8174 = vmatprep.subr.bf16.mxu0 %v9321_v10 }
0x1c5f   : > { %8175 = vmatpush3.bf16.msra.mxu0 %v8734_v31 }
0x1c60   : > { %8176 = vmatprep.subr.bf16.mxu0 %v9321_v10 }
0x1c63   : > { %8177 = vmatpush3.bf16.msra.mxu0 %v8735_v33 }
0x1c64   : > { %8178 = vmatprep.subr.bf16.mxu0 %v9321_v10 }
0x1c67   : > { %8179 = vmatpush3.bf16.msra.mxu0 %v8736_v35 }
0x1c68   : > { %8180 = vmatprep.subr.bf16.mxu0 %v9321_v10 }
0x1c6b   : > { %8181 = vmatpush3.bf16.msra.mxu0 %v8737_v2 }
0x1ce1   : > { %v6740_v49 = vpop.xlane.xlu1 %6739 }
0x1ce2   : > { %v6743_v52 = vmul.f32 0.0078125, %v6740_v49 }
0x1ce3   : > { %v6742_v53 = vpop.xlane.xlu0 %6741 }
0x1ce4   : > { %v6745_v54 = vsub.f32 %v6737_v47, %v6743_v52  ;;  %v6744_v56 = vmul.f32 0.0078125, %v6742_v53 }
0x1ce6   : > { %v6746_v58 = vsub.f32 %v6738_v32, %v6744_v56  ;;  %v6747_v34 = vmul.f32 %v6745_v54, %v6745_v54 }
0x1ce8   : > { %6749 = vadd.xlane.f32.xlu1 %v6747_v34  ;;  %v6748_v30 = vmul.f32 %v6746_v58, %v6746_v58 }
0x1cea   : > { %6751 = vadd.xlane.f32.xlu0 %v6748_v30 }
0x1d75   : > { %v6750_v5 = vpop.xlane.xlu1 %6749 }
0x1d76   : > { %v6753_v6 = vmul.f32 0.0078125, %v6750_v5 }
0x1d77   : > { %v6752_v7 = vpop.xlane.xlu0 %6751 }
0x1d78   : > { %v6755_v17 = vadd.f32 1e-05, %v6753_v6  ;;  %v6754_v60 = vmul.f32 0.0078125, %v6752_v7 }
0x1d7a   : > { %8806 = vrsqrt.f32 %v6755_v17  ;;  %v6756_v4 = vadd.f32 1e-05, %v6754_v60 }
0x1d7c   : > { %8808 = vrsqrt.f32 %v6756_v4 }
0x1d84   : > { %v8807_v51 = vpop.eup %8806 }
0x1d85   : > { %v6759_v9 = vmul.f32 %v8807_v51, %v6745_v54 }
0x1d86   : > { %v8809_v62 = vpop.eup %8808 }
0x1d87   : > { %v6768_v12 = vmul.f32 %v7553_v61, %v6759_v9  ;;  %v6760_v1 = vmul.f32 %v8809_v62, %v6746_v58 }
0x1d89   : > { %v6769_v14 = vmul.f32 %v7553_v61, %v6760_v1  ;;  %v6777_v3 = vadd.f32 %v7554_v63, %v6768_v12 }
0x1d8b   : > { %v6778_v15 = vadd.f32 %v7554_v63, %v6769_v14  ;;  %v6779_v10 = vmax.f32 %v6777_v3, 0.0 }
0x1d8d   : > { %v6780_v37 = vmax.f32 %v6778_v15, 0.0 }
0x1d8f   : > { %v6781_v16 = vmax.f32 %v6779_v10, %v6780_v37 }
0x1d91   : > { %v6782_v8 = vrot.slane %v6781_v16, 4 }
0x1d93   : > { %v6783_v13 = vmax.f32 %v6781_v16, %v6782_v8 }
0x1d95   : > { %v6784_v18 = vrot.slane %v6783_v13, 2 }
0x1d97   : > { %v6785_v50 = vmax.f32 %v6783_v13, %v6784_v18 }
0x1d99   : > { %v6786_v41 = vrot.slane %v6785_v50, 1 }
0x1d9b   : > { %v6787_v39 = vmax.f32 %v6785_v50, %v6786_v41 }
0x1d9d   : > { %v6788_v40 = vpack.c.bf16 %v6787_v39, %v6787_v39 }
0x1d9f   : > { %8183 = vmatmul.mubr.bf16.vlgmr.msra.gmra.mrb[84].mxu0 %v6788_v40 }
0x1e72   : > { %v6888_v44 = vpop.f32.mrb[84].mxu0 }
0x1e73   : > { %v6889_v45 = vadd.f32 %v6888_v44, %v6805_v42  ;;  %v8184_v46 = vpop.f32.mrb[85].mxu0 }
0x1e74   : > { %v6891_v19 = vpop.f32.mrb[86].mxu0 }
0x1e75   : > { %v8185_v11 = vpop.f32.mrb[87].mxu0  ;;  %v6895_v20 = vsel %vm6894_vm2, %v6889_v45, -inf }
0x1e76   : > { %6896 = vmax.xlane.f32.xlu1 %v6895_v20 }
0x1f03   : > { %v6897_v22 = vpop.xlane.xlu1 %6896 }
0x1f04   : > { %v6898_v23 = vsub.f32 %v6889_v45, %v6897_v22 }
0x1f06   : > { %v6899_v0 = vmul.f32 1.442695, %v6898_v23 }
0x1f08   : > { %8810 = vpow2.f32 %v6899_v0 }
0x1f12   : > { %v8811_v24 = vpop.eup %8810 }
0x1f13   : > { %v6901_v25 = vsel %vm6894_vm2, %v8811_v24, 0.0 }
0x1f14   : > { %6902 = vadd.xlane.f32.xlu0 %v6901_v25 }
0x1fa1   : > { %v6903_v26 = vpop.xlane.xlu0 %6902 }
0x1fa2   : > { %8812 = vrcp.f32 %v6903_v26 }
0x1fac   : > { %v8813_v36 = vpop.eup %8812 }
0x1fad   : > { %v6905_v27 = vmul.f32 %v8813_v36, %v8811_v24 }
0x1faf   : > { %6906 = vst.msk [vmem:[%s886_s2] sm:$0x1] %vm6894_vm2, %v6905_v27 }
0x1fb0   : > { %9219 = shalt.err (!%p9216_p7)
}
0x1fb1   : > { %s9220_s28 = scalar_lea.hbm %s10477_s29, 16  ;;  %s9224_s30 = scalar_lea.hbm %s10626_s23, 32 }
0x1fb2   : > { %p9221_p8 = scmp.ne.s32.totalorder %s10477_s29, %s9220_s28  ;;  %p9225_p1 = scmp.lt.u32.totalorder %s10477_s29, %s10626_s23 }
0x1fb3   : > { %p9226_p0 = scmp.lt.u32.totalorder %s9224_s30, %s9220_s28  ;;  %p9228_p5 = scmp.lt.u32.totalorder %s9220_s28, %s10477_s29 }
0x1fb4   : > { %p9222_p11 = pnand %p9221_p8, %p10627_p9 }
0x1fb5   : > { %p9227_p6 = por %p9226_p0, %p9225_p1 }
0x1fb6   : > { %p9223_p13 = pneg %p9222_p11 }
0x1fb7   : > { %p9229_p12 = por %p9228_p5, %p9227_p6 }
0x1fb9   : > { %p9230_p10 = pnand %p9229_p12, %p9223_p13 }
0x1fbb   : > { %9233 = shalt.err (!%p9230_p10)
}
0x1fbc   : > { %8322 = dma.vmem_to_hbm [thread:$0]  (%p10627_p9), %s10479_s4, 16, %s10477_s29, %s6908_s8  }
0x1fbd PF: > { %s10628_s1 = sld [smem:[#allocation39_spill]]  ;;  %s10629_s0 = sld [smem:[#allocation36_spill]] }
0x1fbe   : > { %s10630_s5 = sld [smem:[#allocation43_spill]] }
0x1fc3   : > { %p8399_p2 = scmp.ge.s32.totalorder %s10628_s1, 2  ;;  %s6932_s13 = sand.u32 1, %s10629_s0  }
0x1fc4   : > { %p10631_p3 = scmp.ne.s32.totalorder %s10630_s5, 0  ;;  %s6933_s27 = scalar_lea.sflag [#allocation5], %s6932_s13 }
0x1fc6   : > { %p8368_p4 = pnand %p8399_p2, %p10631_p3 }
0x1fc8   : > { %9283 = dma.done.wait (!%p8368_p4), %s6933_s27, 16  }
0x1fc9   : > { %9285 = vsyncadd (!%p8368_p4), %s6933_s27, 4294967280  ;;  %s10632_s25 = sld [smem:[#allocation40_spill]]  ;;  %s10633_s4 = sld [smem:[#allocation37_spill]] }
0x1fca   : > { %s10634_s30 = sld [smem:[#allocation38_spill]]  ;;  %s10635_s24 = sld [smem:[#allocation41_spill]] }
0x1fcf   : > { %p41_p7 = scmp.ge.s32.totalorder %s10632_s25, 4  }
0x1fd1   :  { %43 = sbr.rel (!%p41_p7) target bundleno = 24 (0x18), region = 216 }
0x1fd8   :  { %6937 = vsyncpa [#allocation4], 1 }
0x1fd9   :  { %6939 = vsyncpa [#allocation4 + $0x1], 1 }
0x1fda   :  { %6940 = vsyncpa [#allocation7], 1 }
0x1fdb   :  { %6941 = vsyncpa [#allocation10], 1 }
0x1fdc   :  { %6942 = vsyncpa [#allocation13], 1 }
0x1fdd   :  { %6943 = vsyncpa [#allocation16], 1 }
0x1fde   :  { %6944 = vsyncpa [#allocation19], 1 }
0x1fdf   :  { %6945 = vsyncpa [#allocation22], 1 }
0x1fe0   :  { %6946 = vsyncpa [#allocation25], 1 }
0x1fe1   :  { %6947 = vsyncpa [#allocation5], 1 }
0x1fe2   :  { %6949 = vsyncpa [#allocation5 + $0x1], 1 }

</bundles_post_ra>
